<compile_context>
chip_gen: v5e
topology: v5e:2x2
jax: 0.10.0
libtpu: 0.0.40
codegen_flags: <defaults>
</compile_context>

<pallas_src>
import functools

import jax
import jax.numpy as jnp
from jax.experimental import pallas as pl
from jax.experimental.pallas import tpu as pltpu

EPS = 1e-5


def _round_up(x, m):
    return (x + m - 1) // m * m


def _im2col_3x3(x, out_rows, out_cols):
    """x: (out_rows+2, >=out_cols+2, C) -> (out_rows*out_cols, 9*C). Tap order t=dy*3+dx."""
    taps = [x[dy:dy + out_rows, dx:dx + out_cols, :]
            for dy in range(3) for dx in range(3)]
    patch = jnp.concatenate(taps, axis=-1)
    return patch.reshape(out_rows * out_cols, patch.shape[-1])


# ----------------------------- VMEM budgeting helpers -----------------------------

def _pass1_vmem(th, Wf, K1p, cp):
    R = th + 2
    io = 2 * (R * Wf * K1p * 2 + K1p * cp * 2 + cp * 4 + R * Wf * cp * 2 + 2 * cp * 4)
    tmp = 2 * R * Wf * cp * 4                       # f32 acc + masked copy for stats
    return io + tmp


def _pass2_vmem(th, W, Wf, cp):
    R = th + 2
    io = 2 * (R * Wf * cp * 2 + 9 * cp * cp * 2 + 3 * cp * 4 + th * W * cp * 2 + 2 * cp * 4)
    tmp = (R * Wf * cp * 4          # h1 f32
           + R * Wf * cp * 2        # h1 bf16
           + th * W * 9 * cp * 2    # 9x im2col patch (dominant at large TH)
           + 2 * th * W * cp * 4)   # f32 acc (+ stats temp)
    return io + tmp


def _pick_tile_h(H, W, Wf, K1p, cp, budget=36 << 20):
    """Largest divisor of H whose per-step working set fits the VMEM budget."""
    for th in range(H, 0, -1):
        if H % th:
            continue
        if max(_pass1_vmem(th, Wf, K1p, cp), _pass2_vmem(th, W, Wf, cp)) <= budget:
            return th
    return 1


def _vmem_limit(est_bytes):
    # cap below v7x's 64 MiB physical VMEM to leave Mosaic internal-scratch headroom
    return int(min(48 << 20, max(32 << 20, int(1.25 * est_bytes))))


# ----------------------------------- kernels -----------------------------------

def _conv1_kernel(p_ref, w_ref, b_ref, z1_ref, st_ref, *, TH, W, Wf):
    """conv1 + bias on one halo-inclusive tile; per-tile BN1 partial sums (f32)."""
    R = TH + 2
    K1p = p_ref.shape[-1]
    cp = w_ref.shape[-1]
    patch = p_ref[0].reshape(R * Wf, K1p)                      # bf16, no up-cast
    acc = jnp.dot(patch, w_ref[...], preferred_element_type=jnp.float32)
    acc = acc + b_ref[...]
    acc3 = acc.reshape(R, Wf, cp)
    z1_ref[0] = acc3.astype(z1_ref.dtype)                      # bf16 intermediate

    # BN1 partial sums over this tile's own TH x W interior pixels only.
    row = jax.lax.broadcasted_iota(jnp.int32, (R, Wf, 1), 0)
    col = jax.lax.broadcasted_iota(jnp.int32, (R, Wf, 1), 1)
    inside = (row >= 1) & (row <= TH) & (col >= 1) & (col <= W)
    m = jnp.where(inside, acc3, 0.0).reshape(R * Wf, cp)
    st_ref[0] = jnp.concatenate(
        [jnp.sum(m, axis=0, keepdims=True),
         jnp.sum(m * m, axis=0, keepdims=True)], axis=0)


def _conv2_kernel(z1_ref, w_ref, b_ref, sc_ref, sh_ref, z2_ref, st_ref,
                  *, TH, W, Wf, H):
    """Folded BN1 + ReLU + conv2 + bias on one tile; per-tile BN2 partial sums."""
    R = TH + 2
    cp = z1_ref.shape[-1]
    sc = sc_ref[...].reshape(1, 1, cp)
    sh = sh_ref[...].reshape(1, 1, cp)
    h1 = jnp.maximum(z1_ref[0].astype(jnp.float32) * sc + sh, 0.0)

    # zero everything outside the real image (conv2 zero padding + halo overrun),
    # then cast ONCE to bf16 so the 9x im2col patch is built in bf16.
    row = jax.lax.broadcasted_iota(jnp.int32, (R, Wf, 1), 0)
    col = jax.lax.broadcasted_iota(jnp.int32, (R, Wf, 1), 1)
    grow = pl.program_id(1) * TH + row - 1
    valid = (grow >= 0) & (grow < H) & (col >= 1) & (col <= W)
    h1 = jnp.where(valid, h1, 0.0).astype(jnp.bfloat16)

    patch = _im2col_3x3(h1, TH, W)                             # (TH*W, 9*cp) bf16
    acc = jnp.dot(patch, w_ref[...], preferred_element_type=jnp.float32)
    acc = acc + b_ref[...]
    z2_ref[0] = acc.reshape(TH, W, cp).astype(z2_ref.dtype)    # bf16 intermediate
    st_ref[0] = jnp.concatenate(
        [jnp.sum(acc, axis=0, keepdims=True),
         jnp.sum(acc * acc, axis=0, keepdims=True)], axis=0)


def _bn_relu_kernel(z_ref, sc_ref, sh_ref, o_ref, *, Cout):
    """Folded BN2 + ReLU + channel crop (elementwise, full lane-dense tile per step)."""
    cp = z_ref.shape[-1]
    sc = sc_ref[...].reshape(1, 1, 1, cp)
    sh = sh_ref[...].reshape(1, 1, 1, cp)
    y = jnp.maximum(z_ref[...].astype(jnp.float32) * sc + sh, 0.0)
    o_ref[...] = y[..., :Cout].astype(o_ref.dtype)


# ----------------------------------- wrapper -----------------------------------

def double_conv_forward(x_nchw, params, *, tile_h=None):
    """NCHW input, PyTorch training-mode BatchNorm forward semantics.

    Precision policy: bf16 matmul operands / weights / inter-pass intermediates,
    f32 accumulation, f32 BN statistics and scale/shift; final output f32.
    """
    N, Cin, H, W = x_nchw.shape
    Cout = params["w1"].shape[-1]
    cp = _round_up(Cout, 128)                    # lane-dense channels; >=256 wide when Cout>=256
    K1 = 9 * Cin
    K1p = _round_up(K1, 128)                     # tap-packed conv1 contraction dim
    Wf = _round_up(W + 2, 8)                     # sublane-aligned conv frame width

    TH = tile_h if tile_h is not None else _pick_tile_h(H, W, Wf, K1p, cp)
    assert H % TH == 0, "H must be divisible by the H-tile size"
    HT = H // TH
    R = TH + 2

    f32, bf16 = jnp.float32, jnp.bfloat16
    grid = (N, HT)
    psem = ("parallel", "parallel")

    # ---- conv1 patches built in the wrapper (tiny: 9*Cin channels, no 128-per-tap pad) ----
    x = jnp.transpose(x_nchw, (0, 2, 3, 1)).astype(f32)                  # NHWC
    xpad = jnp.pad(x, ((0, 0), (1, 1), (1, 1), (0, 0)))                  # conv pad=1
    taps = [xpad[:, dy:dy + H, dx:dx + W, :] for dy in range(3) for dx in range(3)]
    pat = jnp.concatenate(taps, axis=-1)                                 # (N, H, W, 9*Cin)
    # frame layout: 1 zero halo row top/bottom, 1 zero col left, pad W->Wf, K->K1p
    pat = jnp.pad(pat, ((0, 0), (1, 1), (1, Wf - W - 1), (0, K1p - K1)))
    if HT == 1:
        pat_t = pat                                                      # no duplicated copy
    else:
        pat_t = jnp.stack([pat[:, h * TH:h * TH + R] for h in range(HT)], axis=1)
        pat_t = pat_t.reshape(N * HT, R, Wf, K1p)
    pat_t = pat_t.astype(bf16)

    def pad_c(v):
        return jnp.pad(jnp.reshape(v, (-1,)).astype(f32), (0, cp - Cout))

    w1p = jnp.pad(params["w1"].astype(f32).reshape(K1, Cout),
                  ((0, K1p - K1), (0, cp - Cout))).astype(bf16)          # (K1p, cp)
    w2p = jnp.pad(params["w2"].astype(f32),
                  ((0, 0), (0, cp - Cout), (0, cp - Cout))
                  ).reshape(9 * cp, cp).astype(bf16)
    b1p = pad_c(params["b1"]).reshape(1, cp)
    b2p = pad_c(params["b2"]).reshape(1, cp)
    g1p, be1p = pad_c(params["g1"]), pad_c(params["be1"])
    g2p, be2p = pad_c(params["g2"]), pad_c(params["be2"])

    # ---------------- pass 1: conv1 + bias, per-tile BN1 partial sums ----------------
    est1 = _pass1_vmem(TH, Wf, K1p, cp)
    z1_t, stats1 = pl.pallas_call(
        functools.partial(_conv1_kernel, TH=TH, W=W, Wf=Wf),
        out_shape=(jax.ShapeDtypeStruct((N * HT, R, Wf, cp), bf16),
                   jax.ShapeDtypeStruct((N * HT, 2, cp), f32)),
        grid_spec=pltpu.PrefetchScalarGridSpec(
            num_scalar_prefetch=0,
            grid=grid,
            in_specs=[
                pl.BlockSpec((1, R, Wf, K1p), lambda n, h: (n * HT + h, 0, 0, 0)),
                pl.BlockSpec((K1p, cp), lambda n, h: (0, 0)),
                pl.BlockSpec((1, cp), lambda n, h: (0, 0)),
            ],
            out_specs=[
                pl.BlockSpec((1, R, Wf, cp), lambda n, h: (n * HT + h, 0, 0, 0)),
                pl.BlockSpec((1, 2, cp), lambda n, h: (n * HT + h, 0, 0)),
            ],
        ),
        compiler_params=pltpu.CompilerParams(
            dimension_semantics=psem, vmem_limit_bytes=_vmem_limit(est1)),
        cost_estimate=pl.CostEstimate(
            flops=2 * N * HT * R * Wf * K1p * cp,
            transcendentals=0,
            bytes_accessed=int(pat_t.size) * 2 + K1p * cp * 2
                           + N * HT * R * Wf * cp * 2 + N * HT * 2 * cp * 4),
    )(pat_t, w1p, b1p)

    # ---- fold BN into per-channel scale/shift (y = x*scale + shift), f32 ----
    cnt = float(N * H * W)

    def fold_bn(stats, gamma, beta):
        s = jnp.sum(stats[:, 0, :], axis=0)
        ss = jnp.sum(stats[:, 1, :], axis=0)
        mean = s / cnt
        var = jnp.maximum(ss / cnt - mean * mean, 0.0)   # biased, training-mode variance
        scale = gamma * jax.lax.rsqrt(var + EPS)
        shift = beta - mean * scale
        return scale.reshape(1, cp).astype(f32), shift.reshape(1, cp).astype(f32)

    sc1, sh1 = fold_bn(stats1, g1p, be1p)

    # -------- pass 2: BN1 + ReLU + conv2 + bias, per-tile BN2 partial sums ----------
    est2 = _pass2_vmem(TH, W, Wf, cp)
    z2, stats2 = pl.pallas_call(
        functools.partial(_conv2_kernel, TH=TH, W=W, Wf=Wf, H=H),
        out_shape=(jax.ShapeDtypeStruct((N, H, W, cp), bf16),
                   jax.ShapeDtypeStruct((N * HT, 2, cp), f32)),
        grid_spec=pltpu.PrefetchScalarGridSpec(
            num_scalar_prefetch=0,
            grid=grid,
            in_specs=[
                pl.BlockSpec((1, R, Wf, cp), lambda n, h: (n * HT + h, 0, 0, 0)),
                pl.BlockSpec((9 * cp, cp), lambda n, h: (0, 0)),
                pl.BlockSpec((1, cp), lambda n, h: (0, 0)),
                pl.BlockSpec((1, cp), lambda n, h: (0, 0)),
                pl.BlockSpec((1, cp), lambda n, h: (0, 0)),
            ],
            out_specs=[
                pl.BlockSpec((1, TH, W, cp), lambda n, h: (n, h, 0, 0)),
                pl.BlockSpec((1, 2, cp), lambda n, h: (n * HT + h, 0, 0)),
            ],
        ),
        compiler_params=pltpu.CompilerParams(
            dimension_semantics=psem, vmem_limit_bytes=_vmem_limit(est2)),
        cost_estimate=pl.CostEstimate(
            flops=2 * N * H * W * 9 * cp * cp,
            transcendentals=0,
            bytes_accessed=N * HT * R * Wf * cp * 2 + 9 * cp * cp * 2
                           + N * H * W * cp * 2 + N * HT * 2 * cp * 4),
    )(z1_t, w2p, b2p, sc1, sh1)

    sc2, sh2 = fold_bn(stats2, g2p, be2p)

    # ------------- pass 3: BN2 + ReLU + channel crop (elementwise, big tiles) -------------
    est3 = 2 * (TH * W * cp * 2 + TH * W * Cout * 4 + 2 * cp * 4) + 2 * TH * W * cp * 4
    y = pl.pallas_call(
        functools.partial(_bn_relu_kernel, Cout=Cout),
        out_shape=jax.ShapeDtypeStruct((N, H, W, Cout), f32),
        grid_spec=pltpu.PrefetchScalarGridSpec(
            num_scalar_prefetch=0,
            grid=grid,
            in_specs=[
                pl.BlockSpec((1, TH, W, cp), lambda n, h: (n, h, 0, 0)),
                pl.BlockSpec((1, cp), lambda n, h: (0, 0)),
                pl.BlockSpec((1, cp), lambda n, h: (0, 0)),
            ],
            out_specs=pl.BlockSpec((1, TH, W, Cout), lambda n, h: (n, h, 0, 0)),
        ),
        compiler_params=pltpu.CompilerParams(
            dimension_semantics=psem, vmem_limit_bytes=_vmem_limit(est3)),
        cost_estimate=pl.CostEstimate(
            flops=2 * N * H * W * cp,
            transcendentals=0,
            bytes_accessed=N * H * W * cp * 2 + N * H * W * Cout * 4),
    )(z2, sc2, sh2)

    # back to NCHW (channel crop already done in-kernel)
    return jnp.transpose(y, (0, 3, 1, 2))


# ------------------------------- params / reference -------------------------------

def init_params(key, cin, cout):
    ks = jax.random.split(key, 8)
    w1 = jax.random.normal(ks[0], (9, cin, cout), jnp.float32) / jnp.sqrt(9.0 * cin)
    b1 = 0.1 * jax.random.normal(ks[1], (1, cout), jnp.float32)
    g1 = 1.0 + 0.1 * jax.random.normal(ks[2], (1, cout), jnp.float32)
    be1 = 0.1 * jax.random.normal(ks[3], (1, cout), jnp.float32)
    w2 = jax.random.normal(ks[4], (9, cout, cout), jnp.float32) / jnp.sqrt(9.0 * cout)
    b2 = 0.1 * jax.random.normal(ks[5], (1, cout), jnp.float32)
    g2 = 1.0 + 0.1 * jax.random.normal(ks[6], (1, cout), jnp.float32)
    be2 = 0.1 * jax.random.normal(ks[7], (1, cout), jnp.float32)
    return dict(w1=w1, b1=b1, g1=g1, be1=be1, w2=w2, b2=b2, g2=g2, be2=be2)


def _ref_double_conv(x_nchw, p, matmul_dtype=jnp.float32, store_dtype=jnp.float32):
    """Plain-JAX reference. matmul_dtype/store_dtype=bf16 mirrors the kernel's policy."""
    x = jnp.transpose(x_nchw, (0, 2, 3, 1)).astype(jnp.float32)

    def conv3x3(v, w, b):
        n, h, wd, _ = v.shape
        cout = w.shape[-1]
        vc = v.astype(matmul_dtype).astype(jnp.float32)
        wc = w.astype(matmul_dtype).astype(jnp.float32)
        vp = jnp.pad(vc, ((0, 0), (1, 1), (1, 1), (0, 0)))
        acc = jnp.zeros((n, h, wd, cout), jnp.float32)
        for t in range(9):
            dy, dx = t // 3, t % 3
            acc += jnp.einsum("nhwc,cd->nhwd", vp[:, dy:dy + h, dx:dx + wd, :], wc[t])
        return acc + b.reshape(1, 1, 1, cout)

    def bn_relu(v, g, be):
        # stats from the f32 conv output; affine applied to the (possibly bf16-rounded)
        # stored activations, mirroring the kernel's precision policy.
        mean = jnp.mean(v, axis=(0, 1, 2), keepdims=True)
        var = jnp.mean((v - mean) ** 2, axis=(0, 1, 2), keepdims=True)
        vq = v.astype(store_dtype).astype(jnp.float32)
        y = (vq - mean) * jax.lax.rsqrt(var + EPS) * g.reshape(1, 1, 1, -1) \
            + be.reshape(1, 1, 1, -1)
        return jnp.maximum(y, 0.0)

    h1 = bn_relu(conv3x3(x, p["w1"], p["b1"]), p["g1"], p["be1"])
    h2 = bn_relu(conv3x3(h1, p["w2"], p["b2"]), p["g2"], p["be2"])
    return jnp.transpose(h2, (0, 3, 1, 2))


if __name__ == "__main__":
    key = jax.random.PRNGKey(0)
    kx, kp = jax.random.split(key)

    N, Cin, H, W = 2, 4, 16, 16
    Cout = 8
    x = jax.random.normal(kx, (N, Cin, H, W), jnp.float32)
    params = init_params(kp, Cin, Cout)

    fwd = jax.jit(double_conv_forward)
    out = jax.block_until_ready(fwd(x, params))
    assert out.shape == (N, Cout, H, W), out.shape
    assert bool(jnp.all(jnp.isfinite(out)))

    # Structural check: reference using the kernel's precision policy (bf16 matmul
    # operands + bf16 stored intermediates, f32 accumulation / BN statistics).
    ref_bf16 = jax.block_until_ready(
        _ref_double_conv(x, params, jnp.bfloat16, jnp.bfloat16))
    assert jnp.allclose(out, ref_bf16, atol=3e-2, rtol=3e-2), \
        f"max abs diff vs bf16-policy ref {jnp.max(jnp.abs(out - ref_bf16))}"

    # Sanity check vs the pure-f32 PyTorch-semantics reference (loose tolerance covers
    # bf16 rounding of operands and intermediates through two convs and two batch norms).
    ref_f32 = jax.block_until_ready(_ref_double_conv(x, params))
    assert jnp.allclose(out, ref_f32, atol=1e-1, rtol=1e-1), \
        f"max abs diff vs f32 ref {jnp.max(jnp.abs(out - ref_f32))}"

    print("KERNEL_OK")
</pallas_src>

<mosaic_0001>
module attributes {stable_mosaic.version = 11 : i64} {
  func.func @_conv1_kernel(%arg0: i32, %arg1: i32, %arg2: memref<1x18x24x128xbf16, #tpu.memory_space<vmem>>, %arg3: memref<128x128xbf16, #tpu.memory_space<vmem>>, %arg4: memref<1x128xf32, #tpu.memory_space<vmem>>, %arg5: memref<1x18x24x128xbf16, #tpu.memory_space<vmem>>, %arg6: memref<1x2x128xf32, #tpu.memory_space<vmem>>) attributes {dimension_semantics = [#tpu.dimension_semantics<parallel>, #tpu.dimension_semantics<parallel>], iteration_bounds = array<i64: 2, 1>, scalar_prefetch = 0 : i64, scratch_operands = 0 : i64, tpu.core_type = #tpu.core_type<tc>, window_params = [{transform_indices = @transform_0, window_bounds = array<i64: 1, 18, 24, 128>}, {pipeline_mode = #tpu.pipeline_mode<synchronous>, transform_indices = @transform_1, window_bounds = array<i64: 128, 128>}, {pipeline_mode = #tpu.pipeline_mode<synchronous>, transform_indices = @transform_2, window_bounds = array<i64: 1, 128>}, {transform_indices = @transform_3, window_bounds = array<i64: 1, 18, 24, 128>}, {transform_indices = @transform_4, window_bounds = array<i64: 1, 2, 128>}]} {
    %c0 = arith.constant 0 : index
    %c0_0 = arith.constant 0 : index
    %c0_1 = arith.constant 0 : index
    %c0_2 = arith.constant 0 : index
    %0 = vector.load %arg2[%c0, %c0_0, %c0_1, %c0_2] : memref<1x18x24x128xbf16, #tpu.memory_space<vmem>>, vector<1x18x24x128xbf16>
    %1 = vector.shape_cast %0 : vector<1x18x24x128xbf16> to vector<18x24x128xbf16>
    %2 = vector.shape_cast %1 : vector<18x24x128xbf16> to vector<432x128xbf16>
    %c0_3 = arith.constant 0 : index
    %c0_4 = arith.constant 0 : index
    %3 = vector.load %arg3[%c0_3, %c0_4] : memref<128x128xbf16, #tpu.memory_space<vmem>>, vector<128x128xbf16>
    %cst = arith.constant dense<0.000000e+00> : vector<432x128xf32>
    %4 = tpu.matmul %2, %3, %cst {dimension_numbers = #tpu.dot_dimension_numbers<[1], [0], [0], [1], [0, 0, 1, 1], [], []>} : vector<432x128xbf16>, vector<128x128xbf16>, vector<432x128xf32> -> vector<432x128xf32>
    %c0_5 = arith.constant 0 : index
    %c0_6 = arith.constant 0 : index
    %5 = vector.load %arg4[%c0_5, %c0_6] : memref<1x128xf32, #tpu.memory_space<vmem>>, vector<1x128xf32>
    %6 = vector.broadcast %5 : vector<1x128xf32> to vector<432x128xf32>
    %7 = arith.addf %4, %6 : vector<432x128xf32>
    %8 = vector.shape_cast %7 : vector<432x128xf32> to vector<18x24x128xf32>
    %9 = arith.truncf %8 : vector<18x24x128xf32> to vector<18x24x128xbf16>
    %c0_7 = arith.constant 0 : index
    %c0_8 = arith.constant 0 : index
    %c0_9 = arith.constant 0 : index
    %c0_10 = arith.constant 0 : index
    %10 = vector.load %arg5[%c0_7, %c0_8, %c0_9, %c0_10] : memref<1x18x24x128xbf16, #tpu.memory_space<vmem>>, vector<1x18x24x128xbf16>
    %11 = vector.shape_cast %10 : vector<1x18x24x128xbf16> to vector<18x24x128xbf16>
    %12 = vector.shape_cast %9 : vector<18x24x128xbf16> to vector<1x18x24x128xbf16>
    tpu.vector_store %arg5[%c0_7, %c0_8, %c0_9, %c0_10], %12 {strides = array<i32>} : memref<1x18x24x128xbf16, #tpu.memory_space<vmem>>, vector<1x18x24x128xbf16>,
    %13 = tpu.iota {dimensions = array<i32: 0>} : vector<18x24x1xi32>
    %14 = tpu.iota {dimensions = array<i32: 1>} : vector<18x24x1xi32>
    %c1_i32 = arith.constant 1 : i32
    %15 = vector.broadcast %c1_i32 : i32 to vector<18x24x1xi32>
    %16 = arith.cmpi sge, %13, %15 : vector<18x24x1xi32>
    %c16_i32 = arith.constant 16 : i32
    %17 = vector.broadcast %c16_i32 : i32 to vector<18x24x1xi32>
    %18 = arith.cmpi sle, %13, %17 : vector<18x24x1xi32>
    %19 = arith.andi %16, %18 : vector<18x24x1xi1>
    %c1_i32_11 = arith.constant 1 : i32
    %20 = vector.broadcast %c1_i32_11 : i32 to vector<18x24x1xi32>
    %21 = arith.cmpi sge, %14, %20 : vector<18x24x1xi32>
    %22 = arith.andi %19, %21 : vector<18x24x1xi1>
    %c16_i32_12 = arith.constant 16 : i32
    %23 = vector.broadcast %c16_i32_12 : i32 to vector<18x24x1xi32>
    %24 = arith.cmpi sle, %14, %23 : vector<18x24x1xi32>
    %25 = arith.andi %22, %24 : vector<18x24x1xi1>
    %cst_13 = arith.constant 0.000000e+00 : f32
    %26 = vector.shape_cast %25 : vector<18x24x1xi1> to vector<18x24x1xi1>
    %27 = vector.broadcast %26 : vector<18x24x1xi1> to vector<18x24x128xi1>
    %28 = vector.broadcast %cst_13 : f32 to vector<18x24x128xf32>
    %29 = arith.select %27, %8, %28 : vector<18x24x128xi1>, vector<18x24x128xf32>
    %30 = vector.shape_cast %29 : vector<18x24x128xf32> to vector<432x128xf32>
    %cst_14 = arith.constant dense<0.000000e+00> : vector<128xf32>
    %31 = vector.multi_reduction <add>, %30, %cst_14 [0] : vector<432x128xf32> to vector<128xf32>
    %32 = vector.shape_cast %31 : vector<128xf32> to vector<1x128xf32>
    %33 = arith.mulf %30, %30 : vector<432x128xf32>
    %cst_15 = arith.constant dense<0.000000e+00> : vector<128xf32>
    %34 = vector.multi_reduction <add>, %33, %cst_15 [0] : vector<432x128xf32> to vector<128xf32>
    %35 = vector.shape_cast %34 : vector<128xf32> to vector<1x128xf32>
    %36 = tpu.concatenate %32, %35 in 0 : vector<1x128xf32>, vector<1x128xf32> -> vector<2x128xf32>
    %c0_16 = arith.constant 0 : index
    %c0_17 = arith.constant 0 : index
    %c0_18 = arith.constant 0 : index
    %37 = vector.load %arg6[%c0_16, %c0_17, %c0_18] : memref<1x2x128xf32, #tpu.memory_space<vmem>>, vector<1x2x128xf32>
    %38 = vector.shape_cast %37 : vector<1x2x128xf32> to vector<2x128xf32>
    %39 = vector.shape_cast %36 : vector<2x128xf32> to vector<1x2x128xf32>
    tpu.vector_store %arg6[%c0_16, %c0_17, %c0_18], %39 {strides = array<i32>} : memref<1x2x128xf32, #tpu.memory_space<vmem>>, vector<1x2x128xf32>,
    return
  }
  func.func @transform_0(%arg0: i32, %arg1: i32) -> (i32, i32, i32, i32) {
    %c1_i32 = arith.constant 1 : i32
    %0 = arith.muli %arg0, %c1_i32 : i32
    %1 = arith.addi %0, %arg1 : i32
    %c0_i32 = arith.constant 0 : i32
    %c0_i32_0 = arith.constant 0 : i32
    %c0_i32_1 = arith.constant 0 : i32
    %c0_i32_2 = arith.constant 0 : i32
    return %1, %c0_i32, %c0_i32_0, %c0_i32_1 : i32, i32, i32, i32
  }
  func.func @transform_1(%arg0: i32, %arg1: i32) -> (i32, i32) {
    %c0_i32 = arith.constant 0 : i32
    %c0_i32_0 = arith.constant 0 : i32
    %c0_i32_1 = arith.constant 0 : i32
    return %c0_i32, %c0_i32_0 : i32, i32
  }
  func.func @transform_2(%arg0: i32, %arg1: i32) -> (i32, i32) {
    %c0_i32 = arith.constant 0 : i32
    %c0_i32_0 = arith.constant 0 : i32
    %c0_i32_1 = arith.constant 0 : i32
    return %c0_i32, %c0_i32_0 : i32, i32
  }
  func.func @transform_3(%arg0: i32, %arg1: i32) -> (i32, i32, i32, i32) {
    %c1_i32 = arith.constant 1 : i32
    %0 = arith.muli %arg0, %c1_i32 : i32
    %1 = arith.addi %0, %arg1 : i32
    %c0_i32 = arith.constant 0 : i32
    %c0_i32_0 = arith.constant 0 : i32
    %c0_i32_1 = arith.constant 0 : i32
    %c0_i32_2 = arith.constant 0 : i32
    return %1, %c0_i32, %c0_i32_0, %c0_i32_1 : i32, i32, i32, i32
  }
  func.func @transform_4(%arg0: i32, %arg1: i32) -> (i32, i32, i32) {
    %c1_i32 = arith.constant 1 : i32
    %0 = arith.muli %arg0, %c1_i32 : i32
    %1 = arith.addi %0, %arg1 : i32
    %c0_i32 = arith.constant 0 : i32
    %c0_i32_0 = arith.constant 0 : i32
    %c0_i32_1 = arith.constant 0 : i32
    return %1, %c0_i32, %c0_i32_0 : i32, i32, i32
  }
}

module attributes {stable_mosaic.version = 11 : i64} {
  func.func @_bn_relu_kernel(%arg0: i32, %arg1: i32, %arg2: memref<1x16x16x128xbf16, #tpu.memory_space<vmem>>, %arg3: memref<1x128xf32, #tpu.memory_space<vmem>>, %arg4: memref<1x128xf32, #tpu.memory_space<vmem>>, %arg5: memref<1x16x16x8xf32, #tpu.memory_space<vmem>>) attributes {dimension_semantics = [#tpu.dimension_semantics<parallel>, #tpu.dimension_semantics<parallel>], iteration_bounds = array<i64: 2, 1>, scalar_prefetch = 0 : i64, scratch_operands = 0 : i64, tpu.core_type = #tpu.core_type<tc>, window_params = [{transform_indices = @transform_0, window_bounds = array<i64: 1, 16, 16, 128>}, {pipeline_mode = #tpu.pipeline_mode<synchronous>, transform_indices = @transform_1, window_bounds = array<i64: 1, 128>}, {pipeline_mode = #tpu.pipeline_mode<synchronous>, transform_indices = @transform_2, window_bounds = array<i64: 1, 128>}, {transform_indices = @transform_3, window_bounds = array<i64: 1, 16, 16, 8>}]} {
    %c0 = arith.constant 0 : index
    %c0_0 = arith.constant 0 : index
    %0 = vector.load %arg3[%c0, %c0_0] : memref<1x128xf32, #tpu.memory_space<vmem>>, vector<1x128xf32>
    %1 = vector.shape_cast %0 : vector<1x128xf32> to vector<1x1x1x128xf32>
    %c0_1 = arith.constant 0 : index
    %c0_2 = arith.constant 0 : index
    %2 = vector.load %arg4[%c0_1, %c0_2] : memref<1x128xf32, #tpu.memory_space<vmem>>, vector<1x128xf32>
    %3 = vector.shape_cast %2 : vector<1x128xf32> to vector<1x1x1x128xf32>
    %c0_3 = arith.constant 0 : index
    %c0_4 = arith.constant 0 : index
    %c0_5 = arith.constant 0 : index
    %c0_6 = arith.constant 0 : index
    %4 = vector.load %arg2[%c0_3, %c0_4, %c0_5, %c0_6] : memref<1x16x16x128xbf16, #tpu.memory_space<vmem>>, vector<1x16x16x128xbf16>
    %5 = arith.extf %4 : vector<1x16x16x128xbf16> to vector<1x16x16x128xf32>
    %6 = vector.broadcast %1 : vector<1x1x1x128xf32> to vector<1x16x16x128xf32>
    %7 = arith.mulf %5, %6 : vector<1x16x16x128xf32>
    %8 = vector.broadcast %3 : vector<1x1x1x128xf32> to vector<1x16x16x128xf32>
    %9 = arith.addf %7, %8 : vector<1x16x16x128xf32>
    %cst = arith.constant 0.000000e+00 : f32
    %10 = vector.broadcast %cst : f32 to vector<1x16x16x128xf32>
    %11 = arith.maximumf %9, %10 : vector<1x16x16x128xf32>
    %12 = vector.extract_strided_slice %11 {offsets = [0, 0, 0, 0], sizes = [1, 16, 16, 8], strides = [1, 1, 1, 1]} : vector<1x16x16x128xf32> to vector<1x16x16x8xf32>
    %c0_7 = arith.constant 0 : index
    %c0_8 = arith.constant 0 : index
    %c0_9 = arith.constant 0 : index
    %c0_10 = arith.constant 0 : index
    %13 = vector.load %arg5[%c0_7, %c0_8, %c0_9, %c0_10] : memref<1x16x16x8xf32, #tpu.memory_space<vmem>>, vector<1x16x16x8xf32>
    tpu.vector_store %arg5[%c0_7, %c0_8, %c0_9, %c0_10], %12 {strides = array<i32>} : memref<1x16x16x8xf32, #tpu.memory_space<vmem>>, vector<1x16x16x8xf32>,
    return
  }
  func.func @transform_0(%arg0: i32, %arg1: i32) -> (i32, i32, i32, i32) {
    %c0_i32 = arith.constant 0 : i32
    %c0_i32_0 = arith.constant 0 : i32
    %c0_i32_1 = arith.constant 0 : i32
    return %arg0, %arg1, %c0_i32, %c0_i32_0 : i32, i32, i32, i32
  }
  func.func @transform_1(%arg0: i32, %arg1: i32) -> (i32, i32) {
    %c0_i32 = arith.constant 0 : i32
    %c0_i32_0 = arith.constant 0 : i32
    %c0_i32_1 = arith.constant 0 : i32
    return %c0_i32, %c0_i32_0 : i32, i32
  }
  func.func @transform_2(%arg0: i32, %arg1: i32) -> (i32, i32) {
    %c0_i32 = arith.constant 0 : i32
    %c0_i32_0 = arith.constant 0 : i32
    %c0_i32_1 = arith.constant 0 : i32
    return %c0_i32, %c0_i32_0 : i32, i32
  }
  func.func @transform_3(%arg0: i32, %arg1: i32) -> (i32, i32, i32, i32) {
    %c0_i32 = arith.constant 0 : i32
    %c0_i32_0 = arith.constant 0 : i32
    %c0_i32_1 = arith.constant 0 : i32
    return %arg0, %arg1, %c0_i32, %c0_i32_0 : i32, i32, i32, i32
  }
}

module attributes {stable_mosaic.version = 11 : i64} {
  func.func @_conv2_kernel(%arg0: i32, %arg1: i32, %arg2: memref<1x18x24x128xbf16, #tpu.memory_space<vmem>>, %arg3: memref<1152x128xbf16, #tpu.memory_space<vmem>>, %arg4: memref<1x128xf32, #tpu.memory_space<vmem>>, %arg5: memref<1x128xf32, #tpu.memory_space<vmem>>, %arg6: memref<1x128xf32, #tpu.memory_space<vmem>>, %arg7: memref<1x16x16x128xbf16, #tpu.memory_space<vmem>>, %arg8: memref<1x2x128xf32, #tpu.memory_space<vmem>>) attributes {dimension_semantics = [#tpu.dimension_semantics<parallel>, #tpu.dimension_semantics<parallel>], iteration_bounds = array<i64: 2, 1>, scalar_prefetch = 0 : i64, scratch_operands = 0 : i64, tpu.core_type = #tpu.core_type<tc>, window_params = [{transform_indices = @transform_0, window_bounds = array<i64: 1, 18, 24, 128>}, {pipeline_mode = #tpu.pipeline_mode<synchronous>, transform_indices = @transform_1, window_bounds = array<i64: 1152, 128>}, {pipeline_mode = #tpu.pipeline_mode<synchronous>, transform_indices = @transform_2, window_bounds = array<i64: 1, 128>}, {pipeline_mode = #tpu.pipeline_mode<synchronous>, transform_indices = @transform_3, window_bounds = array<i64: 1, 128>}, {pipeline_mode = #tpu.pipeline_mode<synchronous>, transform_indices = @transform_4, window_bounds = array<i64: 1, 128>}, {transform_indices = @transform_5, window_bounds = array<i64: 1, 16, 16, 128>}, {transform_indices = @transform_6, window_bounds = array<i64: 1, 2, 128>}]} {
    %c0 = arith.constant 0 : index
    %c0_0 = arith.constant 0 : index
    %0 = vector.load %arg5[%c0, %c0_0] : memref<1x128xf32, #tpu.memory_space<vmem>>, vector<1x128xf32>
    %1 = vector.shape_cast %0 : vector<1x128xf32> to vector<1x1x128xf32>
    %c0_1 = arith.constant 0 : index
    %c0_2 = arith.constant 0 : index
    %2 = vector.load %arg6[%c0_1, %c0_2] : memref<1x128xf32, #tpu.memory_space<vmem>>, vector<1x128xf32>
    %3 = vector.shape_cast %2 : vector<1x128xf32> to vector<1x1x128xf32>
    %c0_3 = arith.constant 0 : index
    %c0_4 = arith.constant 0 : index
    %c0_5 = arith.constant 0 : index
    %c0_6 = arith.constant 0 : index
    %4 = vector.load %arg2[%c0_3, %c0_4, %c0_5, %c0_6] : memref<1x18x24x128xbf16, #tpu.memory_space<vmem>>, vector<1x18x24x128xbf16>
    %5 = vector.shape_cast %4 : vector<1x18x24x128xbf16> to vector<18x24x128xbf16>
    %6 = arith.extf %5 : vector<18x24x128xbf16> to vector<18x24x128xf32>
    %7 = vector.broadcast %1 : vector<1x1x128xf32> to vector<18x24x128xf32>
    %8 = arith.mulf %6, %7 : vector<18x24x128xf32>
    %9 = vector.broadcast %3 : vector<1x1x128xf32> to vector<18x24x128xf32>
    %10 = arith.addf %8, %9 : vector<18x24x128xf32>
    %cst = arith.constant 0.000000e+00 : f32
    %11 = vector.broadcast %cst : f32 to vector<18x24x128xf32>
    %12 = arith.maximumf %10, %11 : vector<18x24x128xf32>
    %13 = tpu.iota {dimensions = array<i32: 0>} : vector<18x24x1xi32>
    %14 = tpu.iota {dimensions = array<i32: 1>} : vector<18x24x1xi32>
    %c16_i32 = arith.constant 16 : i32
    %15 = arith.muli %arg1, %c16_i32 : i32
    %16 = vector.broadcast %15 : i32 to vector<18x24x1xi32>
    %17 = arith.addi %16, %13 : vector<18x24x1xi32>
    %c1_i32 = arith.constant 1 : i32
    %18 = vector.broadcast %c1_i32 : i32 to vector<18x24x1xi32>
    %19 = arith.subi %17, %18 : vector<18x24x1xi32>
    %c0_i32 = arith.constant 0 : i32
    %20 = vector.broadcast %c0_i32 : i32 to vector<18x24x1xi32>
    %21 = arith.cmpi sge, %19, %20 : vector<18x24x1xi32>
    %c16_i32_7 = arith.constant 16 : i32
    %22 = vector.broadcast %c16_i32_7 : i32 to vector<18x24x1xi32>
    %23 = arith.cmpi slt, %19, %22 : vector<18x24x1xi32>
    %24 = arith.andi %21, %23 : vector<18x24x1xi1>
    %c1_i32_8 = arith.constant 1 : i32
    %25 = vector.broadcast %c1_i32_8 : i32 to vector<18x24x1xi32>
    %26 = arith.cmpi sge, %14, %25 : vector<18x24x1xi32>
    %27 = arith.andi %24, %26 : vector<18x24x1xi1>
    %c16_i32_9 = arith.constant 16 : i32
    %28 = vector.broadcast %c16_i32_9 : i32 to vector<18x24x1xi32>
    %29 = arith.cmpi sle, %14, %28 : vector<18x24x1xi32>
    %30 = arith.andi %27, %29 : vector<18x24x1xi1>
    %cst_10 = arith.constant 0.000000e+00 : f32
    %31 = vector.shape_cast %30 : vector<18x24x1xi1> to vector<18x24x1xi1>
    %32 = vector.broadcast %31 : vector<18x24x1xi1> to vector<18x24x128xi1>
    %33 = vector.broadcast %cst_10 : f32 to vector<18x24x128xf32>
    %34 = arith.select %32, %12, %33 : vector<18x24x128xi1>, vector<18x24x128xf32>
    %35 = arith.truncf %34 : vector<18x24x128xf32> to vector<18x24x128xbf16>
    %36 = vector.extract_strided_slice %35 {offsets = [0, 0, 0], sizes = [16, 16, 128], strides = [1, 1, 1]} : vector<18x24x128xbf16> to vector<16x16x128xbf16>
    %37 = vector.extract_strided_slice %35 {offsets = [0, 1, 0], sizes = [16, 16, 128], strides = [1, 1, 1]} : vector<18x24x128xbf16> to vector<16x16x128xbf16>
    %38 = vector.extract_strided_slice %35 {offsets = [0, 2, 0], sizes = [16, 16, 128], strides = [1, 1, 1]} : vector<18x24x128xbf16> to vector<16x16x128xbf16>
    %39 = vector.extract_strided_slice %35 {offsets = [1, 0, 0], sizes = [16, 16, 128], strides = [1, 1, 1]} : vector<18x24x128xbf16> to vector<16x16x128xbf16>
    %40 = vector.extract_strided_slice %35 {offsets = [1, 1, 0], sizes = [16, 16, 128], strides = [1, 1, 1]} : vector<18x24x128xbf16> to vector<16x16x128xbf16>
    %41 = vector.extract_strided_slice %35 {offsets = [1, 2, 0], sizes = [16, 16, 128], strides = [1, 1, 1]} : vector<18x24x128xbf16> to vector<16x16x128xbf16>
    %42 = vector.extract_strided_slice %35 {offsets = [2, 0, 0], sizes = [16, 16, 128], strides = [1, 1, 1]} : vector<18x24x128xbf16> to vector<16x16x128xbf16>
    %43 = vector.extract_strided_slice %35 {offsets = [2, 1, 0], sizes = [16, 16, 128], strides = [1, 1, 1]} : vector<18x24x128xbf16> to vector<16x16x128xbf16>
    %44 = vector.extract_strided_slice %35 {offsets = [2, 2, 0], sizes = [16, 16, 128], strides = [1, 1, 1]} : vector<18x24x128xbf16> to vector<16x16x128xbf16>
    %45 = tpu.concatenate %36, %37, %38, %39, %40, %41, %42, %43, %44 in 2 : vector<16x16x128xbf16>, vector<16x16x128xbf16>, vector<16x16x128xbf16>, vector<16x16x128xbf16>, vector<16x16x128xbf16>, vector<16x16x128xbf16>, vector<16x16x128xbf16>, vector<16x16x128xbf16>, vector<16x16x128xbf16> -> vector<16x16x1152xbf16>
    %46 = vector.shape_cast %45 : vector<16x16x1152xbf16> to vector<256x1152xbf16>
    %c0_11 = arith.constant 0 : index
    %c0_12 = arith.constant 0 : index
    %47 = vector.load %arg3[%c0_11, %c0_12] : memref<1152x128xbf16, #tpu.memory_space<vmem>>, vector<1152x128xbf16>
    %cst_13 = arith.constant dense<0.000000e+00> : vector<256x128xf32>
    %48 = tpu.matmul %46, %47, %cst_13 {dimension_numbers = #tpu.dot_dimension_numbers<[1], [0], [0], [1], [0, 0, 1, 1], [], []>} : vector<256x1152xbf16>, vector<1152x128xbf16>, vector<256x128xf32> -> vector<256x128xf32>
    %c0_14 = arith.constant 0 : index
    %c0_15 = arith.constant 0 : index
    %49 = vector.load %arg4[%c0_14, %c0_15] : memref<1x128xf32, #tpu.memory_space<vmem>>, vector<1x128xf32>
    %50 = vector.broadcast %49 : vector<1x128xf32> to vector<256x128xf32>
    %51 = arith.addf %48, %50 : vector<256x128xf32>
    %52 = vector.shape_cast %51 : vector<256x128xf32> to vector<16x16x128xf32>
    %53 = arith.truncf %52 : vector<16x16x128xf32> to vector<16x16x128xbf16>
    %c0_16 = arith.constant 0 : index
    %c0_17 = arith.constant 0 : index
    %c0_18 = arith.constant 0 : index
    %c0_19 = arith.constant 0 : index
    %54 = vector.load %arg7[%c0_16, %c0_17, %c0_18, %c0_19] : memref<1x16x16x128xbf16, #tpu.memory_space<vmem>>, vector<1x16x16x128xbf16>
    %55 = vector.shape_cast %54 : vector<1x16x16x128xbf16> to vector<16x16x128xbf16>
    %56 = vector.shape_cast %53 : vector<16x16x128xbf16> to vector<1x16x16x128xbf16>
    tpu.vector_store %arg7[%c0_16, %c0_17, %c0_18, %c0_19], %56 {strides = array<i32>} : memref<1x16x16x128xbf16, #tpu.memory_space<vmem>>, vector<1x16x16x128xbf16>,
    %cst_20 = arith.constant dense<0.000000e+00> : vector<128xf32>
    %57 = vector.multi_reduction <add>, %51, %cst_20 [0] : vector<256x128xf32> to vector<128xf32>
    %58 = vector.shape_cast %57 : vector<128xf32> to vector<1x128xf32>
    %59 = arith.mulf %51, %51 : vector<256x128xf32>
    %cst_21 = arith.constant dense<0.000000e+00> : vector<128xf32>
    %60 = vector.multi_reduction <add>, %59, %cst_21 [0] : vector<256x128xf32> to vector<128xf32>
    %61 = vector.shape_cast %60 : vector<128xf32> to vector<1x128xf32>
    %62 = tpu.concatenate %58, %61 in 0 : vector<1x128xf32>, vector<1x128xf32> -> vector<2x128xf32>
    %c0_22 = arith.constant 0 : index
    %c0_23 = arith.constant 0 : index
    %c0_24 = arith.constant 0 : index
    %63 = vector.load %arg8[%c0_22, %c0_23, %c0_24] : memref<1x2x128xf32, #tpu.memory_space<vmem>>, vector<1x2x128xf32>
    %64 = vector.shape_cast %63 : vector<1x2x128xf32> to vector<2x128xf32>
    %65 = vector.shape_cast %62 : vector<2x128xf32> to vector<1x2x128xf32>
    tpu.vector_store %arg8[%c0_22, %c0_23, %c0_24], %65 {strides = array<i32>} : memref<1x2x128xf32, #tpu.memory_space<vmem>>, vector<1x2x128xf32>,
    return
  }
  func.func @transform_0(%arg0: i32, %arg1: i32) -> (i32, i32, i32, i32) {
    %c1_i32 = arith.constant 1 : i32
    %0 = arith.muli %arg0, %c1_i32 : i32
    %1 = arith.addi %0, %arg1 : i32
    %c0_i32 = arith.constant 0 : i32
    %c0_i32_0 = arith.constant 0 : i32
    %c0_i32_1 = arith.constant 0 : i32
    %c0_i32_2 = arith.constant 0 : i32
    return %1, %c0_i32, %c0_i32_0, %c0_i32_1 : i32, i32, i32, i32
  }
  func.func @transform_1(%arg0: i32, %arg1: i32) -> (i32, i32) {
    %c0_i32 = arith.constant 0 : i32
    %c0_i32_0 = arith.constant 0 : i32
    %c0_i32_1 = arith.constant 0 : i32
    return %c0_i32, %c0_i32_0 : i32, i32
  }
  func.func @transform_2(%arg0: i32, %arg1: i32) -> (i32, i32) {
    %c0_i32 = arith.constant 0 : i32
    %c0_i32_0 = arith.constant 0 : i32
    %c0_i32_1 = arith.constant 0 : i32
    return %c0_i32, %c0_i32_0 : i32, i32
  }
  func.func @transform_3(%arg0: i32, %arg1: i32) -> (i32, i32) {
    %c0_i32 = arith.constant 0 : i32
    %c0_i32_0 = arith.constant 0 : i32
    %c0_i32_1 = arith.constant 0 : i32
    return %c0_i32, %c0_i32_0 : i32, i32
  }
  func.func @transform_4(%arg0: i32, %arg1: i32) -> (i32, i32) {
    %c0_i32 = arith.constant 0 : i32
    %c0_i32_0 = arith.constant 0 : i32
    %c0_i32_1 = arith.constant 0 : i32
    return %c0_i32, %c0_i32_0 : i32, i32
  }
  func.func @transform_5(%arg0: i32, %arg1: i32) -> (i32, i32, i32, i32) {
    %c0_i32 = arith.constant 0 : i32
    %c0_i32_0 = arith.constant 0 : i32
    %c0_i32_1 = arith.constant 0 : i32
    return %arg0, %arg1, %c0_i32, %c0_i32_0 : i32, i32, i32, i32
  }
  func.func @transform_6(%arg0: i32, %arg1: i32) -> (i32, i32, i32) {
    %c1_i32 = arith.constant 1 : i32
    %0 = arith.muli %arg0, %c1_i32 : i32
    %1 = arith.addi %0, %arg1 : i32
    %c0_i32 = arith.constant 0 : i32
    %c0_i32_0 = arith.constant 0 : i32
    %c0_i32_1 = arith.constant 0 : i32
    return %1, %c0_i32, %c0_i32_0 : i32, i32, i32
  }
}

</mosaic_0001>

<bundles_post_ra>
// kernel: double_conv_forward.5
= control target key start
LH: loop header
LB: loop body
LE: loop exit
PB: predicated region body
PF: predicated region fallthrough
CT: control target
= control target key end

     0   :  { %s674_s12 = smov 0   ;;  %s676_s13 = smov 0   ;;  %s869_s0 = inlined_call_operand.vmem [shape: bf16[2,16,16,128], index: 0, kind: input, shape index: {}]   ;;  %s870_s1 = inlined_call_operand.vmem [shape: f32[1,128], index: 1, kind: input, shape index: {}]   ;;  %s871_s2 = inlined_call_operand.vmem [shape: f32[1,128], index: 2, kind: input, shape index: {}]   ;;  %s872_s3 = inlined_call_operand.vmem [shape: f32[2,16,16,8], index: 3, kind: output, shape index: {}]  }
   0x1   :  { %s678_s14 = smov 0  }
   0x2 LB: > { %s25_s15 = sadd.s32 1, %s648_s13  ;;  %p516_p0 = scmp.ge.s32.totalorder %s652_s14, 1  ;;  %s652_s14 = sphi %s678_s14, %s13_s14   ;;  %s648_s13 = sphi %s676_s13, %s874_s13   ;;  %s644_s12 = sphi %s674_s12, %s873_s12  }
   0x3   : > { %p27_p1 = scmp.ge.s32.totalorder %s25_s15, 2  ;;  %p159_p2 = scmp.lt.s32.totalorder %s652_s14, 3 }
   0x5   : > { %s876_s15 = smov (%p27_p1, %s25_s15), 0  ;;  %p160_p3 = pnand %p516_p0, %p159_p2 }
   0x6   : > { %p194_p4 = scmp.lt.s32.totalorder (!%p160_p3), %s644_s12, 1 }
   0x7   : > { %163 = sbr.rel (%p160_p3) target bundleno = 56 (0x38), region = 32 }
   0xc   : > { %s878_s12 = smov (!%p194_p4, %s644_s12), 1  ;;  %v703_v0 = vld [vmem:[%s870_s1] ss:$0 sm:$0xff]  ;;  %vm383_vm0 = vcmask 64512  }
   0xd   : > { %s523_s16 = sshll.u32 %s878_s12, 7  ;;  %v711_v5 = vld [vmem:[%s871_s2] ss:$0 sm:$0xff]  ;;  %s524_s24 = sshll.u32 %s878_s12, 8 }
   0xe   : > { %s698_s19 = scalar_lea.vmem %s869_s0, %s523_s16  ;;  %s730_s27 = scalar_lea.vmem %s872_s3, %s524_s24 }
   0xf   : > { %v526_v1 = vld [vmem:[%s698_s19] sm:$0xff]   ;;  %v589_v2 = vld [vmem:[%s698_s19 + $0x8] sm:$0xff]   ;;  %v590_v3 = vld [vmem:[%s698_s19 + $0x10] sm:$0xff]  }
  0x10   : > { %v527_v4 = vunpack.c.l.bf16 %v526_v1  ;;  %v528_v6 = vunpack.c.h.bf16 %v526_v1  ;;  %v531_v7 = vunpack.c.l.bf16 %v589_v2  ;;  %v532_v8 = vunpack.c.h.bf16 %v589_v2  ;;  %v591_v9 = vld [vmem:[%s698_s19 + $0x18] sm:$0xff]   ;;  %v592_v30 = vld [vmem:[%s698_s19 + $0x20] sm:$0xff]   ;;  %v593_v31 = vld [vmem:[%s698_s19 + $0x28] sm:$0xff]  }
  0x11   : > { %v535_v10 = vunpack.c.l.bf16 %v590_v3  ;;  %v536_v11 = vunpack.c.h.bf16 %v590_v3  ;;  %v539_v12 = vunpack.c.l.bf16 %v591_v9  ;;  %v540_v13 = vunpack.c.h.bf16 %v591_v9  ;;  %v594_v36 = vld [vmem:[%s698_s19 + $0x30] sm:$0xff]   ;;  %v595_v37 = vld [vmem:[%s698_s19 + $0x38] sm:$0xff]   ;;  %v596_v3 = vld [vmem:[%s698_s19 + $0x40] sm:$0xff]  }
  0x12   : > { %v284_v14 = vmul.f32 %v703_v0, %v527_v4  ;;  %v285_v15 = vmul.f32 %v703_v0, %v528_v6  ;;  %v286_v16 = vmul.f32 %v703_v0, %v531_v7  ;;  %v287_v17 = vmul.f32 %v703_v0, %v532_v8  ;;  %v597_v4 = vld [vmem:[%s698_s19 + $0x48] sm:$0xff]   ;;  %v598_v6 = vld [vmem:[%s698_s19 + $0x50] sm:$0xff]  }
  0x13   : > { %v288_v18 = vmul.f32 %v703_v0, %v535_v10  ;;  %v289_v19 = vmul.f32 %v703_v0, %v536_v11  ;;  %v290_v20 = vmul.f32 %v703_v0, %v539_v12  ;;  %v291_v21 = vmul.f32 %v703_v0, %v540_v13  ;;  %v599_v11 = vld [vmem:[%s698_s19 + $0x58] sm:$0xff]  }
  0x14   : > { %v319_v22 = vadd.f32 %v711_v5, %v284_v14  ;;  %v320_v23 = vadd.f32 %v711_v5, %v285_v15  ;;  %v321_v24 = vadd.f32 %v711_v5, %v286_v16  ;;  %v322_v25 = vadd.f32 %v711_v5, %v287_v17 }
  0x15   : > { %v323_v26 = vadd.f32 %v711_v5, %v288_v18  ;;  %v324_v27 = vadd.f32 %v711_v5, %v289_v19  ;;  %v325_v28 = vadd.f32 %v711_v5, %v290_v20  ;;  %v326_v29 = vadd.f32 %v711_v5, %v291_v21 }
  0x16   : > { %v351_v32 = vmax.f32 %v319_v22, 0.0  ;;  %v352_v33 = vmax.f32 %v320_v23, 0.0  ;;  %v353_v34 = vmax.f32 %v321_v24, 0.0  ;;  %v354_v35 = vmax.f32 %v322_v25, 0.0 }
  0x17   : > { %v355_v38 = vmax.f32 %v323_v26, 0.0  ;;  %v356_v39 = vmax.f32 %v324_v27, 0.0  ;;  %v357_v40 = vmax.f32 %v325_v28, 0.0  ;;  %v358_v41 = vmax.f32 %v326_v29, 0.0 }
  0x18   : > { %384 = vst.msk [vmem:[%s730_s27] sm:$0xff] %vm383_vm0, %v351_v32  ;;  %v543_v42 = vunpack.c.l.bf16 %v592_v30  ;;  %v544_v43 = vunpack.c.h.bf16 %v592_v30  ;;  %v547_v44 = vunpack.c.l.bf16 %v593_v31  ;;  %v548_v45 = vunpack.c.h.bf16 %v593_v31 }
  0x19   : > { %385 = vst.msk [vmem:[%s730_s27 + $0x8] sm:$0xff] %vm383_vm0, %v352_v33  ;;  %v551_v46 = vunpack.c.l.bf16 %v594_v36  ;;  %v552_v47 = vunpack.c.h.bf16 %v594_v36  ;;  %v555_v48 = vunpack.c.l.bf16 %v595_v37  ;;  %v556_v49 = vunpack.c.h.bf16 %v595_v37 }
  0x1a   : > { %386 = vst.msk [vmem:[%s730_s27 + $0x10] sm:$0xff] %vm383_vm0, %v353_v34  ;;  %v292_v50 = vmul.f32 %v703_v0, %v543_v42  ;;  %v293_v51 = vmul.f32 %v703_v0, %v544_v43  ;;  %v294_v52 = vmul.f32 %v703_v0, %v547_v44  ;;  %v295_v53 = vmul.f32 %v703_v0, %v548_v45  ;;  %v602_v42 = vld [vmem:[%s698_s19 + $0x70] sm:$0xff]  }
  0x1b   : > { %387 = vst.msk [vmem:[%s730_s27 + $0x18] sm:$0xff] %vm383_vm0, %v354_v35  ;;  %v296_v54 = vmul.f32 %v703_v0, %v551_v46  ;;  %v297_v55 = vmul.f32 %v703_v0, %v552_v47  ;;  %v298_v56 = vmul.f32 %v703_v0, %v555_v48  ;;  %v299_v57 = vmul.f32 %v703_v0, %v556_v49  ;;  %v603_v47 = vld [vmem:[%s698_s19 + $0x78] sm:$0xff]  }
  0x1c   : > { %388 = vst.msk [vmem:[%s730_s27 + $0x20] sm:$0xff] %vm383_vm0, %v355_v38  ;;  %v327_v58 = vadd.f32 %v711_v5, %v292_v50  ;;  %v328_v59 = vadd.f32 %v711_v5, %v293_v51  ;;  %v329_v60 = vadd.f32 %v711_v5, %v294_v52  ;;  %v330_v61 = vadd.f32 %v711_v5, %v295_v53 }
  0x1d   : > { %389 = vst.msk [vmem:[%s730_s27 + $0x28] sm:$0xff] %vm383_vm0, %v356_v39  ;;  %v331_v62 = vadd.f32 %v711_v5, %v296_v54  ;;  %v332_v63 = vadd.f32 %v711_v5, %v297_v55  ;;  %v333_v1 = vadd.f32 %v711_v5, %v298_v56  ;;  %v334_v2 = vadd.f32 %v711_v5, %v299_v57 }
  0x1e   : > { %390 = vst.msk [vmem:[%s730_s27 + $0x30] sm:$0xff] %vm383_vm0, %v357_v40  ;;  %v359_v7 = vmax.f32 %v327_v58, 0.0  ;;  %v360_v8 = vmax.f32 %v328_v59, 0.0  ;;  %v361_v9 = vmax.f32 %v329_v60, 0.0  ;;  %v362_v10 = vmax.f32 %v330_v61, 0.0  ;;  %v600_v40 = vld [vmem:[%s698_s19 + $0x60] sm:$0xff]  }
  0x1f   : > { %391 = vst.msk [vmem:[%s730_s27 + $0x38] sm:$0xff] %vm383_vm0, %v358_v41  ;;  %v363_v12 = vmax.f32 %v331_v62, 0.0  ;;  %v364_v13 = vmax.f32 %v332_v63, 0.0  ;;  %v365_v14 = vmax.f32 %v333_v1, 0.0  ;;  %v366_v15 = vmax.f32 %v334_v2, 0.0  ;;  %v601_v41 = vld [vmem:[%s698_s19 + $0x68] sm:$0xff]  }
  0x20   : > { %392 = vst.msk [vmem:[%s730_s27 + $0x40] sm:$0xff] %vm383_vm0, %v359_v7  ;;  %v559_v16 = vunpack.c.l.bf16 %v596_v3  ;;  %v560_v17 = vunpack.c.h.bf16 %v596_v3  ;;  %v563_v18 = vunpack.c.l.bf16 %v597_v4  ;;  %v564_v19 = vunpack.c.h.bf16 %v597_v4 }
  0x21   : > { %393 = vst.msk [vmem:[%s730_s27 + $0x48] sm:$0xff] %vm383_vm0, %v360_v8  ;;  %v567_v20 = vunpack.c.l.bf16 %v598_v6  ;;  %v568_v21 = vunpack.c.h.bf16 %v598_v6  ;;  %v571_v22 = vunpack.c.l.bf16 %v599_v11  ;;  %v572_v23 = vunpack.c.h.bf16 %v599_v11 }
  0x22   : > { %394 = vst.msk [vmem:[%s730_s27 + $0x50] sm:$0xff] %vm383_vm0, %v361_v9  ;;  %v300_v24 = vmul.f32 %v703_v0, %v559_v16  ;;  %v301_v25 = vmul.f32 %v703_v0, %v560_v17  ;;  %v302_v26 = vmul.f32 %v703_v0, %v563_v18  ;;  %v303_v27 = vmul.f32 %v703_v0, %v564_v19 }
  0x23   : > { %395 = vst.msk [vmem:[%s730_s27 + $0x58] sm:$0xff] %vm383_vm0, %v362_v10  ;;  %v304_v28 = vmul.f32 %v703_v0, %v567_v20  ;;  %v305_v29 = vmul.f32 %v703_v0, %v568_v21  ;;  %v306_v30 = vmul.f32 %v703_v0, %v571_v22  ;;  %v307_v31 = vmul.f32 %v703_v0, %v572_v23 }
  0x24   : > { %396 = vst.msk [vmem:[%s730_s27 + $0x60] sm:$0xff] %vm383_vm0, %v363_v12  ;;  %v335_v32 = vadd.f32 %v711_v5, %v300_v24  ;;  %v336_v33 = vadd.f32 %v711_v5, %v301_v25  ;;  %v337_v34 = vadd.f32 %v711_v5, %v302_v26  ;;  %v338_v35 = vadd.f32 %v711_v5, %v303_v27 }
  0x25   : > { %397 = vst.msk [vmem:[%s730_s27 + $0x68] sm:$0xff] %vm383_vm0, %v364_v13  ;;  %v339_v36 = vadd.f32 %v711_v5, %v304_v28  ;;  %v340_v37 = vadd.f32 %v711_v5, %v305_v29  ;;  %v341_v38 = vadd.f32 %v711_v5, %v306_v30  ;;  %v342_v39 = vadd.f32 %v711_v5, %v307_v31 }
  0x26   : > { %398 = vst.msk [vmem:[%s730_s27 + $0x70] sm:$0xff] %vm383_vm0, %v365_v14  ;;  %v367_v43 = vmax.f32 %v335_v32, 0.0  ;;  %v368_v44 = vmax.f32 %v336_v33, 0.0  ;;  %v369_v45 = vmax.f32 %v337_v34, 0.0  ;;  %v370_v46 = vmax.f32 %v338_v35, 0.0 }
  0x27   : > { %399 = vst.msk [vmem:[%s730_s27 + $0x78] sm:$0xff] %vm383_vm0, %v366_v15  ;;  %v371_v48 = vmax.f32 %v339_v36, 0.0  ;;  %v372_v49 = vmax.f32 %v340_v37, 0.0  ;;  %v373_v50 = vmax.f32 %v341_v38, 0.0  ;;  %v374_v51 = vmax.f32 %v342_v39, 0.0 }
  0x28   : > { %400 = vst.msk [vmem:[%s730_s27 + $0x80] sm:$0xff] %vm383_vm0, %v367_v43  ;;  %v575_v52 = vunpack.c.l.bf16 %v600_v40  ;;  %v576_v53 = vunpack.c.h.bf16 %v600_v40  ;;  %v579_v54 = vunpack.c.l.bf16 %v601_v41  ;;  %v580_v55 = vunpack.c.h.bf16 %v601_v41 }
  0x29   : > { %401 = vst.msk [vmem:[%s730_s27 + $0x88] sm:$0xff] %vm383_vm0, %v368_v44  ;;  %v583_v56 = vunpack.c.l.bf16 %v602_v42  ;;  %v584_v57 = vunpack.c.h.bf16 %v602_v42  ;;  %v587_v58 = vunpack.c.l.bf16 %v603_v47  ;;  %v588_v59 = vunpack.c.h.bf16 %v603_v47 }
  0x2a   : > { %402 = vst.msk [vmem:[%s730_s27 + $0x90] sm:$0xff] %vm383_vm0, %v369_v45  ;;  %v308_v60 = vmul.f32 %v703_v0, %v575_v52  ;;  %v309_v61 = vmul.f32 %v703_v0, %v576_v53  ;;  %v310_v62 = vmul.f32 %v703_v0, %v579_v54  ;;  %v311_v63 = vmul.f32 %v703_v0, %v580_v55 }
  0x2b   : > { %403 = vst.msk [vmem:[%s730_s27 + $0x98] sm:$0xff] %vm383_vm0, %v370_v46  ;;  %v312_v1 = vmul.f32 %v703_v0, %v583_v56  ;;  %v313_v2 = vmul.f32 %v703_v0, %v584_v57  ;;  %v314_v3 = vmul.f32 %v703_v0, %v587_v58  ;;  %v315_v4 = vmul.f32 %v703_v0, %v588_v59 }
  0x2c   : > { %404 = vst.msk [vmem:[%s730_s27 + $0xa0] sm:$0xff] %vm383_vm0, %v371_v48  ;;  %v343_v6 = vadd.f32 %v711_v5, %v308_v60  ;;  %v344_v7 = vadd.f32 %v711_v5, %v309_v61  ;;  %v345_v8 = vadd.f32 %v711_v5, %v310_v62  ;;  %v346_v9 = vadd.f32 %v711_v5, %v311_v63 }
  0x2d   : > { %405 = vst.msk [vmem:[%s730_s27 + $0xa8] sm:$0xff] %vm383_vm0, %v372_v49  ;;  %v347_v10 = vadd.f32 %v711_v5, %v312_v1  ;;  %v348_v0 = vadd.f32 %v711_v5, %v313_v2  ;;  %v349_v14 = vadd.f32 %v711_v5, %v314_v3  ;;  %v350_v16 = vadd.f32 %v711_v5, %v315_v4 }
  0x2e   : > { %406 = vst.msk [vmem:[%s730_s27 + $0xb0] sm:$0xff] %vm383_vm0, %v373_v50  ;;  %v375_v11 = vmax.f32 %v343_v6, 0.0  ;;  %v376_v12 = vmax.f32 %v344_v7, 0.0  ;;  %v377_v13 = vmax.f32 %v345_v8, 0.0  ;;  %v378_v15 = vmax.f32 %v346_v9, 0.0 }
  0x2f   : > { %407 = vst.msk [vmem:[%s730_s27 + $0xb8] sm:$0xff] %vm383_vm0, %v374_v51  ;;  %v379_v17 = vmax.f32 %v347_v10, 0.0  ;;  %v380_v18 = vmax.f32 %v348_v0, 0.0  ;;  %v381_v19 = vmax.f32 %v349_v14, 0.0  ;;  %v382_v20 = vmax.f32 %v350_v16, 0.0 }
  0x30   : > { %408 = vst.msk [vmem:[%s730_s27 + $0xc0] sm:$0xff] %vm383_vm0, %v375_v11 }
  0x31   : > { %409 = vst.msk [vmem:[%s730_s27 + $0xc8] sm:$0xff] %vm383_vm0, %v376_v12 }
  0x32   : > { %410 = vst.msk [vmem:[%s730_s27 + $0xd0] sm:$0xff] %vm383_vm0, %v377_v13 }
  0x33   : > { %411 = vst.msk [vmem:[%s730_s27 + $0xd8] sm:$0xff] %vm383_vm0, %v378_v15 }
  0x34   : > { %412 = vst.msk [vmem:[%s730_s27 + $0xe0] sm:$0xff] %vm383_vm0, %v379_v17 }
  0x35   : > { %413 = vst.msk [vmem:[%s730_s27 + $0xe8] sm:$0xff] %vm383_vm0, %v380_v18 }
  0x36   : > { %414 = vst.msk [vmem:[%s730_s27 + $0xf0] sm:$0xff] %vm383_vm0, %v381_v19 }
  0x37   : > { %415 = vst.msk [vmem:[%s730_s27 + $0xf8] sm:$0xff] %vm383_vm0, %v382_v20 }
  0x38 PF: > { %s13_s14 = sadd.s32 1, %s652_s14   ;;  %s873_s12 = smov %s648_s13 }
  0x39   : > { %p10_p5 = scmp.ge.s32.totalorder %s13_s14, 4   ;;  %s874_s13 = smov %s876_s15 }
  0x3b   :  { %12 = sbr.rel (!%p10_p5) target bundleno = 2 (0x2), region = 62 }

// kernel: double_conv_forward.3
= control target key start
LH: loop header
LB: loop body
LE: loop exit
PB: predicated region body
PF: predicated region fallthrough
CT: control target
= control target key end

     0   :  { %s1583_s15 = smov 0   ;;  %s1585_s16 = smov 0   ;;  %s2025_s0 = inlined_call_operand.vmem [shape: bf16[2,18,24,128], index: 0, kind: input, shape index: {}]   ;;  %s2026_s1 = inlined_call_operand.vmem [shape: bf16[128,128], index: 1, kind: input, shape index: {}]   ;;  %s2027_s2 = inlined_call_operand.vmem [shape: f32[1,128], index: 2, kind: input, shape index: {}]   ;;  %s2028_s3 = inlined_call_operand.vmem [shape: bf16[2,18,24,128], index: 3, kind: output, shape index: {0}]   ;;  %s2029_s4 = inlined_call_operand.vmem [shape: f32[2,2,128], index: 4, kind: output, shape index: {1}]  }
   0x1   :  { %s1587_s17 = smov 0  }
   0x2 LB: > { %s27_s18 = sadd.s32 1, %s1552_s16  ;;  %p1142_p0 = scmp.ge.s32.totalorder %s1556_s17, 1  ;;  %s1556_s17 = sphi %s1587_s17, %s15_s17   ;;  %s1552_s16 = sphi %s1585_s16, %s2031_s16   ;;  %s1548_s15 = sphi %s1583_s15, %s2030_s15  }
   0x3   : > { %p29_p1 = scmp.ge.s32.totalorder %s27_s18, 2  ;;  %p185_p2 = scmp.lt.s32.totalorder %s1556_s17, 3 }
   0x5   : > { %s2033_s18 = smov (%p29_p1, %s27_s18), 0  ;;  %p186_p3 = pnand %p1142_p0, %p185_p2 }
   0x6   : > { %p219_p4 = scmp.lt.s32.totalorder (!%p186_p3), %s1548_s15, 1 }
   0x7   : > { %189 = sbr.rel (%p186_p3) target bundleno = 357 (0x165), region = 32 }
   0xc   : > { %v1322_v0 = vld [vmem:[%s2026_s1 + $0x38] sm:$0xff]  ;;  %v1321_v1 = vld [vmem:[%s2026_s1 + $0x30] sm:$0xff]  ;;  %v1320_v2 = vld [vmem:[%s2026_s1 + $0x28] sm:$0xff]  ;;  %s2035_s15 = smov (!%p219_p4, %s1548_s15), 1  ;;  %vm1034_vm2 = vcmask 1040384  }
   0xd   : > { %522 = vmatpush.bf16.msra.mxu0 %v1322_v0  ;;  %1484 = vmatpush.bf16.msra.mxu1 %v1322_v0  ;;  %v1319_v3 = vld [vmem:[%s2026_s1 + $0x20] sm:$0xff]  ;;  %v1318_v4 = vld [vmem:[%s2026_s1 + $0x18] sm:$0xff]  ;;  %v1317_v5 = vld [vmem:[%s2026_s1 + $0x10] sm:$0xff]  ;;  %s1508_s7 = smul.u32 216, %s2035_s15  ;;  %s1145_s22 = sshll.u32 %s2035_s15, 1 }
   0xe   : > { %1485 = vmatpush.bf16.msra.mxu2 %v1322_v0  ;;  %1486 = vmatpush.bf16.msra.mxu3 %v1322_v0  ;;  %v1316_v6 = vld [vmem:[%s2026_s1 + $0x8] sm:$0xff]  ;;  %v1315_v7 = vld [vmem:[%s2026_s1] sm:$0xff]  ;;  %s236_s25 = scalar_lea.vmem %s2029_s4, %s1145_s22 }
   0xf   : > { %s1637_s12 = scalar_lea.vmem %s2025_s0, %s1508_s7  ;;  %v1669_v37 = vld [vmem:[%s2027_s2] ss:$0 sm:$0xff]  ;;  %s1684_s21 = scalar_lea.vmem %s2028_s3, %s1508_s7 }
  0x10   : > { %v1288_v8 = vld [vmem:[%s1637_s12] sm:$0xff]  ;;  %v1294_v9 = vld [vmem:[%s1637_s12 + $0x30] sm:$0xff]  ;;  %v1301_v10 = vld [vmem:[%s1637_s12 + $0x68] sm:$0xff] }
  0x11   : > { %523 = vmatpush.bf16.msra.mxu0 %v1321_v1  ;;  %1487 = vmatpush.bf16.msra.mxu1 %v1321_v1  ;;  %v1289_v11 = vld [vmem:[%s1637_s12 + $0x8] sm:$0xff]  ;;  %v1295_v12 = vld [vmem:[%s1637_s12 + $0x38] sm:$0xff]  ;;  %v1302_v13 = vld [vmem:[%s1637_s12 + $0x70] sm:$0xff] }
  0x12   : > { %1488 = vmatpush.bf16.msra.mxu2 %v1321_v1  ;;  %1489 = vmatpush.bf16.msra.mxu3 %v1321_v1  ;;  %v1290_v14 = vld [vmem:[%s1637_s12 + $0x10] sm:$0xff]  ;;  %v1296_v15 = vld [vmem:[%s1637_s12 + $0x40] sm:$0xff]  ;;  %v1303_v16 = vld [vmem:[%s1637_s12 + $0x78] sm:$0xff] }
  0x13   : > { %v1308_v17 = vld [vmem:[%s1637_s12 + $0xa0] sm:$0xff]  ;;  %v1291_v18 = vld [vmem:[%s1637_s12 + $0x18] sm:$0xff]  ;;  %v1297_v19 = vld [vmem:[%s1637_s12 + $0x48] sm:$0xff] }
  0x14   : > { %v1304_v20 = vld [vmem:[%s1637_s12 + $0x80] sm:$0xff]  ;;  %v1309_v21 = vld [vmem:[%s1637_s12 + $0xa8] sm:$0xff]  ;;  %v1298_v23 = vld [vmem:[%s1637_s12 + $0x50] sm:$0xff] }
  0x15   : > { %524 = vmatpush.bf16.msra.mxu0 %v1320_v2  ;;  %1490 = vmatpush.bf16.msra.mxu1 %v1320_v2  ;;  %v1292_v22 = vld [vmem:[%s1637_s12 + $0x20] sm:$0xff]  ;;  %v1305_v24 = vld [vmem:[%s1637_s12 + $0x88] sm:$0xff]  ;;  %v1310_v25 = vld [vmem:[%s1637_s12 + $0xb0] sm:$0xff] }
  0x16   : > { %1491 = vmatpush.bf16.msra.mxu2 %v1320_v2  ;;  %1492 = vmatpush.bf16.msra.mxu3 %v1320_v2  ;;  %v1293_v26 = vld [vmem:[%s1637_s12 + $0x28] sm:$0xff]  ;;  %v1299_v27 = vld [vmem:[%s1637_s12 + $0x58] sm:$0xff]  ;;  %v1306_v28 = vld [vmem:[%s1637_s12 + $0x90] sm:$0xff] }
  0x17   : > { %v1311_v29 = vld [vmem:[%s1637_s12 + $0xb8] sm:$0xff]  ;;  %v1300_v30 = vld [vmem:[%s1637_s12 + $0x60] sm:$0xff]  ;;  %v1313_v33 = vld [vmem:[%s1637_s12 + $0xc8] sm:$0xff] }
  0x18   : > { %v1307_v31 = vld [vmem:[%s1637_s12 + $0x98] sm:$0xff]  ;;  %v1312_v32 = vld [vmem:[%s1637_s12 + $0xc0] sm:$0xff]  ;;  %v1314_v36 = vld [vmem:[%s1637_s12 + $0xd0] sm:$0xff] }
  0x19   : > { %525 = vmatpush.bf16.msra.mxu0 %v1319_v3  ;;  %1493 = vmatpush.bf16.msra.mxu1 %v1319_v3 }
  0x1a   : > { %1494 = vmatpush.bf16.msra.mxu2 %v1319_v3  ;;  %1495 = vmatpush.bf16.msra.mxu3 %v1319_v3 }
  0x1d   : > { %526 = vmatpush.bf16.msra.mxu0 %v1318_v4  ;;  %1496 = vmatpush.bf16.msra.mxu1 %v1318_v4 }
  0x1e   : > { %1497 = vmatpush.bf16.msra.mxu2 %v1318_v4  ;;  %1498 = vmatpush.bf16.msra.mxu3 %v1318_v4 }
  0x21   : > { %527 = vmatpush.bf16.msra.mxu0 %v1317_v5  ;;  %1499 = vmatpush.bf16.msra.mxu1 %v1317_v5 }
  0x22   : > { %1500 = vmatpush.bf16.msra.mxu2 %v1317_v5  ;;  %1501 = vmatpush.bf16.msra.mxu3 %v1317_v5 }
  0x25   : > { %528 = vmatpush.bf16.msra.mxu0 %v1316_v6  ;;  %1502 = vmatpush.bf16.msra.mxu1 %v1316_v6 }
  0x26   : > { %1503 = vmatpush.bf16.msra.mxu2 %v1316_v6  ;;  %1504 = vmatpush.bf16.msra.mxu3 %v1316_v6 }
  0x29   : > { %529 = vmatpush.bf16.msra.mxu0 %v1315_v7  ;;  %1505 = vmatpush.bf16.msra.mxu1 %v1315_v7 }
  0x2a   : > { %1506 = vmatpush.bf16.msra.mxu2 %v1315_v7  ;;  %1507 = vmatpush.bf16.msra.mxu3 %v1315_v7 }
  0x2c   : > { %530 = vmatmul.bf16.vlgmr.msra.gmra.mxu0 %v1288_v8  ;;  %560 = vmatmul.bf16.vlgmr.msra.gmra.mxu1 %v1294_v9 }
  0x2d   : > { %595 = vmatmul.bf16.vlgmr.msra.gmra.mxu2 %v1301_v10  ;;  %630 = vmatmul.bf16.vlgmr.msra.gmra.mxu3 %v1308_v17 }
  0x3c   : > { %535 = vmatmul.bf16.gmra.mxu0 %v1289_v11  ;;  %565 = vmatmul.bf16.gmra.mxu1 %v1295_v12 }
  0x3d   : > { %600 = vmatmul.bf16.gmra.mxu2 %v1302_v13  ;;  %635 = vmatmul.bf16.gmra.mxu3 %v1309_v21 }
  0x4c   : > { %540 = vmatmul.bf16.gmra.mxu0 %v1290_v14  ;;  %570 = vmatmul.bf16.gmra.mxu1 %v1296_v15 }
  0x4d   : > { %605 = vmatmul.bf16.gmra.mxu2 %v1303_v16  ;;  %640 = vmatmul.bf16.gmra.mxu3 %v1310_v25 }
  0x5c   : > { %545 = vmatmul.bf16.gmra.mxu0 %v1291_v18  ;;  %575 = vmatmul.bf16.gmra.mxu1 %v1297_v19 }
  0x5d   : > { %610 = vmatmul.bf16.gmra.mxu2 %v1304_v20  ;;  %645 = vmatmul.bf16.gmra.mxu3 %v1311_v29 }
  0x6c   : > { %550 = vmatmul.bf16.gmra.mxu0 %v1292_v22  ;;  %580 = vmatmul.bf16.gmra.mxu1 %v1298_v23 }
  0x6d   : > { %615 = vmatmul.bf16.gmra.mxu2 %v1305_v24  ;;  %650 = vmatmul.bf16.gmra.mxu3 %v1312_v32 }
  0x7c   : > { %555 = vmatmul.bf16.gmra.mxu0 %v1293_v26  ;;  %585 = vmatmul.bf16.gmra.mxu1 %v1299_v27 }
  0x7d   : > { %620 = vmatmul.bf16.gmra.mxu2 %v1306_v28  ;;  %655 = vmatmul.bf16.gmra.mxu3 %v1313_v33 }
  0x8c   : > { %590 = vmatmul.bf16.gmra.mxu1 %v1300_v30 }
  0x8d   : > { %625 = vmatmul.bf16.gmra.mxu2 %v1307_v31  ;;  %660 = vmatmul.bf16.gmra.mxu3 %v1314_v36  ;;  %v774_v36 = vlaneseq }
  0xa9   : > { %v531_v34 = vpop.f32.mrf.mxu0  ;;  %v561_v35 = vpop.f32.mrf.mxu1 }
  0xaa   : > { %v1672_v38 = vadd.f32 %v1669_v37, %v561_v35  ;;  %v532_v42 = vadd.f32 %v1669_v37, %v531_v34 }
  0xb0   : > { %v596_v39 = vpop.f32.mrf.mxu2  ;;  %v631_v6 = vpop.f32.mrf.mxu3 }
  0xb1   : > { %v533_v40 = vpop.f32.mrf.mxu0  ;;  %v563_v41 = vpop.f32.mrf.mxu1  ;;  %v1691_v47 = vadd.f32 %v1669_v37, %v596_v39  ;;  %v1742_v15 = vadd.f32 %v1669_v37, %v631_v6 }
  0xb2   : > { %v534_v43 = vadd.f32 %v1669_v37, %v533_v40  ;;  %v1677_v44 = vadd.f32 %v1669_v37, %v563_v41 }
  0xb4   : > { %v1326_v45 = vpack.c.bf16 %v534_v43, %v532_v42  ;;  %v1356_v46 = vpack.c.bf16 %v1677_v44, %v1672_v38 }
  0xb6   : > { %1327 = vst [vmem:[%s1684_s21] sm:$0xff] %v1326_v45  }
  0xb7   : > { %1463 = vst [vmem:[%s1684_s21 + $0x30] sm:$0xff] %v1356_v46  }
  0xb8   : > { %v598_v48 = vpop.f32.mrf.mxu2  ;;  %v633_v17 = vpop.f32.mrf.mxu3 }
  0xb9   : > { %v536_v49 = vpop.f32.mrf.mxu0  ;;  %v566_v50 = vpop.f32.mrf.mxu1  ;;  %v1694_v51 = vadd.f32 %v1669_v37, %v598_v48  ;;  %v1748_v21 = vadd.f32 %v1669_v37, %v633_v17 }
  0xba   : > { %v1700_v53 = vadd.f32 %v1669_v37, %v566_v50  ;;  %v537_v57 = vadd.f32 %v1669_v37, %v536_v49  ;;  %v1784_v49 = vshrl.u32 %v774_v36, 7 }
  0xbb   : > { %v1391_v52 = vpack.c.bf16 %v1694_v51, %v1691_v47  ;;  %v1426_v23 = vpack.c.bf16 %v1748_v21, %v1742_v15 }
  0xbc   : > { %v1788_v50 = vadd.s32 16, %v1784_v49  ;;  %vm778_vm0 = vcmp.ge.s32.totalorder %v1784_v49, 1 }
  0xbd   : > { %1470 = vst [vmem:[%s1684_s21 + $0x68] sm:$0xff] %v1391_v52  }
  0xbe   : > { %1477 = vst [vmem:[%s1684_s21 + $0xa0] sm:$0xff] %v1426_v23   ;;  %vm789_vm1 = vcmp.le.s32.totalorder %v1788_v50, 16 }
  0xc0   : > { %v601_v54 = vpop.f32.mrf.mxu2  ;;  %v636_v26 = vpop.f32.mrf.mxu3 }
  0xc1   : > { %v538_v55 = vpop.f32.mrf.mxu0  ;;  %v568_v56 = vpop.f32.mrf.mxu1  ;;  %v1715_v62 = vadd.f32 %v1669_v37, %v601_v54  ;;  %v1772_v35 = vadd.f32 %v1669_v37, %v636_v26 }
  0xc2   : > { %v1704_v58 = vadd.f32 %v1669_v37, %v538_v55  ;;  %v1707_v59 = vadd.f32 %v1669_v37, %v568_v56 }
  0xc4   : > { %v1331_v60 = vpack.c.bf16 %v1704_v58, %v537_v57  ;;  %v1361_v61 = vpack.c.bf16 %v1707_v59, %v1700_v53 }
  0xc6   : > { %1458 = vst [vmem:[%s1684_s21 + $0x8] sm:$0xff] %v1331_v60  }
  0xc7   : > { %1464 = vst [vmem:[%s1684_s21 + $0x38] sm:$0xff] %v1361_v61  }
  0xc8   : > { %v603_v63 = vpop.f32.mrf.mxu2  ;;  %v638_v40 = vpop.f32.mrf.mxu3 }
  0xc9   : > { %v541_v0 = vpop.f32.mrf.mxu0  ;;  %v571_v1 = vpop.f32.mrf.mxu1  ;;  %v1718_v2 = vadd.f32 %v1669_v37, %v603_v63  ;;  %v1778_v45 = vadd.f32 %v1669_v37, %v638_v40 }
  0xca   : > { %v1724_v4 = vadd.f32 %v1669_v37, %v571_v1  ;;  %v1727_v9 = vadd.f32 %v1669_v37, %v541_v0  ;;  %v811_v0 = vsel %vm778_vm0, %v1704_v58, 0.0 }
  0xcb   : > { %v1396_v3 = vpack.c.bf16 %v1718_v2, %v1715_v62  ;;  %v1431_v48 = vpack.c.bf16 %v1778_v45, %v1772_v35 }
  0xcd   : > { %1471 = vst [vmem:[%s1684_s21 + $0x70] sm:$0xff] %v1396_v3   ;;  %v925_v3 = vmul.f32 %v1727_v9, %v1727_v9 }
  0xce   : > { %1478 = vst [vmem:[%s1684_s21 + $0xa8] sm:$0xff] %v1431_v48  }
  0xd0   : > { %v606_v5 = vpop.f32.mrf.mxu2  ;;  %v641_v55 = vpop.f32.mrf.mxu3 }
  0xd1   : > { %v543_v7 = vpop.f32.mrf.mxu0  ;;  %v573_v8 = vpop.f32.mrf.mxu1  ;;  %v1739_v14 = vadd.f32 %v1669_v37, %v606_v5 }
  0xd2   : > { %v544_v10 = vadd.f32 %v1669_v37, %v543_v7  ;;  %v1731_v11 = vadd.f32 %v1669_v37, %v573_v8  ;;  %v924_v7 = vmul.f32 %v811_v0, %v811_v0 }
  0xd4   : > { %v1336_v12 = vpack.c.bf16 %v544_v10, %v1727_v9  ;;  %v1366_v13 = vpack.c.bf16 %v1731_v11, %v1724_v4  ;;  %v813_v1 = vsel %vm789_vm1, %v544_v10, 0.0  ;;  %v978_v10 = vadd.f32 %v925_v3, %v924_v7 }
  0xd5   : > { %v926_v8 = vmul.f32 %v813_v1, %v813_v1 }
  0xd6   : > { %1459 = vst [vmem:[%s1684_s21 + $0x10] sm:$0xff] %v1336_v12  }
  0xd7   : > { %1465 = vst [vmem:[%s1684_s21 + $0x40] sm:$0xff] %v1366_v13   ;;  %v865_v13 = vadd.f32 %v811_v0, %v1727_v9 }
  0xd8   : > { %v608_v16 = vpop.f32.mrf.mxu2 }
  0xd9   : > { %v546_v18 = vpop.f32.mrf.mxu0  ;;  %v576_v19 = vpop.f32.mrf.mxu1  ;;  %v1745_v20 = vadd.f32 %v1669_v37, %v608_v16  ;;  %v1819_v16 = vadd.f32 %v1669_v37, %v641_v55 }
  0xda   : > { %v1757_v24 = vadd.f32 %v1669_v37, %v576_v19  ;;  %v547_v29 = vadd.f32 %v1669_v37, %v546_v18  ;;  %v643_v18 = vpop.f32.mrf.mxu3  ;;  %v866_v19 = vadd.f32 %v865_v13, %v813_v1 }
  0xdb   : > { %v1401_v22 = vpack.c.bf16 %v1745_v20, %v1739_v14  ;;  %v1825_v9 = vadd.f32 %v1669_v37, %v643_v18 }
  0xdc   : > { %v814_v12 = vsel %vm778_vm0, %v547_v29, 0.0 }
  0xdd   : > { %1472 = vst [vmem:[%s1684_s21 + $0x78] sm:$0xff] %v1401_v22   ;;  %v927_v22 = vmul.f32 %v814_v12, %v814_v12  ;;  %v1436_v36 = vpack.c.bf16 %v1825_v9, %v1819_v16 }
  0xdf   : > { %1479 = vst [vmem:[%s1684_s21 + $0xb0] sm:$0xff] %v1436_v36  }
  0xe0   : > { %v611_v25 = vpop.f32.mrf.mxu2 }
  0xe1   : > { %v548_v27 = vpop.f32.mrf.mxu0  ;;  %v578_v28 = vpop.f32.mrf.mxu1  ;;  %v1769_v34 = vadd.f32 %v1669_v37, %v611_v25 }
  0xe2   : > { %v549_v30 = vadd.f32 %v1669_v37, %v548_v27  ;;  %v1762_v31 = vadd.f32 %v1669_v37, %v578_v28  ;;  %v979_v27 = vadd.f32 %v978_v10, %v926_v8 }
  0xe4   : > { %v1341_v32 = vpack.c.bf16 %v549_v30, %v547_v29  ;;  %v1371_v33 = vpack.c.bf16 %v1762_v31, %v1757_v24  ;;  %v867_v29 = vadd.f32 %v866_v19, %v814_v12  ;;  %v980_v40 = vadd.f32 %v979_v27, %v927_v22 }
  0xe5   : > { %v820_v12 = vsel %vm778_vm0, %v1672_v38, 0.0  ;;  %v934_v38 = vmul.f32 %v1677_v44, %v1677_v44 }
  0xe6   : > { %1460 = vst [vmem:[%s1684_s21 + $0x18] sm:$0xff] %v1341_v32   ;;  %v928_v32 = vmul.f32 %v549_v30, %v549_v30 }
  0xe7   : > { %1466 = vst [vmem:[%s1684_s21 + $0x48] sm:$0xff] %v1371_v33  }
  0xe8   : > { %v613_v39 = vpop.f32.mrf.mxu2  ;;  %v981_v48 = vadd.f32 %v980_v40, %v928_v32 }
  0xe9   : > { %v551_v41 = vpop.f32.mrf.mxu0  ;;  %v581_v42 = vpop.f32.mrf.mxu1  ;;  %v1775_v43 = vadd.f32 %v1669_v37, %v613_v39 }
  0xea   : > { %v1792_v52 = vadd.f32 %v1669_v37, %v581_v42  ;;  %v552_v60 = vadd.f32 %v1669_v37, %v551_v41  ;;  %v868_v41 = vadd.f32 %v867_v29, %v549_v30  ;;  %v822_v29 = vsel %vm789_vm1, %v1700_v53, 0.0 }
  0xeb   : > { %v1406_v46 = vpack.c.bf16 %v1775_v43, %v1769_v34  ;;  %v823_v53 = vsel %vm778_vm0, %v1707_v59, 0.0  ;;  %v937_v59 = vmul.f32 %v1724_v4, %v1724_v4 }
  0xec   : > { %v816_v28 = vsel %vm789_vm1, %v552_v60, 0.0 }
  0xed   : > { %1473 = vst [vmem:[%s1684_s21 + $0x80] sm:$0xff] %v1406_v46   ;;  %v929_v42 = vmul.f32 %v816_v28, %v816_v28 }
  0xef   : > { %v982_v0 = vadd.f32 %v981_v48, %v929_v42  ;;  %v935_v48 = vmul.f32 %v822_v29, %v822_v29 }
  0xf0   : > { %v616_v54 = vpop.f32.mrf.mxu2 }
  0xf1   : > { %v553_v56 = vpop.f32.mrf.mxu0  ;;  %v583_v57 = vpop.f32.mrf.mxu1  ;;  %v1816_v58 = vadd.f32 %v1669_v37, %v616_v54  ;;  %v869_v54 = vadd.f32 %v868_v41, %v816_v28 }
  0xf2   : > { %v554_v61 = vadd.f32 %v1669_v37, %v553_v56  ;;  %v1799_v63 = vadd.f32 %v1669_v37, %v583_v57 }
  0xf4   : > { %v1346_v5 = vpack.c.bf16 %v554_v61, %v552_v60  ;;  %v1376_v6 = vpack.c.bf16 %v1799_v63, %v1792_v52  ;;  %v817_v39 = vsel %vm778_vm0, %v554_v61, 0.0  ;;  %v646_v60 = vpop.f32.mrf.mxu3 }
  0xf5   : > { %v930_v55 = vmul.f32 %v817_v39, %v817_v39  ;;  %v870_v1 = vadd.f32 %v869_v54, %v817_v39  ;;  %v1863_v32 = vadd.f32 %v1669_v37, %v646_v60  ;;  %v936_v60 = vmul.f32 %v823_v53, %v823_v53 }
  0xf6   : > { %1461 = vst [vmem:[%s1684_s21 + $0x20] sm:$0xff] %v1346_v5  }
  0xf7   : > { %1467 = vst [vmem:[%s1684_s21 + $0x50] sm:$0xff] %v1376_v6   ;;  %v983_v7 = vadd.f32 %v982_v0, %v930_v55 }
  0xf8   : > { %v618_v17 = vpop.f32.mrf.mxu2 }
  0xf9   : > { %v556_v23 = vpop.f32.mrf.mxu0  ;;  %v586_v25 = vpop.f32.mrf.mxu1  ;;  %v1822_v26 = vadd.f32 %v1669_v37, %v618_v17 }
  0xfa   : > { %v557_v46 = vadd.f32 %v1669_v37, %v556_v23  ;;  %v1839_v56 = vadd.f32 %v1669_v37, %v586_v25  ;;  %v933_v23 = vmul.f32 %v820_v12, %v820_v12 }
  0xfb   : > { %v1411_v33 = vpack.c.bf16 %v1822_v26, %v1816_v58 }
  0xfc   : > { %v931_v3 = vmul.f32 %v557_v46, %v557_v46  ;;  %v871_v8 = vadd.f32 %v870_v1, %v557_v46  ;;  %v648_v36 = vpop.f32.mrf.mxu3 }
  0xfd   : > { %1474 = vst [vmem:[%s1684_s21 + $0x88] sm:$0xff] %v1411_v33  }
  0xfe   : > { %v984_v18 = vadd.f32 %v983_v7, %v931_v3  ;;  %v825_v3 = vsel %vm789_vm1, %v1731_v11, 0.0 }
 0x100   : > { %v621_v57 = vpop.f32.mrf.mxu2 }
 0x101   : > { %v558_v61 = vpop.f32.mrf.mxu0  ;;  %v588_v5 = vpop.f32.mrf.mxu1  ;;  %v1855_v28 = vadd.f32 %v1669_v37, %v621_v57 }
 0x102   : > { %v559_v30 = vadd.f32 %v1669_v37, %v558_v61  ;;  %v1843_v6 = vadd.f32 %v1669_v37, %v588_v5 }
 0x104   : > { %v1351_v13 = vpack.c.bf16 %v559_v30, %v557_v46  ;;  %v819_v10 = vsel %vm789_vm1, %v559_v30, 0.0  ;;  %v1381_v17 = vpack.c.bf16 %v1843_v6, %v1839_v56  ;;  %v1870_v46 = vadd.f32 %v1669_v37, %v648_v36 }
 0x105   : > { %v872_v19 = vadd.f32 %v871_v8, %v819_v10  ;;  %v932_v22 = vmul.f32 %v819_v10, %v819_v10  ;;  %v826_v30 = vsel %vm778_vm0, %v1757_v24, 0.0  ;;  %v940_v24 = vmul.f32 %v1762_v31, %v1762_v31 }
 0x106   : > { %1462 = vst [vmem:[%s1684_s21 + $0x28] sm:$0xff] %v1351_v13   ;;  %v938_v13 = vmul.f32 %v825_v3, %v825_v3 }
 0x107   : > { %v873_v25 = vadd.f32 %v872_v19, %v820_v12  ;;  %v985_v27 = vadd.f32 %v984_v18, %v932_v22  ;;  %1468 = vst [vmem:[%s1684_s21 + $0x58] sm:$0xff] %v1381_v17   ;;  %v651_v12 = vpop.f32.mrf.mxu3  ;;  %v939_v19 = vmul.f32 %v826_v30, %v826_v30 }
 0x108   : > { %v623_v33 = vpop.f32.mrf.mxu2 }
 0x109   : > { %v874_v39 = vadd.f32 %v873_v25, %v1677_v44  ;;  %v986_v40 = vadd.f32 %v985_v27, %v933_v23  ;;  %v591_v41 = vpop.f32.mrf.mxu1  ;;  %v1867_v42 = vadd.f32 %v1669_v37, %v623_v33  ;;  %v1441_v44 = vpack.c.bf16 %v1870_v46, %v1863_v32 }
 0x10a   : > { %v592_v7 = vadd.f32 %v1669_v37, %v591_v41  ;;  %v829_v27 = vsel %vm778_vm0, %v1799_v63, 0.0 }
 0x10b   : > { %v875_v54 = vadd.f32 %v874_v39, %v822_v29  ;;  %v987_v55 = vadd.f32 %v986_v40, %v934_v38  ;;  %v1416_v57 = vpack.c.bf16 %v1867_v42, %v1855_v28  ;;  %1480 = vst [vmem:[%s1684_s21 + $0xb8] sm:$0xff] %v1441_v44   ;;  %v942_v41 = vmul.f32 %v829_v27, %v829_v27 }
 0x10c   : > { %v943_v44 = vmul.f32 %v1839_v56, %v1839_v56 }
 0x10d   : > { %v876_v0 = vadd.f32 %v875_v54, %v823_v53  ;;  %v988_v1 = vadd.f32 %v987_v55, %v935_v48  ;;  %1475 = vst [vmem:[%s1684_s21 + $0x90] sm:$0xff] %v1416_v57   ;;  %v831_v57 = vsel %vm789_vm1, %v1843_v6, 0.0 }
 0x10f   : > { %v877_v61 = vadd.f32 %v876_v0, %v1724_v4  ;;  %v989_v5 = vadd.f32 %v988_v1, %v936_v60  ;;  %v828_v4 = vsel %vm789_vm1, %v1792_v52, 0.0  ;;  %v1906_v52 = vadd.f32 %v1669_v37, %v651_v12  ;;  %v653_v48 = vpop.f32.mrf.mxu3 }
 0x110   : > { %v626_v8 = vpop.f32.mrf.mxu2  ;;  %v941_v33 = vmul.f32 %v828_v4, %v828_v4  ;;  %v1912_v55 = vadd.f32 %v1669_v37, %v653_v48 }
 0x111   : > { %v990_v10 = vadd.f32 %v989_v5, %v937_v59  ;;  %v878_v17 = vadd.f32 %v877_v61, %v825_v3  ;;  %v593_v11 = vpop.f32.mrf.mxu1  ;;  %v1903_v40 = vadd.f32 %v1669_v37, %v626_v8  ;;  %v832_v3 = vsel %vm778_vm0, %v592_v7, 0.0 }
 0x112   : > { %v594_v18 = vadd.f32 %v1669_v37, %v593_v11  ;;  %v1446_v59 = vpack.c.bf16 %v1912_v55, %v1906_v52  ;;  %v944_v5 = vmul.f32 %v831_v57, %v831_v57  ;;  %v945_v12 = vmul.f32 %v832_v3, %v832_v3 }
 0x113   : > { %v879_v22 = vadd.f32 %v878_v17, %v826_v30  ;;  %v991_v23 = vadd.f32 %v990_v10, %v938_v13 }
 0x114   : > { %v1386_v25 = vpack.c.bf16 %v594_v18, %v592_v7  ;;  %1481 = vst [vmem:[%s1684_s21 + $0xc0] sm:$0xff] %v1446_v59   ;;  %v946_v11 = vmul.f32 %v594_v18, %v594_v18  ;;  %v835_v7 = vsel %vm778_vm0, %v1694_v51, 0.0  ;;  %v838_v51 = vsel %vm778_vm0, %v1739_v14, 0.0 }
 0x115   : > { %v880_v38 = vadd.f32 %v879_v22, %v1762_v31  ;;  %v992_v29 = vadd.f32 %v991_v23, %v939_v19  ;;  %v952_v14 = vmul.f32 %v1745_v20, %v1745_v20 }
 0x116   : > { %1469 = vst [vmem:[%s1684_s21 + $0x60] sm:$0xff] %v1386_v25  }
 0x117   : > { %v881_v36 = vadd.f32 %v880_v38, %v828_v4  ;;  %v993_v39 = vadd.f32 %v992_v29, %v940_v24  ;;  %v656_v13 = vpop.f32.mrf.mxu3  ;;  %v948_v4 = vmul.f32 %v835_v7, %v835_v7 }
 0x118   : > { %v628_v53 = vpop.f32.mrf.mxu2  ;;  %v1944_v29 = vadd.f32 %v1669_v37, %v656_v13 }
 0x119   : > { %v882_v54 = vadd.f32 %v881_v36, %v829_v27  ;;  %v994_v63 = vadd.f32 %v993_v39, %v941_v33  ;;  %v1909_v31 = vadd.f32 %v1669_v37, %v628_v53  ;;  %v837_v27 = vsel %vm789_vm1, %v1718_v2, 0.0 }
 0x11a   : > { %v950_v36 = vmul.f32 %v837_v27, %v837_v27  ;;  %v951_v53 = vmul.f32 %v838_v51, %v838_v51 }
 0x11b   : > { %v883_v60 = vadd.f32 %v882_v54, %v1839_v56  ;;  %v995_v0 = vadd.f32 %v994_v63, %v942_v41  ;;  %v1421_v1 = vpack.c.bf16 %v1909_v31, %v1903_v40  ;;  %v834_v56 = vsel %vm789_vm1, %v1691_v47, 0.0 }
 0x11c   : > { %v947_v19 = vmul.f32 %v834_v56, %v834_v56  ;;  %v949_v47 = vmul.f32 %v1715_v62, %v1715_v62  ;;  %v840_v63 = vsel %vm789_vm1, %v1769_v34, 0.0  ;;  %v843_v34 = vsel %vm789_vm1, %v1822_v26, 0.0 }
 0x11d   : > { %v884_v61 = vadd.f32 %v883_v60, %v831_v57  ;;  %v996_v30 = vadd.f32 %v995_v0, %v943_v44  ;;  %1476 = vst [vmem:[%s1684_s21 + $0x98] sm:$0xff] %v1421_v1   ;;  %v841_v60 = vsel %vm778_vm0, %v1775_v43, 0.0  ;;  %v953_v0 = vmul.f32 %v840_v63, %v840_v63 }
 0x11e   : > { %v844_v43 = vsel %vm778_vm0, %v1855_v28, 0.0  ;;  %v846_v26 = vsel %vm789_vm1, %v1903_v40, 0.0  ;;  %v958_v28 = vmul.f32 %v1867_v42, %v1867_v42 }
 0x11f   : > { %v997_v6 = vadd.f32 %v996_v30, %v944_v5  ;;  %v885_v8 = vadd.f32 %v884_v61, %v832_v3  ;;  %v658_v33 = vpop.f32.mrf.mxu3  ;;  %v954_v61 = vmul.f32 %v841_v60, %v841_v60 }
 0x120   : > { %v659_v2 = vadd.f32 %v1669_v37, %v658_v33 }
 0x121   : > { %v998_v10 = vadd.f32 %v997_v6, %v945_v12  ;;  %v886_v17 = vadd.f32 %v885_v8, %v594_v18  ;;  %v955_v6 = vmul.f32 %v1816_v58, %v1816_v58  ;;  %v956_v12 = vmul.f32 %v843_v34, %v843_v34 }
 0x123   : > { %v887_v22 = vadd.f32 %v886_v17, %v834_v56  ;;  %v999_v23 = vadd.f32 %v998_v10, %v946_v11  ;;  %v957_v17 = vmul.f32 %v844_v43, %v844_v43 }
 0x125   : > { %v888_v25 = vadd.f32 %v887_v22, %v835_v7  ;;  %v1000_v24 = vadd.f32 %v999_v23, %v947_v19 }
 0x127   : > { %v889_v38 = vadd.f32 %v888_v25, %v1715_v62  ;;  %v1001_v18 = vadd.f32 %v1000_v24, %v948_v4  ;;  %v1451_v62 = vpack.c.bf16 %v659_v2, %v1944_v29  ;;  %v661_v59 = vpop.f32.mrf.mxu3  ;;  %v847_v4 = vsel %vm778_vm0, %v1909_v31, 0.0 }
 0x128   : > { %v662_v7 = vadd.f32 %v1669_v37, %v661_v59  ;;  %v850_v31 = vsel %vm778_vm0, %v1772_v35, 0.0  ;;  %v853_v35 = vsel %vm778_vm0, %v1825_v9, 0.0  ;;  %v856_v9 = vsel %vm778_vm0, %v1906_v52, 0.0 }
 0x129   : > { %v890_v39 = vadd.f32 %v889_v38, %v837_v27  ;;  %v1002_v41 = vadd.f32 %v1001_v18, %v949_v47  ;;  %1482 = vst [vmem:[%s1684_s21 + $0xc8] sm:$0xff] %v1451_v62   ;;  %v959_v27 = vmul.f32 %v846_v26, %v846_v26  ;;  %v960_v18 = vmul.f32 %v847_v4, %v847_v4 }
 0x12a   : > { %v963_v2 = vmul.f32 %v850_v31, %v850_v31 }
 0x12b   : > { %v891_v48 = vadd.f32 %v890_v39, %v838_v51  ;;  %v1003_v54 = vadd.f32 %v1002_v41, %v950_v36  ;;  %v849_v51 = vsel %vm789_vm1, %v1748_v21, 0.0  ;;  %v852_v21 = vsel %vm789_vm1, %v1819_v16, 0.0 }
 0x12c   : > { %v962_v36 = vmul.f32 %v849_v51, %v849_v51  ;;  %v855_v16 = vsel %vm789_vm1, %v1870_v46, 0.0  ;;  %v858_v46 = vsel %vm789_vm1, %v1944_v29, 0.0 }
 0x12d   : > { %v1004_v57 = vadd.f32 %v1003_v54, %v951_v53  ;;  %v892_v44 = vadd.f32 %v891_v48, %v1745_v20  ;;  %v964_v54 = vmul.f32 %v1778_v45, %v1778_v45  ;;  %v968_v59 = vmul.f32 %v855_v16, %v855_v16 }
 0x12e   : > { %v971_v52 = vmul.f32 %v858_v46, %v858_v46 }
 0x12f   : > { %v893_v1 = vadd.f32 %v892_v44, %v840_v63  ;;  %v1005_v3 = vadd.f32 %v1004_v57, %v952_v14  ;;  %v663_v19 = vpop.f32.mrf.mxu3  ;;  %v965_v63 = vmul.f32 %v852_v21, %v852_v21  ;;  %v966_v44 = vmul.f32 %v853_v35, %v853_v35 }
 0x130   : > { %v664_v23 = vadd.f32 %v1669_v37, %v663_v19 }
 0x131   : > { %v894_v5 = vadd.f32 %v893_v1, %v841_v60  ;;  %v1006_v30 = vadd.f32 %v1005_v3, %v953_v0  ;;  %v967_v1 = vmul.f32 %v1863_v32, %v1863_v32 }
 0x132   : > { %v1456_v47 = vpack.c.bf16 %v664_v23, %v662_v7 }
 0x133   : > { %v895_v20 = vadd.f32 %v894_v5, %v1816_v58  ;;  %v1007_v8 = vadd.f32 %v1006_v30, %v954_v61  ;;  %v969_v30 = vmul.f32 %v856_v9, %v856_v9 }
 0x134   : > { %1483 = vst [vmem:[%s1684_s21 + $0xd0] sm:$0xff] %v1456_v47  }
 0x135   : > { %v896_v56 = vadd.f32 %v895_v20, %v843_v34  ;;  %v1008_v13 = vadd.f32 %v1007_v8, %v955_v6 }
 0x137   : > { %v897_v10 = vadd.f32 %v896_v56, %v844_v43  ;;  %v1009_v11 = vadd.f32 %v1008_v13, %v956_v12 }
 0x139   : > { %v1010_v58 = vadd.f32 %v1009_v11, %v957_v17  ;;  %v898_v22 = vadd.f32 %v897_v10, %v1867_v42  ;;  %v961_v42 = vmul.f32 %v1742_v15, %v1742_v15 }
 0x13b   : > { %v1011_v25 = vadd.f32 %v1010_v58, %v958_v28  ;;  %v899_v24 = vadd.f32 %v898_v22, %v846_v26 }
 0x13d   : > { %v1012_v40 = vadd.f32 %v1011_v25, %v959_v27  ;;  %v900_v38 = vadd.f32 %v899_v24, %v847_v4 }
 0x13f   : > { %v901_v37 = vadd.f32 %v900_v38, %v1742_v15  ;;  %v1013_v33 = vadd.f32 %v1012_v40, %v960_v18 }
 0x141   : > { %v902_v39 = vadd.f32 %v901_v37, %v849_v51  ;;  %v1014_v41 = vadd.f32 %v1013_v33, %v961_v42 }
 0x143   : > { %v903_v53 = vadd.f32 %v902_v39, %v850_v31  ;;  %v1015_v48 = vadd.f32 %v1014_v41, %v962_v36 }
 0x145   : > { %v904_v15 = vadd.f32 %v903_v53, %v1778_v45  ;;  %v1016_v62 = vadd.f32 %v1015_v48, %v963_v2 }
 0x147   : > { %v905_v14 = vadd.f32 %v904_v15, %v852_v21  ;;  %v1017_v57 = vadd.f32 %v1016_v62, %v964_v54 }
 0x149   : > { %v1018_v60 = vadd.f32 %v1017_v57, %v965_v63  ;;  %v906_v0 = vadd.f32 %v905_v14, %v853_v35 }
 0x14b   : > { %v907_v45 = vadd.f32 %v906_v0, %v1863_v32  ;;  %v1019_v3 = vadd.f32 %v1018_v60, %v966_v44  ;;  %v970_v32 = vmul.f32 %v1912_v55, %v1912_v55 }
 0x14d   : > { %v908_v61 = vadd.f32 %v907_v45, %v855_v16  ;;  %v1020_v5 = vadd.f32 %v1019_v3, %v967_v1 }
 0x14f   : > { %v909_v34 = vadd.f32 %v908_v61, %v856_v9  ;;  %v1021_v6 = vadd.f32 %v1020_v5, %v968_v59 }
 0x151   : > { %v910_v20 = vadd.f32 %v909_v34, %v1912_v55  ;;  %v1022_v8 = vadd.f32 %v1021_v6, %v969_v30 }
 0x153   : > { %v1023_v43 = vadd.f32 %v1022_v8, %v970_v32  ;;  %v911_v49 = vadd.f32 %v910_v20, %v858_v46 }
 0x155   : > { %v915_v12 = vrot.slane %v911_v49, 4  ;;  %v1024_v56 = vadd.f32 %v1023_v43, %v971_v52 }
 0x157   : > { %v916_v13 = vadd.f32 %v915_v12, %v911_v49  ;;  %v1028_v10 = vrot.slane %v1024_v56, 4 }
 0x159   : > { %v917_v17 = vrot.slane %v916_v13, 2  ;;  %v1029_v11 = vadd.f32 %v1028_v10, %v1024_v56 }
 0x15b   : > { %v918_v26 = vadd.f32 %v917_v17, %v916_v13  ;;  %v1030_v7 = vrot.slane %v1029_v11, 2 }
 0x15d   : > { %v919_v50 = vrot.slane %v918_v26, 1  ;;  %v1031_v29 = vadd.f32 %v1030_v7, %v1029_v11 }
 0x15f   : > { %v1032_v19 = vrot.slane %v1031_v29, 1  ;;  %v920_v55 = vadd.f32 %v919_v50, %v918_v26 }
 0x161   : > { %v1033_v58 = vadd.f32 %v1032_v19, %v1031_v29 }
 0x163   : > { %v1035_v22 = vsel %vm1034_vm2, %v920_v55, %v1033_v58 }
 0x164   : > { %1036 = vst [vmem:[%s236_s25] sm:$0x3] %v1035_v22 }
 0x165 PF: > { %s15_s17 = sadd.s32 1, %s1556_s17   ;;  %s2030_s15 = smov %s1552_s16 }
 0x166   : > { %p12_p5 = scmp.ge.s32.totalorder %s15_s17, 4   ;;  %s2031_s16 = smov %s2033_s18 }
 0x168   :  { %14 = sbr.rel (!%p12_p5) target bundleno = 2 (0x2), region = 74 }

// kernel: double_conv_forward.4
= control target key start
LH: loop header
LB: loop body
LE: loop exit
PB: predicated region body
PF: predicated region fallthrough
CT: control target
= control target key end

     0   :  { %s3848_s21 = smov 0   ;;  %s3850_s22 = smov 0   ;;  %s4985_s0 = inlined_call_operand.vmem [shape: bf16[2,18,24,128], index: 0, kind: input, shape index: {}]   ;;  %s4986_s1 = inlined_call_operand.vmem [shape: bf16[1152,128], index: 1, kind: input, shape index: {}]   ;;  %s4987_s2 = inlined_call_operand.vmem [shape: f32[1,128], index: 2, kind: input, shape index: {}]   ;;  %s4988_s3 = inlined_call_operand.vmem [shape: f32[1,128], index: 3, kind: input, shape index: {}]   ;;  %s4989_s4 = inlined_call_operand.vmem [shape: f32[1,128], index: 4, kind: input, shape index: {}]   ;;  %s4990_s5 = inlined_call_operand.vmem [shape: bf16[2,16,16,128], index: 5, kind: output, shape index: {0}]   ;;  %s4991_s6 = inlined_call_operand.vmem [shape: f32[2,2,128], index: 6, kind: output, shape index: {1}]  }
   0x1   :  { %s3852_s23 = smov 0  }
   0x2 LB: > { %s29_s24 = sadd.s32 1, %s3806_s22  ;;  %p3150_p0 = scmp.ge.s32.totalorder %s3810_s23, 1  ;;  %s3810_s23 = sphi %s3852_s23, %s17_s23   ;;  %s3806_s22 = sphi %s3850_s22, %s5094_s22   ;;  %s3802_s21 = sphi %s3848_s21, %s5093_s21  }
   0x3   : > { %p31_p1 = scmp.ge.s32.totalorder %s29_s24, 2  ;;  %p235_p2 = scmp.lt.s32.totalorder %s3810_s23, 3 }
   0x5   : > { %s5096_s24 = smov (%p31_p1, %s29_s24), 0  ;;  %p236_p3 = pnand %p3150_p0, %p235_p2 }
   0x7   : > { %239 = sbr.rel (%p236_p3) target bundleno = 768 (0x300), region = 40 }
   0xc   : > { %v3453_v0 = vld [vmem:[%s4986_s1 + $0x38] sm:$0xff]  ;;  %p277_p4 = scmp.lt.s32.totalorder %s3802_s21, 1  ;;  %v3452_v1 = vld [vmem:[%s4986_s1 + $0x30] sm:$0xff]  ;;  %v578_v2 = vlaneseq  ;;  %v3451_v3 = vld [vmem:[%s4986_s1 + $0x28] sm:$0xff]  ;;  %v3812_v59 = vmov 0.0|0.0   ;;  %vm1354_vm3 = vcmask 1046528  }
   0xd   : > { %3728 = vmatpush.bf16.msra.mxu1 %v3453_v0  ;;  %3729 = vmatpush.bf16.msra.mxu2 %v3453_v0  ;;  %v3886_v4 = vld [vmem:[%s4988_s3] ss:$0 sm:$0xff]  ;;  %v3449_v33 = vld [vmem:[%s4986_s1 + $0x18] sm:$0xff]  ;;  %v3448_v46 = vld [vmem:[%s4986_s1 + $0x10] sm:$0xff]  ;;  %v1033_v60 = vunpack.c.l.b16 %v3812_v59  ;;  %vm1145_vm2 = vsmask.f32 7424 }
   0xe   : > { %s5098_s21 = smov (!%p277_p4, %s3802_s21), 1  ;;  %3730 = vmatpush.bf16.msra.mxu3 %v3453_v0  ;;  %2051 = vmatpush.bf16.msra.mxu0 %v3453_v0  ;;  %v3889_v6 = vshrl.u32 %v578_v2, 7  ;;  %v3896_v11 = vld [vmem:[%s4989_s4] ss:$0 sm:$0xff]  ;;  %v3447_v0 = vld [vmem:[%s4986_s1 + $0x8] sm:$0xff]  ;;  %vm3022_vm4 = vcmask 1040384  }
   0xf   : > { %s3752_s29 = smul.u32 216, %s5098_s21  ;;  %v3450_v18 = vld [vmem:[%s4986_s1 + $0x20] sm:$0xff]  ;;  %s3154_s9 = sshll.u32 %s5098_s21, 1 }
  0x10   : > { %vm671_vm0 = vcmp.ge.s32.totalorder %v3889_v6, 1  ;;  %s298_s13 = scalar_lea.vmem %s4991_s6, %s3154_s9 }
  0x11   : > { %3731 = vmatpush.bf16.msra.mxu1 %v3452_v1  ;;  %3732 = vmatpush.bf16.msra.mxu2 %v3452_v1  ;;  %s3881_s10 = scalar_lea.vmem %s4985_s0, %s3752_s29 }
  0x12   : > { %3733 = vmatpush.bf16.msra.mxu3 %v3452_v1  ;;  %2052 = vmatpush.bf16.msra.mxu0 %v3452_v1  ;;  %v3694_v5 = vld [vmem:[%s3881_s10 + $0x30] sm:$0xff]   ;;  %v3700_v7 = vld [vmem:[%s3881_s10 + $0x60] sm:$0xff]   ;;  %v3899_v14 = vld [vmem:[%s3881_s10 + $0x38] sm:$0xff]  }
  0x13   : > { %v3706_v8 = vld [vmem:[%s3881_s10 + $0x90] sm:$0xff]   ;;  %v3536_v9 = vunpack.c.l.bf16 %v3694_v5  ;;  %v3537_v10 = vunpack.c.h.bf16 %v3694_v5  ;;  %v3560_v12 = vunpack.c.l.bf16 %v3700_v7  ;;  %v3561_v13 = vunpack.c.h.bf16 %v3700_v7  ;;  %v3909_v22 = vld [vmem:[%s3881_s10 + $0x40] sm:$0xff]   ;;  %v3927_v38 = vld [vmem:[%s3881_s10 + $0x68] sm:$0xff]  }
  0x14   : > { %v3584_v15 = vunpack.c.l.bf16 %v3706_v8  ;;  %v3585_v16 = vunpack.c.h.bf16 %v3706_v8  ;;  %v3541_v17 = vunpack.c.h.bf16 %v3899_v14  ;;  %v3544_v31 = vunpack.c.l.bf16 %v3909_v22  ;;  %v3702_v42 = vld [vmem:[%s3881_s10 + $0x70] sm:$0xff]   ;;  %v3707_v53 = vld [vmem:[%s3881_s10 + $0x98] sm:$0xff]   ;;  %v3708_v56 = vld [vmem:[%s3881_s10 + $0xa0] sm:$0xff]  }
  0x15   : > { %3734 = vmatpush.bf16.msra.mxu1 %v3451_v3  ;;  %3735 = vmatpush.bf16.msra.mxu2 %v3451_v3  ;;  %v425_v19 = vmul.f32 %v3886_v4, %v3536_v9  ;;  %v426_v20 = vmul.f32 %v3886_v4, %v3537_v10  ;;  %v437_v21 = vmul.f32 %v3886_v4, %v3560_v12  ;;  %v3565_v45 = vunpack.c.h.bf16 %v3927_v38  ;;  %v3945_v57 = vld [vmem:[%s3881_s10 + $0x10] sm:$0xff]   ;;  %v305_v63 = vld [vmem:[%s3881_s10 + $0xc] sm:$0xf] }
  0x16   : > { %3736 = vmatpush.bf16.msra.mxu3 %v3451_v3  ;;  %2053 = vmatpush.bf16.msra.mxu0 %v3451_v3  ;;  %v438_v23 = vmul.f32 %v3886_v4, %v3561_v13  ;;  %v449_v24 = vmul.f32 %v3886_v4, %v3584_v15  ;;  %v450_v25 = vmul.f32 %v3886_v4, %v3585_v16  ;;  %v3568_v52 = vunpack.c.l.bf16 %v3702_v42 }
  0x17   : > { %v482_v26 = vadd.f32 %v3896_v11, %v425_v19  ;;  %v483_v27 = vadd.f32 %v3896_v11, %v426_v20  ;;  %v494_v28 = vadd.f32 %v3896_v11, %v437_v21  ;;  %v428_v32 = vmul.f32 %v3886_v4, %v3541_v17  ;;  %v3446_v21 = vld [vmem:[%s4986_s1] sm:$0xff] }
  0x18   : > { %v495_v29 = vadd.f32 %v3896_v11, %v438_v23  ;;  %v506_v30 = vadd.f32 %v3896_v11, %v449_v24  ;;  %v507_v37 = vadd.f32 %v3896_v11, %v450_v25  ;;  %v429_v50 = vmul.f32 %v3886_v4, %v3544_v31 }
  0x19   : > { %3737 = vmatpush.bf16.msra.mxu1 %v3450_v18  ;;  %3738 = vmatpush.bf16.msra.mxu2 %v3450_v18  ;;  %v536_v34 = vmax.f32 %v482_v26, 0.0  ;;  %v537_v35 = vmax.f32 %v483_v27, 0.0  ;;  %v548_v36 = vmax.f32 %v494_v28, 0.0  ;;  %v485_v44 = vadd.f32 %v3896_v11, %v428_v32  ;;  %v3469_v28 = vld [vmem:[%s4986_s1 + $0xb8] sm:$0xff] }
  0x1a   : > { %3739 = vmatpush.bf16.msra.mxu3 %v3450_v18  ;;  %2054 = vmatpush.bf16.msra.mxu0 %v3450_v18  ;;  %v560_v39 = vmax.f32 %v506_v30, 0.0  ;;  %v549_v41 = vmax.f32 %v495_v29, 0.0  ;;  %v561_v48 = vmax.f32 %v507_v37, 0.0  ;;  %v440_v62 = vmul.f32 %v3886_v4, %v3565_v45  ;;  %v3477_v30 = vld [vmem:[%s4986_s1 + $0xf8] sm:$0xff] }
  0x1b   : > { %v905_v40 = vsel %vm671_vm0, %v536_v34, 0.0  ;;  %v917_v43 = vsel %vm671_vm0, %v548_v36, 0.0  ;;  %v960_v47 = vpack.c.bf16 %v537_v35, %v537_v35  ;;  %v539_v61 = vmax.f32 %v485_v44, 0.0  ;;  %v3461_v44 = vld [vmem:[%s4986_s1 + $0x78] sm:$0xff] }
  0x1c   : > { %v929_v49 = vsel %vm671_vm0, %v560_v39, 0.0  ;;  %v959_v51 = vpack.c.bf16 %v905_v40, %v905_v40  ;;  %v971_v54 = vpack.c.bf16 %v917_v43, %v917_v43  ;;  %v972_v55 = vpack.c.bf16 %v549_v41, %v549_v41  ;;  %v3982_v39 = vld [vmem:[%s3881_s10 + $0x78] sm:$0xff]  }
  0x1d   : > { %3740 = vmatpush.bf16.msra.mxu1 %v3449_v33  ;;  %3741 = vmatpush.bf16.msra.mxu2 %v3449_v33  ;;  %v983_v58 = vpack.c.bf16 %v929_v49, %v929_v49  ;;  %v1042_v1 = vunpack.c.l.b16 %v960_v47  ;;  %v984_v2 = vpack.c.bf16 %v561_v48, %v561_v48  ;;  %v486_v3 = vadd.f32 %v3896_v11, %v429_v50  ;;  %v3485_v45 = vld [vmem:[%s4986_s1 + $0x138] sm:$0xff]  ;;  %v3468_v49 = vld [vmem:[%s4986_s1 + $0xb0] sm:$0xff] }
  0x1e   : > { %3742 = vmatpush.bf16.msra.mxu3 %v3449_v33  ;;  %2055 = vmatpush.bf16.msra.mxu0 %v3449_v33  ;;  %v3589_v5 = vunpack.c.h.bf16 %v3707_v53  ;;  %v1041_v7 = vunpack.c.l.b16 %v959_v51  ;;  %v441_v8 = vmul.f32 %v3886_v4, %v3568_v52  ;;  %v3592_v9 = vunpack.c.l.bf16 %v3708_v56  ;;  %v3697_v33 = vld [vmem:[%s3881_s10 + $0x48] sm:$0xff]   ;;  %v3476_v50 = vld [vmem:[%s4986_s1 + $0xf0] sm:$0xff] }
  0x1f   : > { %v3520_v10 = vunpack.c.l.bf16 %v3945_v57  ;;  %v1049_v12 = vunpack.c.l.b16 %v971_v54  ;;  %v1050_v13 = vunpack.c.l.b16 %v972_v55  ;;  %v359_v16 = vunpack.c.l.bf16 %v305_v63  ;;  %v3709_v53 = vld [vmem:[%s3881_s10 + $0xa8] sm:$0xff]  }
  0x20   : > { %v452_v15 = vmul.f32 %v3886_v4, %v3589_v5  ;;  %v1057_v17 = vunpack.c.l.b16 %v983_v58  ;;  %v908_v18 = vsel %vm671_vm0, %v539_v61, 0.0  ;;  %v497_v19 = vadd.f32 %v3896_v11, %v440_v62  ;;  %v3691_v61 = vld [vmem:[%s3881_s10 + $0x18] sm:$0xff]   ;;  %v3460_v62 = vld [vmem:[%s4986_s1 + $0x70] sm:$0xff] }
  0x21   : > { %3743 = vmatpush.bf16.msra.mxu1 %v3448_v46  ;;  %3744 = vmatpush.bf16.msra.mxu2 %v3448_v46  ;;  %v453_v20 = vmul.f32 %v3886_v4, %v3592_v9  ;;  %v1058_v23 = vunpack.c.l.b16 %v984_v2  ;;  %v416_v25 = vmul.f32 %v3886_v4, %v359_v16  ;;  %v417_v26 = vmul.f32 %v3886_v4, %v3520_v10 }
  0x22   : > { %3745 = vmatpush.bf16.msra.mxu3 %v3448_v46  ;;  %2056 = vmatpush.bf16.msra.mxu0 %v3448_v46  ;;  %v509_v24 = vadd.f32 %v3896_v11, %v452_v15  ;;  %v498_v27 = vadd.f32 %v3896_v11, %v441_v8  ;;  %v3970_v29 = vpack.c.b16 %v1033_v60, %v1033_v60  ;;  %v540_v31 = vmax.f32 %v486_v3, 0.0  ;;  %v3475_v8 = vld [vmem:[%s4986_s1 + $0xe8] sm:$0xff] }
  0x23   : > { %v473_v32 = vadd.f32 %v3896_v11, %v416_v25  ;;  %v3977_v34 = vpack.c.b16 %v1042_v1, %v1041_v7  ;;  %v3979_v35 = vpack.c.b16 %v1050_v13, %v1049_v12  ;;  %v962_v36 = vpack.c.bf16 %v908_v18, %v908_v18  ;;  %v3484_v1 = vld [vmem:[%s4986_s1 + $0x130] sm:$0xff]  ;;  %v3467_v7 = vld [vmem:[%s4986_s1 + $0xa8] sm:$0xff] }
  0x24   : > { %5018 = vst [vmem:[#allocation2_spill] sm:$0xff] %v3970_v29  ;;  %v551_v37 = vmax.f32 %v497_v19, 0.0  ;;  %v3984_v40 = vpack.c.b16 %v1058_v23, %v1057_v17  ;;  %v510_v41 = vadd.f32 %v3896_v11, %v453_v20  ;;  %v563_v42 = vmax.f32 %v509_v24, 0.0  ;;  %v3459_v25 = vld [vmem:[%s4986_s1 + $0x68] sm:$0xff] }
  0x25   : > { %3746 = vmatpush.bf16.msra.mxu1 %v3447_v0  ;;  %3747 = vmatpush.bf16.msra.mxu2 %v3447_v0  ;;  %5019 = vst [vmem:[#allocation3_spill] sm:$0xff] %v3977_v34  ;;  %v474_v43 = vadd.f32 %v3896_v11, %v417_v26  ;;  %v552_v46 = vmax.f32 %v498_v27, 0.0  ;;  %v527_v47 = vmax.f32 %v473_v32, 0.0  ;;  %v3548_v48 = vunpack.c.l.bf16 %v3697_v33  ;;  %v3483_v26 = vld [vmem:[%s4986_s1 + $0x128] sm:$0xff]  ;;  %v3474_v32 = vld [vmem:[%s4986_s1 + $0xe0] sm:$0xff] }
  0x26   : > { %3748 = vmatpush.bf16.msra.mxu3 %v3447_v0  ;;  %2057 = vmatpush.bf16.msra.mxu0 %v3447_v0  ;;  %5020 = vst [vmem:[#allocation4_spill] sm:$0xff] %v3979_v35  ;;  %v3549_v51 = vunpack.c.h.bf16 %v3697_v33  ;;  %v3572_v52 = vunpack.c.l.bf16 %v3982_v39  ;;  %v963_v54 = vpack.c.bf16 %v540_v31, %v540_v31  ;;  %v920_v55 = vsel %vm671_vm0, %v551_v37, 0.0  ;;  %v3466_v31 = vld [vmem:[%s4986_s1 + $0xa0] sm:$0xff] }
  0x27   : > { %v1043_v56 = vunpack.c.l.b16 %v962_v36  ;;  %v564_v58 = vmax.f32 %v510_v41, 0.0  ;;  %v932_v59 = vsel %vm671_vm0, %v563_v42, 0.0  ;;  %v528_v60 = vmax.f32 %v474_v43, 0.0 }
  0x28   : > { %v975_v63 = vpack.c.bf16 %v552_v46, %v552_v46  ;;  %v896_v0 = vsel %vm671_vm0, %v527_v47, 0.0  ;;  %v431_v2 = vmul.f32 %v3886_v4, %v3548_v48  ;;  %v3596_v3 = vunpack.c.l.bf16 %v3709_v53  ;;  %v3458_v48 = vld [vmem:[%s4986_s1 + $0x60] sm:$0xff] }
  0x29   : > { %3749 = vmatpush.bf16.msra.mxu1 %v3446_v21  ;;  %3750 = vmatpush.bf16.msra.mxu2 %v3446_v21  ;;  %v974_v5 = vpack.c.bf16 %v920_v55, %v920_v55  ;;  %v432_v9 = vmul.f32 %v3886_v4, %v3549_v51  ;;  %v3573_v10 = vunpack.c.h.bf16 %v3982_v39  ;;  %v443_v12 = vmul.f32 %v3886_v4, %v3572_v52  ;;  %v3473_v55 = vld [vmem:[%s4986_s1 + $0xd8] sm:$0xff] }
  0x2a   : > { %3751 = vmatpush.bf16.msra.mxu3 %v3446_v21  ;;  %2058 = vmatpush.bf16.msra.mxu0 %v3446_v21  ;;  %v986_v13 = vpack.c.bf16 %v932_v59, %v932_v59  ;;  %v3597_v15 = vunpack.c.h.bf16 %v3709_v53  ;;  %v455_v16 = vmul.f32 %v3886_v4, %v3596_v3  ;;  %v3524_v17 = vunpack.c.l.bf16 %v3691_v61  ;;  %v3464_v3 = vld [vmem:[%s4986_s1 + $0x90] sm:$0xff] }
  0x2b   : > { %v987_v18 = vpack.c.bf16 %v564_v58, %v564_v58  ;;  %v950_v19 = vpack.c.bf16 %v896_v0, %v896_v0  ;;  %v951_v20 = vpack.c.bf16 %v528_v60, %v528_v60  ;;  %v3525_v21 = vunpack.c.h.bf16 %v3691_v61  ;;  %v4071_v61 = vld [vmem:[%s3881_s10 + $0x50] sm:$0xff]  }
  0x2c   : > { %2079 = vmatmul.bf16.vlgmr.msra.gmra.mxu1 %v3977_v34  ;;  %2099 = vmatmul.bf16.vlgmr.msra.gmra.mxu2 %v3979_v35  ;;  %v1044_v23 = vunpack.c.l.b16 %v963_v54  ;;  %v1052_v24 = vunpack.c.l.b16 %v975_v63  ;;  %v488_v27 = vadd.f32 %v3896_v11, %v431_v2  ;;  %v489_v33 = vadd.f32 %v3896_v11, %v432_v9  ;;  %v3465_v54 = vld [vmem:[%s4986_s1 + $0x98] sm:$0xff] }
  0x2d   : > { %2229 = vmatpush.bf16.msrb.mxu2 %v3469_v28  ;;  %2119 = vmatmul.bf16.vlgmr.msra.gmra.mxu3 %v3984_v40  ;;  %v419_v28 = vmul.f32 %v3886_v4, %v3524_v17  ;;  %v444_v36 = vmul.f32 %v3886_v4, %v3573_v10  ;;  %v500_v37 = vadd.f32 %v3896_v11, %v443_v12  ;;  %v1059_v39 = vunpack.c.l.b16 %v986_v13  ;;  %v3457_v2 = vld [vmem:[%s4986_s1 + $0x58] sm:$0xff]  ;;  %v3472_v12 = vld [vmem:[%s4986_s1 + $0xd0] sm:$0xff] }
  0x2e   : > { %2318 = vmatpush.bf16.msrb.mxu3 %v3477_v30  ;;  %2059 = vmatmul.bf16.vlgmr.msra.gmra.mxu0 %v3970_v29  ;;  %v1051_v30 = vunpack.c.l.b16 %v974_v5  ;;  %v456_v41 = vmul.f32 %v3886_v4, %v3597_v15  ;;  %v512_v42 = vadd.f32 %v3896_v11, %v455_v16  ;;  %v420_v43 = vmul.f32 %v3886_v4, %v3525_v21  ;;  %v3481_v5 = vld [vmem:[%s4986_s1 + $0x118] sm:$0xff]  ;;  %v3710_v15 = vld [vmem:[%s3881_s10 + $0xb0] sm:$0xff]   ;;  %v4099_v16 = vld [vmem:[%s3881_s10 + $0x20] sm:$0xff]  }
  0x2f   : > { %2140 = vmatpush.bf16.msrb.mxu1 %v3461_v44  ;;  %2407 = vmatpush.bf16.msrb.mxu0 %v3485_v45  ;;  %v1060_v44 = vunpack.c.l.b16 %v987_v18  ;;  %v1035_v45 = vunpack.c.l.b16 %v950_v19  ;;  %v1036_v46 = vunpack.c.l.b16 %v951_v20  ;;  %v476_v47 = vadd.f32 %v3896_v11, %v419_v28  ;;  %v4106_v20 = vld [vmem:[%s3881_s10 + $0x58] sm:$0xff]   ;;  %v3456_v28 = vld [vmem:[%s4986_s1 + $0x50] sm:$0xff] }
  0x30   : > { %v542_v51 = vmax.f32 %v488_v27, 0.0  ;;  %v501_v52 = vadd.f32 %v3896_v11, %v444_v36  ;;  %v554_v53 = vmax.f32 %v500_v37, 0.0  ;;  %v4066_v58 = vpack.c.b16 %v1052_v24, %v1051_v30 }
  0x31   : > { %2230 = vmatpush.bf16.msrb.mxu2 %v3468_v49  ;;  %v3482_v49 = vld [vmem:[%s4986_s1 + $0x120] sm:$0xff]  ;;  %v566_v59 = vmax.f32 %v512_v42, 0.0  ;;  %v477_v60 = vadd.f32 %v3896_v11, %v420_v43  ;;  %v4075_v63 = vpack.c.b16 %v1036_v46, %v1035_v45  ;;  %v543_v0 = vmax.f32 %v489_v33, 0.0  ;;  %v4122_v33 = vld [vmem:[%s3881_s10 + $0x28] sm:$0xff]  }
  0x32   : > { %2319 = vmatpush.bf16.msrb.mxu3 %v3476_v50  ;;  %v4057_v50 = vpack.c.b16 %v1044_v23, %v1043_v56  ;;  %v513_v56 = vadd.f32 %v3896_v11, %v456_v41  ;;  %v555_v9 = vmax.f32 %v501_v52, 0.0  ;;  %v923_v10 = vsel %vm671_vm0, %v554_v53, 0.0  ;;  %v3463_v42 = vld [vmem:[%s4986_s1 + $0x88] sm:$0xff] }
  0x33   : > { %2141 = vmatpush.bf16.msrb.mxu1 %v3460_v62  ;;  %2408 = vmatpush.bf16.msrb.mxu0 %v3484_v1  ;;  %v4073_v62 = vpack.c.b16 %v1060_v44, %v1059_v39  ;;  %v530_v1 = vmax.f32 %v476_v47, 0.0  ;;  %v3553_v13 = vunpack.c.h.bf16 %v4071_v61  ;;  %v935_v18 = vsel %vm671_vm0, %v566_v59, 0.0  ;;  %v3471_v43 = vld [vmem:[%s4986_s1 + $0xc8] sm:$0xff] }
  0x34   : > { %5021 = vst [vmem:[#allocation5_spill] sm:$0xff] %v4057_v50  ;;  %v567_v17 = vmax.f32 %v513_v56, 0.0  ;;  %v531_v19 = vmax.f32 %v477_v60, 0.0  ;;  %v966_v21 = vpack.c.bf16 %v543_v0, %v543_v0  ;;  %v977_v27 = vpack.c.bf16 %v923_v10, %v923_v10  ;;  %v3455_v60 = vld [vmem:[%s4986_s1 + $0x48] sm:$0xff] }
  0x35   : > { %2231 = vmatpush.bf16.msrb.mxu2 %v3467_v7  ;;  %v4087_v7 = vld [vmem:[%s3881_s10 + $0x80] sm:$0xff]   ;;  %v899_v23 = vsel %vm671_vm0, %v530_v1, 0.0  ;;  %v3601_v30 = vunpack.c.h.bf16 %v3710_v15  ;;  %v978_v36 = vpack.c.bf16 %v555_v9, %v555_v9  ;;  %v989_v37 = vpack.c.bf16 %v935_v18, %v935_v18  ;;  %v3479_v15 = vld [vmem:[%s4986_s1 + $0x108] sm:$0xff] }
  0x36   : > { %2320 = vmatpush.bf16.msrb.mxu3 %v3475_v8  ;;  %v911_v8 = vsel %vm671_vm0, %v542_v51, 0.0  ;;  %v3577_v24 = vunpack.c.h.bf16 %v4087_v7  ;;  %v3556_v39 = vunpack.c.l.bf16 %v4106_v20  ;;  %v434_v41 = vmul.f32 %v3886_v4, %v3553_v13 }
  0x37   : > { %2142 = vmatpush.bf16.msrb.mxu1 %v3459_v25  ;;  %2409 = vmatpush.bf16.msrb.mxu0 %v3483_v26  ;;  %v4114_v25 = vld [vmem:[%s3881_s10 + $0x88] sm:$0xff]   ;;  %v965_v26 = vpack.c.bf16 %v911_v8, %v911_v8  ;;  %v990_v44 = vpack.c.bf16 %v567_v17, %v567_v17  ;;  %v953_v45 = vpack.c.bf16 %v899_v23, %v899_v23  ;;  %v3532_v53 = vunpack.c.l.bf16 %v4122_v33  ;;  %v3470_v8 = vld [vmem:[%s4986_s1 + $0xc0] sm:$0xff] }
  0x38   : > { %v954_v46 = vpack.c.bf16 %v531_v19, %v531_v19  ;;  %v3580_v47 = vunpack.c.l.bf16 %v4114_v25  ;;  %v446_v51 = vmul.f32 %v3886_v4, %v3577_v24  ;;  %v458_v56 = vmul.f32 %v3886_v4, %v3601_v30 }
  0x39   : > { %2232 = vmatpush.bf16.msrb.mxu2 %v3466_v31  ;;  %v3711_v31 = vld [vmem:[%s3881_s10 + $0xb8] sm:$0xff]   ;;  %v1054_v0 = vunpack.c.l.b16 %v978_v36  ;;  %v1061_v1 = vunpack.c.l.b16 %v989_v37  ;;  %v1062_v9 = vunpack.c.l.b16 %v990_v44  ;;  %v1037_v10 = vunpack.c.l.b16 %v953_v45  ;;  %v3478_v45 = vld [vmem:[%s4986_s1 + $0x100] sm:$0xff] }
  0x3a   : > { %2321 = vmatpush.bf16.msrb.mxu3 %v3474_v32  ;;  %v3529_v32 = vunpack.c.h.bf16 %v4099_v16  ;;  %v3604_v52 = vunpack.c.l.bf16 %v3711_v31  ;;  %v447_v13 = vmul.f32 %v3886_v4, %v3580_v47  ;;  %v503_v17 = vadd.f32 %v3896_v11, %v446_v51 }
  0x3b   : > { %2143 = vmatpush.bf16.msrb.mxu1 %v3458_v48  ;;  %2410 = vmatpush.bf16.msrb.mxu0 %v3482_v49  ;;  %v3480_v48 = vld [vmem:[%s4986_s1 + $0x110] sm:$0xff]  ;;  %v1046_v49 = vunpack.c.l.b16 %v966_v21  ;;  %v423_v19 = vmul.f32 %v3886_v4, %v3532_v53  ;;  %v3521_v21 = vunpack.c.h.bf16 %v3945_v57  ;;  %v515_v23 = vadd.f32 %v3896_v11, %v458_v56  ;;  %v3509_v56 = vld [vmem:[%s4986_s1 + $0x1f8] sm:$0xff] }
  0x3c   : > { %2084 = vmatmul.bf16.gmra.mxu1 %v4057_v50  ;;  %2104 = vmatmul.bf16.gmra.mxu2 %v4066_v58  ;;  %v422_v59 = vmul.f32 %v3886_v4, %v3529_v32  ;;  %v459_v18 = vmul.f32 %v3886_v4, %v3604_v52  ;;  %v4170_v57 = vpack.c.b16 %v1062_v9, %v1061_v1  ;;  %v4186_v51 = vadd.s32 16, %v3889_v6  ;;  %v3517_v1 = vld [vmem:[%s4986_s1 + $0x238] sm:$0xff] }
  0x3d   : > { %2233 = vmatpush.bf16.msrb.mxu2 %v3465_v54  ;;  %2124 = vmatmul.bf16.gmra.mxu3 %v4073_v62  ;;  %v1045_v54 = vunpack.c.l.b16 %v965_v26  ;;  %v3454_v26 = vld [vmem:[%s4986_s1 + $0x40] sm:$0xff]  ;;  %v418_v30 = vmul.f32 %v3886_v4, %v3521_v21  ;;  %v504_v36 = vadd.f32 %v3896_v11, %v447_v13 }
  0x3e   : > { %2322 = vmatpush.bf16.msrb.mxu3 %v3473_v55  ;;  %2064 = vmatmul.bf16.gmra.mxu0 %v4075_v63  ;;  %v1053_v55 = vunpack.c.l.b16 %v977_v27  ;;  %v479_v24 = vadd.f32 %v3896_v11, %v422_v59  ;;  %v3493_v59 = vld [vmem:[%s4986_s1 + $0x178] sm:$0xff]  ;;  %vm730_vm1 = vcmp.le.s32.totalorder %v4186_v51, 16 }
  0x3f   : > { %2144 = vmatpush.bf16.msrb.mxu1 %v3457_v2  ;;  %2411 = vmatpush.bf16.msrb.mxu0 %v3481_v5  ;;  %v435_v2 = vmul.f32 %v3886_v4, %v3556_v39  ;;  %v3462_v5 = vld [vmem:[%s4986_s1 + $0x80] sm:$0xff]  ;;  %v4164_v27 = vpack.c.b16 %v1046_v49, %v1045_v54  ;;  %v557_v39 = vmax.f32 %v503_v17, 0.0  ;;  %v475_v47 = vadd.f32 %v3896_v11, %v418_v30 }
  0x40   : > { %v4168_v31 = vpack.c.b16 %v1054_v0, %v1053_v55  ;;  %v533_v44 = vmax.f32 %v479_v24, 0.0  ;;  %v558_v49 = vmax.f32 %v504_v36, 0.0  ;;  %v3501_v55 = vld [vmem:[%s4986_s1 + $0x1b8] sm:$0xff] }
  0x41   : > { %2234 = vmatpush.bf16.msrb.mxu2 %v3464_v3  ;;  %v491_v3 = vadd.f32 %v3896_v11, %v434_v41  ;;  %5022 = vst [vmem:[#allocation6_spill] sm:$0xff] %v4164_v27  ;;  %v516_v41 = vadd.f32 %v3896_v11, %v459_v18  ;;  %v926_v52 = vsel %vm671_vm0, %v557_v39, 0.0  ;;  %v3528_v18 = vunpack.c.l.bf16 %v4099_v16 }
  0x42   : > { %2323 = vmatpush.bf16.msrb.mxu3 %v3472_v12  ;;  %v1038_v12 = vunpack.c.l.b16 %v954_v46  ;;  %v902_v0 = vsel %vm671_vm0, %v533_v44, 0.0  ;;  %v981_v9 = vpack.c.bf16 %v558_v49, %v558_v49 }
  0x43   : > { %2145 = vmatpush.bf16.msrb.mxu1 %v3456_v28  ;;  %2412 = vmatpush.bf16.msrb.mxu0 %v3480_v48  ;;  %v492_v28 = vadd.f32 %v3896_v11, %v435_v2  ;;  %v545_v32 = vmax.f32 %v491_v3, 0.0  ;;  %v570_v53 = vmax.f32 %v516_v41, 0.0  ;;  %v529_v3 = vmax.f32 %v475_v47, 0.0 }
  0x44   : > { %v4173_v37 = vpack.c.b16 %v1038_v12, %v1037_v10  ;;  %v956_v13 = vpack.c.bf16 %v902_v0, %v902_v0  ;;  %v1056_v24 = vunpack.c.l.b16 %v981_v9  ;;  %v421_v39 = vmul.f32 %v3886_v4, %v3528_v18 }
  0x45   : > { %2235 = vmatpush.bf16.msrb.mxu2 %v3463_v42  ;;  %v480_v42 = vadd.f32 %v3896_v11, %v423_v19  ;;  %v546_v46 = vmax.f32 %v492_v28, 0.0  ;;  %v914_v48 = vsel %vm671_vm0, %v545_v32, 0.0  ;;  %v993_v12 = vpack.c.bf16 %v570_v53, %v570_v53 }
  0x46   : > { %2324 = vmatpush.bf16.msrb.mxu3 %v3471_v43  ;;  %v569_v43 = vmax.f32 %v515_v23, 0.0  ;;  %v898_v17 = vsel %vm730_vm1, %v529_v3, 0.0  ;;  %v1039_v30 = vunpack.c.l.b16 %v956_v13 }
  0x47   : > { %2146 = vmatpush.bf16.msrb.mxu1 %v3455_v60  ;;  %2413 = vmatpush.bf16.msrb.mxu0 %v3479_v15  ;;  %v534_v54 = vmax.f32 %v480_v42, 0.0  ;;  %v969_v2 = vpack.c.bf16 %v546_v46, %v546_v46  ;;  %v1064_v28 = vunpack.c.l.b16 %v993_v12  ;;  %v952_v36 = vpack.c.bf16 %v898_v17, %v898_v17  ;;  %v3492_v17 = vld [vmem:[%s4986_s1 + $0x170] sm:$0xff] }
  0x48   : > { %v938_v60 = vsel %vm671_vm0, %v569_v43, 0.0  ;;  %v1149_v46 = vshll.u32 %v3970_v29, 16 }
  0x49   : > { %2236 = vmatpush.bf16.msrb.mxu2 %v3462_v5  ;;  %v968_v5 = vpack.c.bf16 %v914_v48, %v914_v48  ;;  %v992_v10 = vpack.c.bf16 %v938_v60, %v938_v60  ;;  %v957_v15 = vpack.c.bf16 %v534_v54, %v534_v54  ;;  %v1048_v21 = vunpack.c.l.b16 %v969_v2 }
  0x4a   : > { %2325 = vmatpush.bf16.msrb.mxu3 %v3470_v8  ;;  %v980_v8 = vpack.c.bf16 %v926_v52, %v926_v52  ;;  %v1114_v16 = vunpack.c.l.b16 %v952_v36  ;;  %v1161_v48 = vshll.u32 %v4075_v63, 16  ;;  %v1147_v52 = vshrl.u32 %v3970_v29, 16 }
  0x4b   : > { %2147 = vmatpush.bf16.msrb.mxu1 %v3454_v26  ;;  %2414 = vmatpush.bf16.msrb.mxu0 %v3478_v45  ;;  %v1047_v19 = vunpack.c.l.b16 %v968_v5  ;;  %v1063_v26 = vunpack.c.l.b16 %v992_v10  ;;  %v1040_v32 = vunpack.c.l.b16 %v957_v15  ;;  %v478_v45 = vadd.f32 %v3896_v11, %v421_v39  ;;  %v3508_v15 = vld [vmem:[%s4986_s1 + $0x1f0] sm:$0xff] }
  0x4c   : > { %2089 = vmatmul.bf16.gmra.mxu1 %v4164_v27  ;;  %2109 = vmatmul.bf16.gmra.mxu2 %v4168_v31  ;;  %v1055_v23 = vunpack.c.l.b16 %v980_v8  ;;  %v1130_v47 = vpack.c.b16 %v1114_v16, %v1114_v16  ;;  %v1151_v53 = vrot.slane %v1149_v46, 1  ;;  %v1159_v54 = vshrl.u32 %v4075_v63, 16 }
  0x4d   : > { %2129 = vmatmul.bf16.gmra.mxu3 %v4170_v57  ;;  %2585 = vmatpush.bf16.msra.mxu2 %v3501_v55  ;;  %v4213_v41 = vpack.c.b16 %v1048_v21, %v1047_v19  ;;  %v4217_v43 = vpack.c.b16 %v1064_v28, %v1063_v26  ;;  %v4219_v44 = vpack.c.b16 %v1040_v32, %v1039_v30  ;;  %v532_v49 = vmax.f32 %v478_v45, 0.0  ;;  %v3516_v21 = vld [vmem:[%s4986_s1 + $0x230] sm:$0xff] }
  0x4e   : > { %2069 = vmatmul.bf16.gmra.mxu0 %v4173_v37  ;;  %2674 = vmatpush.bf16.msra.mxu3 %v3509_v56  ;;  %v4215_v42 = vpack.c.b16 %v1056_v24, %v1055_v23  ;;  %v1163_v55 = vrot.slane %v1161_v48, 1  ;;  %v1166_v56 = vshll.u32 %v1130_v47, 16  ;;  %v3533_v60 = vunpack.c.h.bf16 %v4122_v33  ;;  %v3500_v33 = vld [vmem:[%s4986_s1 + $0x1b0] sm:$0xff] }
  0x4f   : > { %2496 = vmatpush.bf16.msra.mxu1 %v3493_v59  ;;  %2763 = vmatpush.bf16.msra.mxu0 %v3517_v1  ;;  %5023 = vst [vmem:[#allocation7_spill] sm:$0xff] %v4213_v41  ;;  %v901_v59 = vsel %vm730_vm1, %v532_v49, 0.0  ;;  %v1152_v0 = vor.u32 %v1151_v53, %v1147_v52  ;;  %v4992_v8 = vrot.slane %v3970_v29, 1  ;;  %v1173_v19 = vshll.u32 %v4173_v37, 16 }
  0x50   : > { %v1164_v1 = vor.u32 %v1163_v55, %v1159_v54  ;;  %v1168_v2 = vrot.slane %v1166_v56, 1  ;;  %v955_v3 = vpack.c.bf16 %v901_v59, %v901_v59  ;;  %v424_v5 = vmul.f32 %v3886_v4, %v3533_v60 }
  0x51   : > { %v4236_v9 = vsel %vm1145_vm2, %v1152_v0, %v1151_v53  ;;  %2586 = vmatpush.bf16.msra.mxu2 %v3500_v33  ;;  %v1171_v24 = vshrl.u32 %v4173_v37, 16  ;;  %v1175_v26 = vrot.slane %v1173_v19, 1  ;;  %v3540_v32 = vunpack.c.l.bf16 %v3899_v14 }
  0x52   : > { %5024 = vst [vmem:[#allocation8_spill] sm:$0xff] %v4236_v9  ;;  %v1169_v10 = vsel %vm1145_vm2, %v1164_v1, %v1168_v2  ;;  %v1115_v12 = vunpack.c.l.b16 %v955_v3  ;;  %v481_v13 = vadd.f32 %v3896_v11, %v424_v5  ;;  %2675 = vmatpush.bf16.msra.mxu3 %v3508_v15  ;;  %v1358_v36 = vrot.slane %v4075_v63, 1 }
  0x53   : > { %2497 = vmatpush.bf16.msra.mxu1 %v3492_v17  ;;  %2764 = vmatpush.bf16.msra.mxu0 %v3516_v21  ;;  %v1359_v39 = vrot.slane %v1130_v47, 1  ;;  %v1176_v16 = vor.u32 %v1175_v26, %v1171_v24  ;;  %v427_v48 = vmul.f32 %v3886_v4, %v3540_v32  ;;  %v1183_v55 = vshrl.u32 %v4219_v44, 16  ;;  %v3491_v24 = vld [vmem:[%s4986_s1 + $0x168] sm:$0xff] }
  0x54   : > { %v1131_v18 = vpack.c.b16 %v1115_v12, %v1115_v12  ;;  %v535_v23 = vmax.f32 %v481_v13, 0.0  ;;  %v3545_v0 = vunpack.c.h.bf16 %v3909_v22  ;;  %v1361_v1 = vrot.slane %v4173_v37, 1  ;;  %v3499_v22 = vld [vmem:[%s4986_s1 + $0x1a8] sm:$0xff] }
  0x55   : > { %v4264_v49 = vsel %vm1354_vm3, %v1358_v36, %v1359_v39  ;;  %v484_v54 = vadd.f32 %v3896_v11, %v427_v48  ;;  %v1197_v21 = vshll.u32 %v3977_v34, 16  ;;  %2587 = vmatpush.bf16.msra.mxu2 %v3499_v22  ;;  %v1195_v26 = vshrl.u32 %v3977_v34, 16  ;;  %v3515_v36 = vld [vmem:[%s4986_s1 + $0x228] sm:$0xff] }
  0x56   : > { %v1178_v28 = vshll.u32 %v1131_v18, 16  ;;  %v904_v30 = vsel %vm730_vm1, %v535_v23, 0.0  ;;  %v1362_v2 = vrot.slane %v1131_v18, 1  ;;  %v430_v12 = vmul.f32 %v3886_v4, %v3545_v0  ;;  %v3507_v18 = vld [vmem:[%s4986_s1 + $0x1e8] sm:$0xff] }
  0x57   : > { %v958_v46 = vpack.c.bf16 %v904_v30, %v904_v30  ;;  %v538_v47 = vmax.f32 %v484_v54, 0.0  ;;  %2676 = vmatpush.bf16.msra.mxu3 %v3507_v18  ;;  %2498 = vmatpush.bf16.msra.mxu1 %v3491_v24  ;;  %v3552_v39 = vunpack.c.l.bf16 %v4071_v61 }
  0x58   : > { %v1180_v45 = vrot.slane %v1178_v28, 1  ;;  %v4281_v13 = vsel %vm1354_vm3, %v1361_v1, %v1362_v2  ;;  %v487_v17 = vadd.f32 %v3896_v11, %v430_v12  ;;  %v1199_v28 = vrot.slane %v1197_v21, 1  ;;  %2765 = vmatpush.bf16.msra.mxu0 %v3515_v36  ;;  %v4333_v12 = vld [vmem:[%s4987_s2] ss:$0 sm:$0xff] }
  0x59   : > { %v1116_v53 = vunpack.c.l.b16 %v958_v46  ;;  %v907_v60 = vsel %vm730_vm1, %v538_v47, 0.0  ;;  %v433_v54 = vmul.f32 %v3886_v4, %v3552_v39 }
  0x5a   : > { %v4267_v52 = vsel %vm1145_vm2, %v1176_v16, %v1180_v45  ;;  %v541_v23 = vmax.f32 %v487_v17, 0.0  ;;  %v1364_v16 = vrot.slane %v4219_v44, 1  ;;  %v1200_v46 = vor.u32 %v1199_v28, %v1195_v26 }
  0x5b   : > { %v1132_v14 = vpack.c.b16 %v1116_v53, %v1116_v53 }
  0x5c   : > { %2094 = vmatmul.bf16.gmra.mxu1 %v4213_v41  ;;  %2114 = vmatmul.bf16.gmra.mxu2 %v4215_v42  ;;  %v910_v32 = vsel %vm730_vm1, %v541_v23, 0.0 }
  0x5d   : > { %2134 = vmatmul.bf16.gmra.mxu3 %v4217_v43  ;;  %v1190_v59 = vshll.u32 %v1132_v14, 16  ;;  %v1365_v45 = vrot.slane %v1132_v14, 1  ;;  %v964_v53 = vpack.c.bf16 %v910_v32, %v910_v32  ;;  %v1209_v14 = vshll.u32 %v4057_v50, 16 }
  0x5e   : > { %2074 = vmatmul.bf16.gmra.mxu0 %v4219_v44 }
  0x5f   : > { %v1192_v5 = vrot.slane %v1190_v59, 1  ;;  %v1211_v0 = vrot.slane %v1209_v14, 1 }
  0x6c   : > { %2148 = vmatmul.bf16.vlgmr.msrb.gmra.mxu1 %v4236_v9  ;;  %2237 = vmatmul.bf16.vlgmr.msrb.gmra.mxu2 %v4992_v8 }
  0x6d   : > { %2326 = vmatmul.bf16.vlgmr.msrb.gmra.mxu3 %v4075_v63  ;;  %v1185_v63 = vshll.u32 %v4219_v44, 16 }
  0x6e   : > { %2415 = vmatmul.bf16.vlgmr.msrb.gmra.mxu0 %v1169_v10 }
  0x6f   : > { %v1187_v56 = vrot.slane %v1185_v63, 1  ;;  %v4311_v63 = vsel %vm1354_vm3, %v1364_v16, %v1365_v45 }
  0x71   : > { %v1188_v3 = vor.u32 %v1187_v56, %v1183_v55  ;;  %v1118_v55 = vunpack.c.l.b16 %v964_v53  ;;  %v490_v56 = vadd.f32 %v3896_v11, %v433_v54  ;;  %v3490_v53 = vld [vmem:[%s4986_s1 + $0x160] sm:$0xff] }
  0x72   : > { %2499 = vmatpush.bf16.msra.mxu1 %v3490_v53  ;;  %v1233_v53 = vshll.u32 %v4213_v41, 16 }
  0x73   : > { %v4284_v33 = vsel %vm1145_vm2, %v1188_v3, %v1192_v5  ;;  %v4321_v61 = vpack.c.b16 %v1118_v55, %v1118_v55  ;;  %v544_v59 = vmax.f32 %v490_v56, 0.0  ;;  %v3557_v3 = vunpack.c.h.bf16 %v4106_v20 }
  0x74   : > { %v1367_v5 = vrot.slane %v3977_v34, 1  ;;  %v1219_v56 = vshrl.u32 %v4164_v27, 16 }
  0x75   : > { %v1214_v1 = vshll.u32 %v4321_v61, 16  ;;  %v913_v2 = vsel %vm730_vm1, %v544_v59, 0.0  ;;  %v436_v18 = vmul.f32 %v3886_v4, %v3557_v3  ;;  %v3498_v4 = vld [vmem:[%s4986_s1 + $0x1a0] sm:$0xff]  ;;  %v1371_v3 = vrot.slane %v4321_v61, 1 }
  0x76   : > { %v967_v22 = vpack.c.bf16 %v913_v2, %v913_v2  ;;  %2588 = vmatpush.bf16.msra.mxu2 %v3498_v4  ;;  %v1370_v2 = vrot.slane %v4057_v50, 1 }
  0x77   : > { %v1216_v17 = vrot.slane %v1214_v1, 1  ;;  %v493_v28 = vadd.f32 %v3896_v11, %v436_v18  ;;  %v1221_v11 = vshll.u32 %v4164_v27, 16  ;;  %v3564_v1 = vunpack.c.l.bf16 %v3927_v38 }
  0x78   : > { %v1119_v26 = vunpack.c.l.b16 %v967_v22  ;;  %v4388_v22 = vld [vmem:[%s4988_s3] ss:$0 sm:$0xff] }
  0x79   : > { %v547_v39 = vmax.f32 %v493_v28, 0.0  ;;  %v1223_v14 = vrot.slane %v1221_v11, 1  ;;  %v439_v18 = vmul.f32 %v4388_v22, %v3564_v1  ;;  %v4398_v28 = vsel %vm1354_vm3, %v1370_v2, %v1371_v3 }
  0x7a   : > { %v4358_v32 = vpack.c.b16 %v1119_v26, %v1119_v26  ;;  %5030 = vst [vmem:[#allocation14_spill] sm:$0xff] %v4398_v28 }
  0x7c   : > { %2153 = vmatmul.bf16.gmra.mxu1 %v1169_v10  ;;  %2242 = vmatmul.bf16.gmra.mxu2 %v4264_v49  ;;  %v961_v10 = vpack.c.bf16 %v907_v60, %v907_v60  ;;  %v1207_v60 = vshrl.u32 %v4057_v50, 16  ;;  %v1226_v59 = vshll.u32 %v4358_v32, 16 }
  0x7d   : > { %2331 = vmatmul.bf16.gmra.mxu3 %v4173_v37 }
  0x7e   : > { %2420 = vmatmul.bf16.gmra.mxu0 %v4267_v52  ;;  %v1117_v15 = vunpack.c.l.b16 %v961_v10 }
  0x80   : > { %v1133_v19 = vpack.c.b16 %v1117_v15, %v1117_v15  ;;  %v1212_v15 = vor.u32 %v1211_v0, %v1207_v60  ;;  %v916_v60 = vsel %vm730_vm1, %v547_v39, 0.0  ;;  %v3514_v0 = vld [vmem:[%s4986_s1 + $0x220] sm:$0xff] }
  0x81   : > { %2766 = vmatpush.bf16.msra.mxu0 %v3514_v0  ;;  %v4411_v39 = vld [vmem:[%s4989_s4] ss:$0 sm:$0xff] }
  0x82   : > { %v1202_v30 = vshll.u32 %v1133_v19, 16  ;;  %v1368_v10 = vrot.slane %v1133_v19, 1  ;;  %v4345_v19 = vsel %vm1145_vm2, %v1212_v15, %v1216_v17  ;;  %v970_v15 = vpack.c.bf16 %v916_v60, %v916_v60 }
  0x83   : > { %5027 = vst [vmem:[#allocation11_spill] sm:$0xff] %v4345_v19 }
  0x84   : > { %v1204_v48 = vrot.slane %v1202_v30, 1  ;;  %v4337_v23 = vsel %vm1354_vm3, %v1367_v5, %v1368_v10  ;;  %v3506_v30 = vld [vmem:[%s4986_s1 + $0x1e0] sm:$0xff]  ;;  %v1224_v5 = vor.u32 %v1223_v14, %v1219_v56  ;;  %v1228_v10 = vrot.slane %v1226_v59, 1 }
  0x85   : > { %5026 = vst [vmem:[#allocation10_spill] sm:$0xff] %v4337_v23  ;;  %2677 = vmatpush.bf16.msra.mxu3 %v3506_v30 }
  0x86   : > { %v4314_v47 = vsel %vm1145_vm2, %v1200_v46, %v1204_v48  ;;  %v4406_v11 = vsel %vm1145_vm2, %v1224_v5, %v1228_v10  ;;  %v1231_v5 = vshrl.u32 %v4213_v41, 16  ;;  %v1235_v10 = vrot.slane %v1233_v53, 1 }
  0x87   : > { %5025 = vst [vmem:[#allocation9_spill] sm:$0xff] %v4314_v47 }
  0x88   : > { %5031 = vst [vmem:[#allocation15_spill] sm:$0xff] %v4406_v11 }
  0x8c   : > { %2158 = vmatmul.bf16.gmra.mxu1 %v4267_v52  ;;  %2247 = vmatmul.bf16.gmra.mxu2 %v4281_v13 }
  0x8d   : > { %2336 = vmatmul.bf16.gmra.mxu3 %v4219_v44 }
  0x8e   : > { %2425 = vmatmul.bf16.gmra.mxu0 %v4284_v33 }
  0x9c   : > { %2163 = vmatmul.bf16.gmra.mxu1 %v4284_v33  ;;  %2252 = vmatmul.bf16.gmra.mxu2 %v4311_v63 }
  0x9d   : > { %2341 = vmatmul.bf16.gmra.mxu3 %v3977_v34 }
  0x9e   : > { %2430 = vmatmul.bf16.gmra.mxu0 %v4314_v47 }
  0xa9   : > { %v2080_v21 = vpop.f32.mrf.mxu1 }
  0xaa   : > { %v4340_v24 = vadd.f32 %v4333_v12, %v2080_v21 }
  0xab   : > { %v4342_v20 = vpop.f32.mrf.mxu0 }
  0xac   : > { %2168 = vmatmul.bf16.gmra.mxu1 %v4314_v47  ;;  %2257 = vmatmul.bf16.gmra.mxu2 %v4337_v23 }
  0xad   : > { %2346 = vmatmul.bf16.gmra.mxu3 %v4057_v50  ;;  %v2061_v50 = vadd.f32 %v4333_v12, %v4342_v20 }
  0xae   : > { %2435 = vmatmul.bf16.gmra.mxu0 %v4345_v19 }
  0xaf   : > { %v2100_v36 = vpop.f32.mrf.mxu2 }
  0xb0   : > { %v4362_v16 = vadd.f32 %v4333_v12, %v2100_v36  ;;  %v2120_v45 = vpop.f32.mrf.mxu3  ;;  %v1120_v36 = vunpack.c.l.b16 %v970_v15 }
  0xb1   : > { %v4365_v46 = vadd.f32 %v4333_v12, %v2120_v45  ;;  %v2082_v48 = vpop.f32.mrf.mxu1  ;;  %v496_v45 = vadd.f32 %v4411_v39, %v439_v18  ;;  %v3783_v18 = vld [vmem:[%s3881_s10 + $0x70] sm:$0xff]  }
  0xb2   : > { %v4371_v54 = vadd.f32 %v4333_v12, %v2082_v48  ;;  %v4418_v48 = vpack.c.b16 %v1120_v36, %v1120_v36  ;;  %v1374_v36 = vrot.slane %v4358_v32, 1 }
  0xb3   : > { %5028 = vst [vmem:[#allocation12_spill] sm:$0xff] %v4365_v46  ;;  %v4373_v55 = vpop.f32.mrf.mxu0  ;;  %v550_v14 = vmax.f32 %v496_v45, 0.0  ;;  %v1236_v45 = vor.u32 %v1235_v10, %v1231_v5 }
  0xb4   : > { %v1238_v15 = vshll.u32 %v4418_v48, 16 }
  0xb7   : > { %v2102_v17 = vpop.f32.mrf.mxu2 }
  0xb8   : > { %v4392_v21 = vadd.f32 %v4333_v12, %v2102_v17  ;;  %v2122_v38 = vpop.f32.mrf.mxu3  ;;  %v919_v17 = vsel %vm730_vm1, %v550_v14, 0.0 }
  0xb9   : > { %v4395_v26 = vadd.f32 %v4333_v12, %v2122_v38  ;;  %v2085_v61 = vpop.f32.mrf.mxu1  ;;  %v3569_v38 = vunpack.c.h.bf16 %v3783_v18 }
  0xba   : > { %v4401_v4 = vadd.f32 %v4333_v12, %v2085_v61  ;;  %v1373_v61 = vrot.slane %v4164_v27, 1 }
  0xbb   : > { %5029 = vst [vmem:[#allocation13_spill] sm:$0xff] %v4395_v26  ;;  %v4403_v30 = vpop.f32.mrf.mxu0  ;;  %v442_v8 = vmul.f32 %v4388_v22, %v3569_v38  ;;  %v3505_v38 = vld [vmem:[%s4986_s1 + $0x1d8] sm:$0xff] }
  0xbc   : > { %2173 = vmatmul.bf16.gmra.mxu1 %v4345_v19  ;;  %2262 = vmatmul.bf16.gmra.mxu2 %v4398_v28  ;;  %v4447_v18 = vsel %vm1354_vm3, %v1373_v61, %v1374_v36  ;;  %v2066_v23 = vadd.f32 %v4333_v12, %v4403_v30 }
  0xbd   : > { %2351 = vmatmul.bf16.gmra.mxu3 %v4164_v27  ;;  %5034 = vst [vmem:[#allocation18_spill] sm:$0xff] %v4447_v18 }
  0xbe   : > { %2440 = vmatmul.bf16.gmra.mxu0 %v4406_v11  ;;  %2678 = vmatpush.bf16.msra.mxu3 %v3505_v38  ;;  %v3513_v38 = vld [vmem:[%s4986_s1 + $0x218] sm:$0xff] }
  0xbf   : > { %v2105_v56 = vpop.f32.mrf.mxu2  ;;  %2767 = vmatpush.bf16.msra.mxu0 %v3513_v38 }
  0xc0   : > { %v4422_v59 = vadd.f32 %v4333_v12, %v2105_v56  ;;  %v2125_v60 = vpop.f32.mrf.mxu3  ;;  %v1240_v56 = vrot.slane %v1238_v15, 1  ;;  %v499_v15 = vadd.f32 %v4411_v39, %v442_v8  ;;  %v1245_v8 = vshll.u32 %v3979_v35, 16 }
  0xc1   : > { %v4425_v0 = vadd.f32 %v4333_v12, %v2125_v60  ;;  %v2087_v1 = vpop.f32.mrf.mxu1  ;;  %v973_v60 = vpack.c.bf16 %v919_v17, %v919_v17  ;;  %v3497_v17 = vld [vmem:[%s4986_s1 + $0x198] sm:$0xff] }
  0xc2   : > { %v4428_v2 = vadd.f32 %v4333_v12, %v2087_v1  ;;  %v4455_v5 = vsel %vm1145_vm2, %v1236_v45, %v1240_v56  ;;  %2589 = vmatpush.bf16.msra.mxu2 %v3497_v17  ;;  %v553_v45 = vmax.f32 %v499_v15, 0.0  ;;  %v1247_v26 = vrot.slane %v1245_v8, 1  ;;  %v3489_v15 = vld [vmem:[%s4986_s1 + $0x158] sm:$0xff] }
  0xc3   : > { %5032 = vst [vmem:[#allocation16_spill] sm:$0xff] %v4425_v0  ;;  %v4430_v3 = vpop.f32.mrf.mxu0  ;;  %v1121_v10 = vunpack.c.l.b16 %v973_v60  ;;  %2500 = vmatpush.bf16.msra.mxu1 %v3489_v15  ;;  %v1377_v8 = vrot.slane %v4418_v48, 1 }
  0xc4   : > { %5035 = vst [vmem:[#allocation19_spill] sm:$0xff] %v4455_v5 }
  0xc5   : > { %v4468_v61 = vpack.c.b16 %v1121_v10, %v1121_v10 }
  0xc7   : > { %v2107_v1 = vpop.f32.mrf.mxu2  ;;  %v1250_v17 = vshll.u32 %v4468_v61, 16 }
  0xc8   : > { %v4441_v9 = vadd.f32 %v4333_v12, %v2107_v1  ;;  %v2127_v53 = vpop.f32.mrf.mxu3 }
  0xc9   : > { %v4444_v29 = vadd.f32 %v4333_v12, %v2127_v53  ;;  %v2090_v14 = vpop.f32.mrf.mxu1 }
  0xca   : > { %v4450_v0 = vadd.f32 %v4333_v12, %v2090_v14  ;;  %v1243_v14 = vshrl.u32 %v3979_v35, 16 }
  0xcb   : > { %5033 = vst [vmem:[#allocation17_spill] sm:$0xff] %v4444_v29  ;;  %v4452_v32 = vpop.f32.mrf.mxu0 }
  0xcc   : > { %2178 = vmatmul.bf16.gmra.mxu1 %v4406_v11  ;;  %2267 = vmatmul.bf16.gmra.mxu2 %v4447_v18  ;;  %v1252_v18 = vrot.slane %v1250_v17, 1 }
  0xcd   : > { %2356 = vmatmul.bf16.gmra.mxu3 %v4213_v41 }
  0xce   : > { %2445 = vmatmul.bf16.gmra.mxu0 %v4455_v5 }
  0xcf   : > { %v2110_v36 = vpop.f32.mrf.mxu2 }
  0xd0   : > { %v4472_v56 = vadd.f32 %v4333_v12, %v2110_v36  ;;  %v2130_v60 = vpop.f32.mrf.mxu3  ;;  %v3576_v36 = vunpack.c.l.bf16 %v4087_v7 }
  0xd1   : > { %v4475_v1 = vadd.f32 %v4333_v12, %v2130_v60  ;;  %v2092_v53 = vpop.f32.mrf.mxu1  ;;  %v922_v60 = vsel %vm730_vm1, %v553_v45, 0.0 }
  0xd2   : > { %v4479_v29 = vadd.f32 %v4333_v12, %v2092_v53  ;;  %v1376_v53 = vrot.slane %v4213_v41, 1  ;;  %v976_v11 = vpack.c.bf16 %v922_v60, %v922_v60  ;;  %v445_v27 = vmul.f32 %v4388_v22, %v3576_v36 }
  0xd3   : > { %5036 = vst [vmem:[#allocation20_spill] sm:$0xff] %v4475_v1  ;;  %v4481_v10 = vpop.f32.mrf.mxu0  ;;  %v1248_v1 = vor.u32 %v1247_v26, %v1243_v14 }
  0xd4   : > { %v4503_v15 = vsel %vm1354_vm3, %v1376_v53, %v1377_v8  ;;  %v1122_v14 = vunpack.c.l.b16 %v976_v11  ;;  %v1255_v53 = vshrl.u32 %v4066_v58, 16 }
  0xd5   : > { %5039 = vst [vmem:[#allocation23_spill] sm:$0xff] %v4503_v15  ;;  %v4511_v48 = vsel %vm1145_vm2, %v1248_v1, %v1252_v18 }
  0xd6   : > { %5040 = vst [vmem:[#allocation24_spill] sm:$0xff] %v4511_v48  ;;  %v4519_v17 = vpack.c.b16 %v1122_v14, %v1122_v14 }
  0xd7   : > { %v2112_v46 = vpop.f32.mrf.mxu2 }
  0xd8   : > { %v4497_v28 = vadd.f32 %v4333_v12, %v2112_v46  ;;  %v2132_v19 = vpop.f32.mrf.mxu3  ;;  %v502_v46 = vadd.f32 %v4411_v39, %v445_v27  ;;  %v1262_v14 = vshll.u32 %v4519_v17, 16 }
  0xd9   : > { %v4500_v7 = vadd.f32 %v4333_v12, %v2132_v19  ;;  %v2095_v45 = vpop.f32.mrf.mxu1  ;;  %v1257_v19 = vshll.u32 %v4066_v58, 16 }
  0xda   : > { %5037 = vst [vmem:[#allocation21_spill] sm:$0xff] %v4497_v28  ;;  %v4506_v38 = vadd.f32 %v4333_v12, %v2095_v45  ;;  %v556_v36 = vmax.f32 %v502_v46, 0.0  ;;  %v1264_v41 = vrot.slane %v1262_v14, 1 }
  0xdb   : > { %5038 = vst [vmem:[#allocation22_spill] sm:$0xff] %v4500_v7  ;;  %v4508_v26 = vpop.f32.mrf.mxu0  ;;  %v1259_v8 = vrot.slane %v1257_v19, 1 }
  0xdc   : > { %2183 = vmatmul.bf16.gmra.mxu1 %v4455_v5  ;;  %2272 = vmatmul.bf16.gmra.mxu2 %v4503_v15  ;;  %v925_v46 = vsel %vm730_vm1, %v556_v36, 0.0  ;;  %v1379_v15 = vrot.slane %v3979_v35, 1 }
  0xdd   : > { %2361 = vmatmul.bf16.gmra.mxu3 %v3979_v35  ;;  %v1260_v5 = vor.u32 %v1259_v8, %v1255_v53 }
  0xde   : > { %2450 = vmatmul.bf16.gmra.mxu0 %v4511_v48 }
  0xdf   : > { %v2115_v60 = vpop.f32.mrf.mxu2  ;;  %v4552_v14 = vsel %vm1145_vm2, %v1260_v5, %v1264_v41  ;;  %v3504_v41 = vld [vmem:[%s4986_s1 + $0x1d0] sm:$0xff] }
  0xe0   : > { %v4522_v18 = vadd.f32 %v4333_v12, %v2115_v60  ;;  %v2135_v11 = vpop.f32.mrf.mxu3  ;;  %v3581_v60 = vunpack.c.h.bf16 %v4114_v25  ;;  %2679 = vmatpush.bf16.msra.mxu3 %v3504_v41 }
  0xe1   : > { %v4525_v27 = vadd.f32 %v4333_v12, %v2135_v11  ;;  %v2097_v1 = vpop.f32.mrf.mxu1  ;;  %v1380_v11 = vrot.slane %v4468_v61, 1 }
  0xe2   : > { %5041 = vst [vmem:[#allocation25_spill] sm:$0xff] %v4522_v18  ;;  %v4529_v45 = vadd.f32 %v4333_v12, %v2097_v1  ;;  %v448_v19 = vmul.f32 %v4388_v22, %v3581_v60 }
  0xe3   : > { %5042 = vst [vmem:[#allocation26_spill] sm:$0xff] %v4525_v27  ;;  %v4531_v7 = vpop.f32.mrf.mxu0  ;;  %v979_v27 = vpack.c.bf16 %v925_v46, %v925_v46  ;;  %v4549_v35 = vsel %vm1354_vm3, %v1379_v15, %v1380_v11 }
  0xe4   : > { %5045 = vst [vmem:[#allocation29_spill] sm:$0xff] %v4549_v35  ;;  %v505_v46 = vadd.f32 %v4411_v39, %v448_v19 }
  0xe5   : > { %v1123_v61 = vunpack.c.l.b16 %v979_v27  ;;  %v2063_v27 = vadd.f32 %v4333_v12, %v4373_v55  ;;  %v3512_v55 = vld [vmem:[%s4986_s1 + $0x210] sm:$0xff] }
  0xe6   : > { %v559_v5 = vmax.f32 %v505_v46, 0.0  ;;  %2768 = vmatpush.bf16.msra.mxu0 %v3512_v55 }
  0xe7   : > { %v2117_v1 = vpop.f32.mrf.mxu2  ;;  %v4559_v20 = vpack.c.b16 %v1123_v61, %v1123_v61 }
  0xe8   : > { %v4543_v18 = vadd.f32 %v4333_v12, %v2117_v1  ;;  %v2137_v28 = vpop.f32.mrf.mxu3  ;;  %v1267_v1 = vshrl.u32 %v4168_v31, 16  ;;  %v928_v46 = vsel %vm730_vm1, %v559_v5, 0.0 }
  0xe9   : > { %v4546_v36 = vadd.f32 %v4333_v12, %v2137_v28  ;;  %v2149_v25 = vpop.f32.mrf.mxu1  ;;  %v1269_v28 = vshll.u32 %v4168_v31, 16  ;;  %v1274_v61 = vshll.u32 %v4559_v20, 16 }
  0xea   : > { %5043 = vst [vmem:[#allocation27_spill] sm:$0xff] %v4543_v18  ;;  %v2150_v53 = vadd.f32 %v2149_v25, %v2061_v50  ;;  %v3496_v50 = vld [vmem:[%s4986_s1 + $0x190] sm:$0xff] }
  0xeb   : > { %5044 = vst [vmem:[#allocation28_spill] sm:$0xff] %v4546_v36  ;;  %v2416_v8 = vpop.f32.mrf.mxu0  ;;  %2590 = vmatpush.bf16.msra.mxu2 %v3496_v50  ;;  %v1271_v25 = vrot.slane %v1269_v28, 1  ;;  %v3488_v50 = vld [vmem:[%s4986_s1 + $0x150] sm:$0xff] }
  0xec   : > { %2188 = vmatmul.bf16.gmra.mxu1 %v4511_v48  ;;  %2277 = vmatmul.bf16.gmra.mxu2 %v4549_v35 }
  0xed   : > { %2366 = vmatmul.bf16.gmra.mxu3 %v4066_v58  ;;  %2501 = vmatpush.bf16.msra.mxu1 %v3488_v50  ;;  %v1272_v5 = vor.u32 %v1271_v25, %v1267_v1 }
  0xee   : > { %2455 = vmatmul.bf16.gmra.mxu0 %v4552_v14 }
  0xef   : > { %v2238_v15 = vpop.f32.mrf.mxu2 }
  0xf0   : > { %v2239_v60 = vadd.f32 %v2238_v15, %v2150_v53  ;;  %v2327_v11 = vpop.f32.mrf.mxu3  ;;  %v3784_v53 = vld [vmem:[%s3881_s10 + $0x98] sm:$0xff]   ;;  %v1382_v15 = vrot.slane %v4066_v58, 1 }
  0xf1   : > { %v2151_v19 = vpop.f32.mrf.mxu1  ;;  %v3588_v41 = vunpack.c.l.bf16 %v3784_v53 }
  0xf2   : > { %v2328_v36 = vadd.f32 %v2327_v11, %v2239_v60  ;;  %v2152_v35 = vadd.f32 %v2151_v19, %v2063_v27  ;;  %v1383_v27 = vrot.slane %v4519_v17, 1  ;;  %v982_v60 = vpack.c.bf16 %v928_v46, %v928_v46 }
  0xf3   : > { %v2418_v48 = vpop.f32.mrf.mxu0  ;;  %v1276_v11 = vrot.slane %v1274_v61, 1  ;;  %v451_v19 = vmul.f32 %v4388_v22, %v3588_v41 }
  0xf4   : > { %v4581_v28 = vadd.f32 %v2416_v8, %v2328_v36  ;;  %v4589_v50 = vsel %vm1354_vm3, %v1382_v15, %v1383_v27  ;;  %v1124_v36 = vunpack.c.l.b16 %v982_v60 }
  0xf5   : > { %v4592_v17 = vsel %vm1145_vm2, %v1272_v5, %v1276_v11  ;;  %v508_v1 = vadd.f32 %v4411_v39, %v451_v19  ;;  %v3785_v19 = vld [vmem:[%s3881_s10 + $0xa0] sm:$0xff]  }
  0xf6   : > { %5046 = vst [vmem:[#allocation30_spill] sm:$0xff] %v4581_v28 }
  0xf7   : > { %v2240_v18 = vpop.f32.mrf.mxu2 }
  0xf8   : > { %v2241_v47 = vadd.f32 %v2240_v18, %v2152_v35  ;;  %v2329_v34 = vpop.f32.mrf.mxu3  ;;  %v4601_v35 = vpack.c.b16 %v1124_v36, %v1124_v36  ;;  %v2068_v18 = vadd.f32 %v4333_v12, %v4430_v3  ;;  %v1385_v3 = vrot.slane %v4168_v31, 1 }
  0xf9   : > { %v2154_v53 = vpop.f32.mrf.mxu1 }
  0xfa   : > { %v2330_v8 = vadd.f32 %v2329_v34, %v2241_v47  ;;  %v2155_v55 = vadd.f32 %v2154_v53, %v2066_v23  ;;  %v1281_v34 = vshll.u32 %v4215_v42, 16  ;;  %v562_v47 = vmax.f32 %v508_v1, 0.0 }
  0xfb   : > { %v2421_v28 = vpop.f32.mrf.mxu0  ;;  %v1286_v15 = vshll.u32 %v4601_v35, 16  ;;  %v3593_v53 = vunpack.c.h.bf16 %v3785_v19 }
  0xfc   : > { %2193 = vmatmul.bf16.gmra.mxu1 %v4552_v14  ;;  %2282 = vmatmul.bf16.gmra.mxu2 %v4589_v50  ;;  %v4597_v30 = vadd.f32 %v2418_v48, %v2330_v8  ;;  %v1279_v48 = vshrl.u32 %v4215_v42, 16  ;;  %v1283_v41 = vrot.slane %v1281_v34, 1  ;;  %v931_v11 = vsel %vm730_vm1, %v562_v47, 0.0 }
  0xfd   : > { %2371 = vmatmul.bf16.gmra.mxu3 %v4168_v31  ;;  %v1386_v8 = vrot.slane %v4559_v20, 1  ;;  %v454_v34 = vmul.f32 %v4388_v22, %v3593_v53 }
  0xfe   : > { %5047 = vst [vmem:[#allocation31_spill] sm:$0xff] %v4597_v30  ;;  %2460 = vmatmul.bf16.gmra.mxu0 %v4592_v17  ;;  %v1284_v1 = vor.u32 %v1283_v41, %v1279_v48  ;;  %v1293_v41 = vshll.u32 %v3984_v40, 16 }
  0xff   : > { %v2243_v23 = vpop.f32.mrf.mxu2  ;;  %v511_v48 = vadd.f32 %v4411_v39, %v454_v34 }
 0x100   : > { %v2244_v25 = vadd.f32 %v2243_v23, %v2155_v55  ;;  %v2332_v61 = vpop.f32.mrf.mxu3  ;;  %v985_v55 = vpack.c.bf16 %v931_v11, %v931_v11  ;;  %v1288_v23 = vrot.slane %v1286_v15, 1  ;;  %v3495_v15 = vld [vmem:[%s4986_s1 + $0x188] sm:$0xff] }
 0x101   : > { %v2156_v46 = vpop.f32.mrf.mxu1  ;;  %v565_v11 = vmax.f32 %v511_v48, 0.0  ;;  %2591 = vmatpush.bf16.msra.mxu2 %v3495_v15  ;;  %v1389_v15 = vrot.slane %v4601_v35, 1 }
 0x102   : > { %v2333_v27 = vadd.f32 %v2332_v61, %v2244_v25  ;;  %v2157_v60 = vadd.f32 %v2156_v46, %v2068_v18  ;;  %v2071_v18 = vadd.f32 %v4333_v12, %v4452_v32  ;;  %v4619_v46 = vsel %vm1354_vm3, %v1385_v3, %v1386_v8 }
 0x103   : > { %v2423_v5 = vpop.f32.mrf.mxu0  ;;  %v4622_v20 = vsel %vm1145_vm2, %v1284_v1, %v1288_v23  ;;  %v1291_v1 = vshrl.u32 %v3984_v40, 16  ;;  %v1295_v23 = vrot.slane %v1293_v41, 1  ;;  %v1388_v41 = vrot.slane %v4215_v42, 1 }
 0x104   : > { %v4611_v36 = vadd.f32 %v2421_v28, %v2333_v27  ;;  %v1125_v28 = vunpack.c.l.b16 %v985_v55 }
 0x106   : > { %5048 = vst [vmem:[#allocation32_spill] sm:$0xff] %v4611_v36 }
 0x107   : > { %v2245_v30 = vpop.f32.mrf.mxu2 }
 0x108   : > { %v2246_v25 = vadd.f32 %v2245_v30, %v2157_v60  ;;  %v2334_v61 = vpop.f32.mrf.mxu3  ;;  %v4631_v30 = vpack.c.b16 %v1125_v28, %v1125_v28  ;;  %v3503_v60 = vld [vmem:[%s4986_s1 + $0x1c8] sm:$0xff] }
 0x109   : > { %v2159_v47 = vpop.f32.mrf.mxu1  ;;  %2680 = vmatpush.bf16.msra.mxu3 %v3503_v60  ;;  %v3487_v28 = vld [vmem:[%s4986_s1 + $0x148] sm:$0xff] }
 0x10a   : > { %v2335_v27 = vadd.f32 %v2334_v61, %v2246_v25  ;;  %v2160_v19 = vadd.f32 %v2159_v47, %v2071_v18  ;;  %v1298_v34 = vshll.u32 %v4631_v30, 16  ;;  %v934_v47 = vsel %vm730_vm1, %v565_v11, 0.0  ;;  %2502 = vmatpush.bf16.msra.mxu1 %v3487_v28 }
 0x10b   : > { %v2426_v36 = vpop.f32.mrf.mxu0  ;;  %v988_v60 = vpack.c.bf16 %v934_v47, %v934_v47  ;;  %v1296_v11 = vor.u32 %v1295_v23, %v1291_v1  ;;  %v4661_v28 = vsel %vm1354_vm3, %v1388_v41, %v1389_v15  ;;  %v2078_v47 = vadd.f32 %v4333_v12, %v4531_v7 }
 0x10c   : > { %2198 = vmatmul.bf16.gmra.mxu1 %v4592_v17  ;;  %2287 = vmatmul.bf16.gmra.mxu2 %v4619_v46  ;;  %v4627_v32 = vadd.f32 %v2423_v5, %v2335_v27  ;;  %v2073_v5 = vadd.f32 %v4333_v12, %v4481_v10  ;;  %v3511_v10 = vld [vmem:[%s4986_s1 + $0x208] sm:$0xff]  ;;  %v3786_v27 = vld [vmem:[%s3881_s10 + $0xb0] sm:$0xff]   ;;  %v1392_v7 = vrot.slane %v4631_v30, 1 }
 0x10d   : > { %2376 = vmatmul.bf16.gmra.mxu3 %v4215_v42  ;;  %2769 = vmatpush.bf16.msra.mxu0 %v3511_v10 }
 0x10e   : > { %5049 = vst [vmem:[#allocation33_spill] sm:$0xff] %v4627_v32  ;;  %2465 = vmatmul.bf16.gmra.mxu0 %v4622_v20 }
 0x10f   : > { %v2248_v53 = vpop.f32.mrf.mxu2 }
 0x110   : > { %v2249_v3 = vadd.f32 %v2248_v53, %v2160_v19  ;;  %v2337_v8 = vpop.f32.mrf.mxu3  ;;  %v3600_v19 = vunpack.c.l.bf16 %v3786_v27  ;;  %v1300_v53 = vrot.slane %v1298_v34, 1 }
 0x111   : > { %v2161_v55 = vpop.f32.mrf.mxu1 }
 0x112   : > { %v2338_v18 = vadd.f32 %v2337_v8, %v2249_v3  ;;  %v2162_v25 = vadd.f32 %v2161_v55, %v2073_v5  ;;  %v457_v5 = vmul.f32 %v4388_v22, %v3600_v19  ;;  %v2076_v8 = vadd.f32 %v4333_v12, %v4508_v26 }
 0x113   : > { %v2428_v61 = vpop.f32.mrf.mxu0  ;;  %v4664_v35 = vsel %vm1145_vm2, %v1296_v11, %v1300_v53  ;;  %v1391_v12 = vrot.slane %v3984_v40, 1 }
 0x114   : > { %v4653_v48 = vadd.f32 %v2426_v36, %v2338_v18  ;;  %v1126_v36 = vunpack.c.l.b16 %v988_v60  ;;  %v514_v1 = vadd.f32 %v4411_v39, %v457_v5 }
 0x116   : > { %5050 = vst [vmem:[#allocation34_spill] sm:$0xff] %v4653_v48  ;;  %v4673_v23 = vpack.c.b16 %v1126_v36, %v1126_v36  ;;  %v568_v34 = vmax.f32 %v514_v1, 0.0 }
 0x117   : > { %v2250_v3 = vpop.f32.mrf.mxu2 }
 0x118   : > { %v2251_v55 = vadd.f32 %v2250_v3, %v2162_v25  ;;  %v2339_v32 = vpop.f32.mrf.mxu3  ;;  %v1310_v11 = vshll.u32 %v4673_v23, 16 }
 0x119   : > { %v2164_v27 = vpop.f32.mrf.mxu1 }
 0x11a   : > { %v2340_v18 = vadd.f32 %v2339_v32, %v2251_v55  ;;  %v2165_v10 = vadd.f32 %v2164_v27, %v2076_v8  ;;  %v1305_v32 = vshll.u32 %v4073_v62, 16  ;;  %v937_v8 = vsel %vm730_vm1, %v568_v34, 0.0  ;;  %v3787_v55 = vld [vmem:[%s3881_s10 + $0xb8] sm:$0xff]  }
 0x11b   : > { %v2431_v48 = vpop.f32.mrf.mxu0  ;;  %v3605_v27 = vunpack.c.h.bf16 %v3787_v55  ;;  %v1312_v1 = vrot.slane %v1310_v11, 1  ;;  %v4689_v34 = vsel %vm1354_vm3, %v1391_v12, %v1392_v7 }
 0x11c   : > { %2203 = vmatmul.bf16.gmra.mxu1 %v4622_v20  ;;  %2292 = vmatmul.bf16.gmra.mxu2 %v4661_v28  ;;  %v4669_v26 = vadd.f32 %v2428_v61, %v2340_v18  ;;  %v1303_v61 = vshrl.u32 %v4073_v62, 16  ;;  %v1307_v60 = vrot.slane %v1305_v32, 1  ;;  %v991_v18 = vpack.c.bf16 %v937_v8, %v937_v8  ;;  %5053 = vst [vmem:[#allocation37_spill] sm:$0xff] %v4689_v34  ;;  %v3494_v8 = vld [vmem:[%s4986_s1 + $0x180] sm:$0xff] }
 0x11d   : > { %2381 = vmatmul.bf16.gmra.mxu3 %v3984_v40  ;;  %v460_v32 = vmul.f32 %v4388_v22, %v3605_v27  ;;  %v3502_v27 = vld [vmem:[%s4986_s1 + $0x1c0] sm:$0xff]  ;;  %2592 = vmatpush.bf16.msra.mxu2 %v3494_v8 }
 0x11e   : > { %5051 = vst [vmem:[#allocation35_spill] sm:$0xff] %v4669_v26  ;;  %2470 = vmatmul.bf16.gmra.mxu0 %v4664_v35  ;;  %2681 = vmatpush.bf16.msra.mxu3 %v3502_v27  ;;  %v3486_v8 = vld [vmem:[%s4986_s1 + $0x140] sm:$0xff] }
 0x11f   : > { %v2253_v25 = vpop.f32.mrf.mxu2  ;;  %2503 = vmatpush.bf16.msra.mxu1 %v3486_v8 }
 0x120   : > { %v2254_v19 = vadd.f32 %v2253_v25, %v2165_v10  ;;  %v2342_v41 = vpop.f32.mrf.mxu3  ;;  %v1308_v10 = vor.u32 %v1307_v60, %v1303_v61  ;;  %v517_v61 = vadd.f32 %v4411_v39, %v460_v32  ;;  %v3712_v60 = vld [vmem:[%s3881_s10 + $0xc0] sm:$0xff]  }
 0x121   : > { %v2166_v15 = vpop.f32.mrf.mxu1  ;;  %v3609_v27 = vunpack.c.h.bf16 %v3712_v60 }
 0x122   : > { %v2343_v53 = vadd.f32 %v2342_v41, %v2254_v19  ;;  %v2167_v5 = vadd.f32 %v2166_v15, %v2078_v47  ;;  %v1127_v15 = vunpack.c.l.b16 %v991_v18  ;;  %v4693_v30 = vsel %vm1145_vm2, %v1308_v10, %v1312_v1  ;;  %v352_v1 = vld [vmem:[%s3881_s10 + $0xc8] sm:$0xf]  ;;  %s3445_s10 = sshll.u32 %s5098_s21, 7 }
 0x123   : > { %v2433_v3 = vpop.f32.mrf.mxu0  ;;  %v571_v12 = vmax.f32 %v517_v61, 0.0  ;;  %s4896_s8 = scalar_lea.vmem %s4990_s5, %s3445_s10 }
 0x124   : > { %v4683_v36 = vadd.f32 %v2431_v48, %v2343_v53 }
 0x125   : > { %v940_v61 = vsel %vm730_vm1, %v571_v12, 0.0  ;;  %v1395_v12 = vrot.slane %v4673_v23, 1 }
 0x126   : > { %5052 = vst [vmem:[#allocation36_spill] sm:$0xff] %v4683_v36  ;;  %v462_v36 = vmul.f32 %v4388_v22, %v3609_v27 }
 0x127   : > { %v2255_v25 = vpop.f32.mrf.mxu2 }
 0x128   : > { %v2256_v47 = vadd.f32 %v2255_v25, %v2167_v5  ;;  %v2344_v19 = vpop.f32.mrf.mxu3  ;;  %v4703_v5 = vpack.c.b16 %v1127_v15, %v1127_v15  ;;  %v1315_v25 = vshrl.u32 %v4170_v57, 16 }
 0x129   : > { %v2169_v41 = vpop.f32.mrf.mxu1 }
 0x12a   : > { %v2345_v48 = vadd.f32 %v2344_v19, %v2256_v47  ;;  %v2170_v53 = vadd.f32 %v2169_v41, %v4340_v24  ;;  %v1317_v24 = vshll.u32 %v4170_v57, 16  ;;  %v1322_v19 = vshll.u32 %v4703_v5, 16 }
 0x12b   : > { %v2436_v55 = vpop.f32.mrf.mxu0 }
 0x12c   : > { %2208 = vmatmul.bf16.gmra.mxu1 %v4664_v35  ;;  %2297 = vmatmul.bf16.gmra.mxu2 %v4689_v34  ;;  %v4699_v11 = vadd.f32 %v2433_v3, %v2345_v48  ;;  %v3608_v3 = vunpack.c.l.bf16 %v3712_v60  ;;  %v1319_v47 = vrot.slane %v1317_v24, 1 }
 0x12d   : > { %2386 = vmatmul.bf16.gmra.mxu3 %v4073_v62 }
 0x12e   : > { %5054 = vst [vmem:[#allocation38_spill] sm:$0xff] %v4699_v11  ;;  %2475 = vmatmul.bf16.gmra.mxu0 %v4693_v30  ;;  %v461_v24 = vmul.f32 %v4388_v22, %v3608_v3  ;;  %v1324_v11 = vrot.slane %v1322_v19, 1 }
 0x12f   : > { %v2258_v7 = vpop.f32.mrf.mxu2 }
 0x130   : > { %v2259_v18 = vadd.f32 %v2258_v7, %v2170_v53  ;;  %v2347_v10 = vpop.f32.mrf.mxu3  ;;  %v3510_v53 = vld [vmem:[%s4986_s1 + $0x200] sm:$0xff]  ;;  %v406_v7 = vunpack.c.l.bf16 %v352_v1  ;;  %v518_v34 = vadd.f32 %v4411_v39, %v461_v24 }
 0x131   : > { %v2171_v32 = vpop.f32.mrf.mxu1  ;;  %2770 = vmatpush.bf16.msra.mxu0 %v3510_v53 }
 0x132   : > { %v2348_v41 = vadd.f32 %v2347_v10, %v2259_v18  ;;  %v2172_v15 = vadd.f32 %v2171_v32, %v4371_v54  ;;  %v1394_v54 = vrot.slane %v4073_v62, 1  ;;  %v994_v10 = vpack.c.bf16 %v940_v61, %v940_v61 }
 0x133   : > { %v2438_v48 = vpop.f32.mrf.mxu0  ;;  %v1320_v32 = vor.u32 %v1319_v47, %v1315_v25  ;;  %v463_v60 = vmul.f32 %v4388_v22, %v406_v7  ;;  %v519_v47 = vadd.f32 %v4411_v39, %v462_v36  ;;  %v572_v19 = vmax.f32 %v518_v34, 0.0 }
 0x134   : > { %v4725_v18 = vadd.f32 %v2436_v55, %v2348_v41  ;;  %v4733_v55 = vsel %vm1354_vm3, %v1394_v54, %v1395_v12  ;;  %v1128_v41 = vunpack.c.l.b16 %v994_v10 }
 0x135   : > { %v4737_v25 = vsel %vm1145_vm2, %v1320_v32, %v1324_v11  ;;  %v520_v27 = vadd.f32 %v4411_v39, %v463_v60  ;;  %v573_v11 = vmax.f32 %v519_v47, 0.0  ;;  %v941_v36 = vsel %vm671_vm0, %v572_v19, 0.0 }
 0x137   : > { %v2260_v26 = vpop.f32.mrf.mxu2  ;;  %v574_v39 = vmax.f32 %v520_v27, 0.0 }
 0x138   : > { %v2261_v3 = vadd.f32 %v2260_v26, %v2172_v15  ;;  %v2349_v1 = vpop.f32.mrf.mxu3  ;;  %v1329_v26 = vshll.u32 %v4217_v43, 16 }
 0x139   : > { %v2174_v8 = vpop.f32.mrf.mxu1 }
 0x13a   : > { %v2350_v53 = vadd.f32 %v2349_v1, %v2261_v3  ;;  %v2175_v23 = vadd.f32 %v2174_v8, %v4401_v4  ;;  %v4747_v4 = vpack.c.b16 %v1128_v41, %v1128_v41  ;;  %v1331_v54 = vrot.slane %v1329_v26, 1 }
 0x13b   : > { %v2441_v61 = vpop.f32.mrf.mxu0  ;;  %v995_v3 = vpack.c.bf16 %v941_v36, %v941_v36  ;;  %v996_v1 = vpack.c.bf16 %v573_v11, %v573_v11  ;;  %v943_v8 = vsel %vm730_vm1, %v574_v39, 0.0  ;;  %v1397_v41 = vrot.slane %v4170_v57, 1 }
 0x13c   : > { %2213 = vmatmul.bf16.gmra.mxu1 %v4693_v30  ;;  %2302 = vmatmul.bf16.gmra.mxu2 %v4733_v55  ;;  %v4743_v22 = vadd.f32 %v2438_v48, %v2350_v53  ;;  %v1327_v48 = vshrl.u32 %v4217_v43, 16  ;;  %v1334_v12 = vshll.u32 %v4747_v4, 16  ;;  %v1398_v53 = vrot.slane %v4703_v5, 1 }
 0x13d   : > { %2391 = vmatmul.bf16.gmra.mxu3 %v4170_v57  ;;  %v1421_v19 = vunpack.c.l.b16 %v995_v3  ;;  %v1422_v27 = vunpack.c.l.b16 %v996_v1  ;;  %v997_v26 = vpack.c.bf16 %v943_v8, %v943_v8 }
 0x13e   : > { %2480 = vmatmul.bf16.gmra.mxu0 %v4737_v25  ;;  %v1336_v47 = vrot.slane %v1334_v12, 1  ;;  %v4762_v11 = vsel %vm1354_vm3, %v1397_v41, %v1398_v53 }
 0x13f   : > { %v2263_v15 = vpop.f32.mrf.mxu2  ;;  %v4768_v5 = vpack.c.b16 %v1422_v27, %v1421_v19  ;;  %v1400_v19 = vrot.slane %v4217_v43, 1  ;;  %v1401_v27 = vrot.slane %v4747_v4, 1 }
 0x140   : > { %v2264_v34 = vadd.f32 %v2263_v15, %v2175_v23  ;;  %v2352_v24 = vpop.f32.mrf.mxu3  ;;  %v1332_v23 = vor.u32 %v1331_v54, %v1327_v48 }
 0x141   : > { %v2176_v7 = vpop.f32.mrf.mxu1  ;;  %v1431_v12 = vshll.u32 %v4768_v5, 16  ;;  %v1429_v1 = vshrl.u32 %v4768_v5, 16 }
 0x142   : > { %v2353_v10 = vadd.f32 %v2352_v24, %v2264_v34  ;;  %v2177_v32 = vadd.f32 %v2176_v7, %v4428_v2  ;;  %v4765_v51 = vsel %vm1145_vm2, %v1332_v23, %v1336_v47  ;;  %v1426_v7 = vunpack.c.l.b16 %v997_v26 }
 0x143   : > { %v2443_v60 = vpop.f32.mrf.mxu0 }
 0x144   : > { %v4757_v6 = vadd.f32 %v2441_v61, %v2353_v10  ;;  %v4776_v54 = vpack.c.b16 %v1426_v7, %v1426_v7 }
 0x146   : > { %v1436_v23 = vshll.u32 %v4776_v54, 16 }
 0x147   : > { %v2265_v15 = vpop.f32.mrf.mxu2 }
 0x148   : > { %v2266_v34 = vadd.f32 %v2265_v15, %v2177_v32  ;;  %v2354_v2 = vpop.f32.mrf.mxu3  ;;  %v1438_v15 = vrot.slane %v1436_v23, 1 }
 0x149   : > { %v2179_v24 = vpop.f32.mrf.mxu1 }
 0x14a   : > { %v2355_v61 = vadd.f32 %v2354_v2, %v2266_v34  ;;  %v2180_v36 = vadd.f32 %v2179_v24, %v4450_v0 }
 0x14b   : > { %v2446_v39 = vpop.f32.mrf.mxu0 }
 0x14c   : > { %2218 = vmatmul.bf16.gmra.mxu1 %v4737_v25  ;;  %2307 = vmatmul.bf16.gmra.mxu2 %v4762_v11  ;;  %v4772_v48 = vadd.f32 %v2443_v60, %v2355_v61  ;;  %v1433_v60 = vrot.slane %v1431_v12, 1 }
 0x14d   : > { %2396 = vmatmul.bf16.gmra.mxu3 %v4217_v43 }
 0x14e   : > { %2485 = vmatmul.bf16.gmra.mxu0 %v4765_v51  ;;  %v1434_v26 = vor.u32 %v1433_v60, %v1429_v1 }
 0x14f   : > { %v2268_v10 = vpop.f32.mrf.mxu2 }
 0x150   : > { %v2269_v0 = vadd.f32 %v2268_v10, %v2180_v36  ;;  %v2357_v32 = vpop.f32.mrf.mxu3  ;;  %v4787_v36 = vsel %vm1354_vm3, %v1400_v19, %v1401_v27 }
 0x151   : > { %v2181_v3 = vpop.f32.mrf.mxu1 }
 0x152   : > { %v2358_v8 = vadd.f32 %v2357_v32, %v2269_v0  ;;  %v2182_v41 = vadd.f32 %v2181_v3, %v4479_v29 }
 0x153   : > { %v2448_v53 = vpop.f32.mrf.mxu0 }
 0x154   : > { %v4782_v47 = vadd.f32 %v2446_v39, %v2358_v8  ;;  %v4791_v39 = vsel %vm1145_vm2, %v1434_v26, %v1438_v15 }
 0x157   : > { %v2270_v34 = vpop.f32.mrf.mxu2 }
 0x158   : > { %v2271_v2 = vadd.f32 %v2270_v34, %v2182_v41  ;;  %v2359_v24 = vpop.f32.mrf.mxu3 }
 0x159   : > { %v2184_v61 = vpop.f32.mrf.mxu1 }
 0x15a   : > { %v2360_v29 = vadd.f32 %v2359_v24, %v2271_v2  ;;  %v2185_v7 = vadd.f32 %v2184_v61, %v4506_v38 }
 0x15b   : > { %v2451_v12 = vpop.f32.mrf.mxu0 }
 0x15c   : > { %2223 = vmatmul.bf16.gmra.mxu1 %v4765_v51  ;;  %2312 = vmatmul.bf16.gmra.mxu2 %v4787_v36  ;;  %v4795_v4 = vadd.f32 %v2448_v53, %v2360_v29 }
 0x15d   : > { %2401 = vmatmul.bf16.gmra.mxu3 %v4768_v5 }
 0x15e   : > { %2490 = vmatmul.bf16.gmra.mxu0 %v4791_v39 }
 0x15f   : > { %v2273_v10 = vpop.f32.mrf.mxu2 }
 0x160   : > { %v2274_v0 = vadd.f32 %v2273_v10, %v2185_v7  ;;  %v2362_v32 = vpop.f32.mrf.mxu3 }
 0x161   : > { %v2186_v3 = vpop.f32.mrf.mxu1 }
 0x162   : > { %v2363_v1 = vadd.f32 %v2362_v32, %v2274_v0  ;;  %v2187_v38 = vadd.f32 %v2186_v3, %v4529_v45 }
 0x163   : > { %v2453_v8 = vpop.f32.mrf.mxu0 }
 0x164   : > { %v4800_v41 = vadd.f32 %v2451_v12, %v2363_v1 }
 0x167   : > { %v2275_v60 = vpop.f32.mrf.mxu2 }
 0x168   : > { %v2276_v23 = vadd.f32 %v2275_v60, %v2187_v38  ;;  %v2364_v19 = vpop.f32.mrf.mxu3 }
 0x169   : > { %v2189_v27 = vpop.f32.mrf.mxu1 }
 0x16a   : > { %v2365_v53 = vadd.f32 %v2364_v19, %v2276_v23  ;;  %v2190_v26 = vadd.f32 %v2189_v27, %v4362_v16 }
 0x16b   : > { %v2456_v15 = vpop.f32.mrf.mxu0 }
 0x16c   : > { %2504 = vmatmul.bf16.vlgmr.msra.gmra.mxu1 %v4264_v49  ;;  %2593 = vmatmul.bf16.vlgmr.msra.gmra.mxu2 %v4173_v37  ;;  %v4805_v34 = vadd.f32 %v2453_v8, %v2365_v53 }
 0x16d   : > { %2682 = vmatmul.bf16.vlgmr.msra.gmra.mxu3 %v4267_v52 }
 0x16e   : > { %2771 = vmatmul.bf16.vlgmr.msra.gmra.mxu0 %v4281_v13 }
 0x16f   : > { %v2278_v45 = vpop.f32.mrf.mxu2 }
 0x170   : > { %v2279_v2 = vadd.f32 %v2278_v45, %v2190_v26  ;;  %v2367_v24 = vpop.f32.mrf.mxu3 }
 0x171   : > { %v2191_v61 = vpop.f32.mrf.mxu1 }
 0x172   : > { %v2368_v29 = vadd.f32 %v2367_v24, %v2279_v2  ;;  %v2192_v7 = vadd.f32 %v2191_v61, %v4392_v21  ;;  %v5055_v2 = vld [vmem:[#allocation3_spill] sm:$0xff]  ;;  %v5056_v61 = vld [vmem:[#allocation9_spill] sm:$0xff] }
 0x173   : > { %v2458_v12 = vpop.f32.mrf.mxu0 }
 0x174   : > { %v4810_v16 = vadd.f32 %v2456_v15, %v2368_v29 }
 0x177   : > { %v2280_v10 = vpop.f32.mrf.mxu2 }
 0x178   : > { %v2281_v49 = vadd.f32 %v2280_v10, %v2192_v7  ;;  %v2369_v0 = vpop.f32.mrf.mxu3 }
 0x179   : > { %v2194_v37 = vpop.f32.mrf.mxu1 }
 0x17a   : > { %v2370_v32 = vadd.f32 %v2369_v0, %v2281_v49  ;;  %v2195_v3 = vadd.f32 %v2194_v37, %v4422_v59  ;;  %v5058_v0 = vld [vmem:[#allocation21_spill] sm:$0xff] }
 0x17b   : > { %v2461_v52 = vpop.f32.mrf.mxu0 }
 0x17c   : > { %2509 = vmatmul.bf16.gmra.mxu1 %v4281_v13  ;;  %2598 = vmatmul.bf16.gmra.mxu2 %v4219_v44  ;;  %v4815_v1 = vadd.f32 %v2458_v12, %v2370_v32 }
 0x17d   : > { %2687 = vmatmul.bf16.gmra.mxu3 %v4284_v33 }
 0x17e   : > { %2776 = vmatmul.bf16.gmra.mxu0 %v4311_v63 }
 0x17f   : > { %v2283_v21 = vpop.f32.mrf.mxu2 }
 0x180   : > { %v2284_v38 = vadd.f32 %v2283_v21, %v2195_v3  ;;  %v2372_v8 = vpop.f32.mrf.mxu3 }
 0x181   : > { %v2196_v60 = vpop.f32.mrf.mxu1 }
 0x182   : > { %v2373_v23 = vadd.f32 %v2372_v8, %v2284_v38  ;;  %v2197_v19 = vadd.f32 %v2196_v60, %v4441_v9  ;;  %v5057_v9 = vld [vmem:[#allocation10_spill] sm:$0xff]  ;;  %v5059_v8 = vld [vmem:[#allocation25_spill] sm:$0xff] }
 0x183   : > { %v2463_v27 = vpop.f32.mrf.mxu0 }
 0x184   : > { %v4820_v59 = vadd.f32 %v2461_v52, %v2373_v23 }
 0x187   : > { %v2285_v53 = vpop.f32.mrf.mxu2 }
 0x188   : > { %v2286_v13 = vadd.f32 %v2285_v53, %v2197_v19  ;;  %v2374_v26 = vpop.f32.mrf.mxu3  ;;  %v5060_v19 = vld [vmem:[#allocation5_spill] sm:$0xff]  ;;  %v5061_v53 = vld [vmem:[#allocation11_spill] sm:$0xff] }
 0x189   : > { %v2199_v44 = vpop.f32.mrf.mxu1 }
 0x18a   : > { %v2375_v15 = vadd.f32 %v2374_v26, %v2286_v13  ;;  %v2200_v45 = vadd.f32 %v2199_v44, %v4472_v56  ;;  %v5062_v13 = vld [vmem:[#allocation14_spill] sm:$0xff] }
 0x18b   : > { %v2466_v33 = vpop.f32.mrf.mxu0 }
 0x18c   : > { %2514 = vmatmul.bf16.gmra.mxu1 %v4311_v63  ;;  %2603 = vmatmul.bf16.gmra.mxu2 %v5055_v2  ;;  %v4825_v24 = vadd.f32 %v2463_v27, %v2375_v15  ;;  %v5063_v2 = vld [vmem:[#allocation27_spill] sm:$0xff] }
 0x18d   : > { %2692 = vmatmul.bf16.gmra.mxu3 %v5056_v61 }
 0x18e   : > { %2781 = vmatmul.bf16.gmra.mxu0 %v5057_v9 }
 0x18f   : > { %v2288_v29 = vpop.f32.mrf.mxu2 }
 0x190   : > { %v2289_v7 = vadd.f32 %v2288_v29, %v2200_v45  ;;  %v2377_v12 = vpop.f32.mrf.mxu3 }
 0x191   : > { %v2201_v10 = vpop.f32.mrf.mxu1 }
 0x192   : > { %v2378_v49 = vadd.f32 %v2377_v12, %v2289_v7  ;;  %v2202_v37 = vadd.f32 %v2201_v10, %v5058_v0 }
 0x193   : > { %v2468_v32 = vpop.f32.mrf.mxu0 }
 0x194   : > { %v4830_v56 = vadd.f32 %v2466_v33, %v2378_v49 }
 0x197   : > { %v2290_v3 = vpop.f32.mrf.mxu2 }
 0x198   : > { %v2291_v63 = vadd.f32 %v2290_v3, %v2202_v37  ;;  %v2379_v52 = vpop.f32.mrf.mxu3  ;;  %v5064_v37 = vld [vmem:[#allocation12_spill] sm:$0xff] }
 0x199   : > { %v2204_v21 = vpop.f32.mrf.mxu1 }
 0x19a   : > { %v2380_v38 = vadd.f32 %v2379_v52, %v2291_v63  ;;  %v2205_v60 = vadd.f32 %v2204_v21, %v5059_v8  ;;  %v5065_v63 = vld [vmem:[#allocation6_spill] sm:$0xff]  ;;  %v5066_v21 = vld [vmem:[#allocation15_spill] sm:$0xff] }
 0x19b   : > { %v2471_v23 = vpop.f32.mrf.mxu0 }
 0x19c   : > { %2519 = vmatmul.bf16.gmra.mxu1 %v5057_v9  ;;  %2608 = vmatmul.bf16.gmra.mxu2 %v5060_v19  ;;  %v4835_v27 = vadd.f32 %v2468_v32, %v2380_v38  ;;  %v5067_v38 = vld [vmem:[#allocation18_spill] sm:$0xff] }
 0x19d   : > { %2697 = vmatmul.bf16.gmra.mxu3 %v5061_v53 }
 0x19e   : > { %2786 = vmatmul.bf16.gmra.mxu0 %v5062_v13 }
 0x19f   : > { %v2293_v26 = vpop.f32.mrf.mxu2 }
 0x1a0   : > { %v2294_v44 = vadd.f32 %v2293_v26, %v2205_v60  ;;  %v2382_v15 = vpop.f32.mrf.mxu3  ;;  %v5068_v26 = vld [vmem:[#allocation13_spill] sm:$0xff] }
 0x1a1   : > { %v2206_v45 = vpop.f32.mrf.mxu1 }
 0x1a2   : > { %v2383_v33 = vadd.f32 %v2382_v15, %v2294_v44  ;;  %v2207_v61 = vadd.f32 %v2206_v45, %v5063_v2 }
 0x1a3   : > { %v2473_v29 = vpop.f32.mrf.mxu0 }
 0x1a4   : > { %v4840_v7 = vadd.f32 %v2471_v23, %v2383_v33 }
 0x1a7   : > { %v2295_v12 = vpop.f32.mrf.mxu2 }
 0x1a8   : > { %v2296_v9 = vadd.f32 %v2295_v12, %v2207_v61  ;;  %v2384_v10 = vpop.f32.mrf.mxu3  ;;  %v5069_v12 = vld [vmem:[#allocation16_spill] sm:$0xff] }
 0x1a9   : > { %v2209_v49 = vpop.f32.mrf.mxu1 }
 0x1aa   : > { %v2385_v0 = vadd.f32 %v2384_v10, %v2296_v9  ;;  %v2210_v32 = vadd.f32 %v2209_v49, %v5064_v37  ;;  %v5070_v49 = vld [vmem:[#allocation7_spill] sm:$0xff] }
 0x1ab   : > { %v2476_v3 = vpop.f32.mrf.mxu0  ;;  %v5071_v37 = vld [vmem:[#allocation19_spill] sm:$0xff] }
 0x1ac   : > { %2524 = vmatmul.bf16.gmra.mxu1 %v5062_v13  ;;  %2613 = vmatmul.bf16.gmra.mxu2 %v5065_v63  ;;  %v4845_v52 = vadd.f32 %v2473_v29, %v2385_v0 }
 0x1ad   : > { %2702 = vmatmul.bf16.gmra.mxu3 %v5066_v21 }
 0x1ae   : > { %2791 = vmatmul.bf16.gmra.mxu0 %v5067_v38 }
 0x1af   : > { %v2298_v8 = vpop.f32.mrf.mxu2 }
 0x1b0   : > { %v2299_v60 = vadd.f32 %v2298_v8, %v2210_v32  ;;  %v2387_v23 = vpop.f32.mrf.mxu3  ;;  %v5072_v32 = vld [vmem:[#allocation23_spill] sm:$0xff] }
 0x1b1   : > { %v2211_v19 = vpop.f32.mrf.mxu1 }
 0x1b2   : > { %v2388_v53 = vadd.f32 %v2387_v23, %v2299_v60  ;;  %v2212_v44 = vadd.f32 %v2211_v19, %v5068_v26  ;;  %v5073_v23 = vld [vmem:[#allocation17_spill] sm:$0xff] }
 0x1b3   : > { %v2478_v15 = vpop.f32.mrf.mxu0 }
 0x1b4   : > { %v4850_v45 = vadd.f32 %v2476_v3, %v2388_v53 }
 0x1b7   : > { %v2300_v33 = vpop.f32.mrf.mxu2 }
 0x1b8   : > { %v2301_v13 = vadd.f32 %v2300_v33, %v2212_v44  ;;  %v2389_v2 = vpop.f32.mrf.mxu3 }
 0x1b9   : > { %v2214_v61 = vpop.f32.mrf.mxu1 }
 0x1ba   : > { %v2390_v29 = vadd.f32 %v2389_v2, %v2301_v13  ;;  %v2215_v9 = vadd.f32 %v2214_v61, %v5069_v12  ;;  %v5074_v2 = vld [vmem:[#allocation20_spill] sm:$0xff] }
 0x1bb   : > { %v2481_v10 = vpop.f32.mrf.mxu0  ;;  %v5075_v12 = vld [vmem:[#allocation4_spill] sm:$0xff] }
 0x1bc   : > { %2529 = vmatmul.bf16.gmra.mxu1 %v5067_v38  ;;  %2618 = vmatmul.bf16.gmra.mxu2 %v5070_v49  ;;  %v4855_v0 = vadd.f32 %v2478_v15, %v2390_v29  ;;  %v5076_v49 = vld [vmem:[#allocation24_spill] sm:$0xff] }
 0x1bd   : > { %2707 = vmatmul.bf16.gmra.mxu3 %v5071_v37  ;;  %v5077_v37 = vld [vmem:[#allocation29_spill] sm:$0xff] }
 0x1be   : > { %2796 = vmatmul.bf16.gmra.mxu0 %v5072_v32 }
 0x1bf   : > { %v2303_v3 = vpop.f32.mrf.mxu2 }
 0x1c0   : > { %v2304_v63 = vadd.f32 %v2303_v3, %v2215_v9  ;;  %v2392_v21 = vpop.f32.mrf.mxu3 }
 0x1c1   : > { %v2216_v8 = vpop.f32.mrf.mxu1 }
 0x1c2   : > { %v2393_v60 = vadd.f32 %v2392_v21, %v2304_v63  ;;  %v2217_v19 = vadd.f32 %v2216_v8, %v5073_v23 }
 0x1c3   : > { %v2483_v53 = vpop.f32.mrf.mxu0 }
 0x1c4   : > { %v4860_v26 = vadd.f32 %v2481_v10, %v2393_v60  ;;  %v5078_v60 = vld [vmem:[#allocation22_spill] sm:$0xff] }
 0x1c7   : > { %v2305_v44 = vpop.f32.mrf.mxu2 }
 0x1c8   : > { %v2306_v38 = vadd.f32 %v2305_v44, %v2217_v19  ;;  %v2394_v33 = vpop.f32.mrf.mxu3 }
 0x1c9   : > { %v2219_v13 = vpop.f32.mrf.mxu1 }
 0x1ca   : > { %v2395_v15 = vadd.f32 %v2394_v33, %v2306_v38  ;;  %v2220_v61 = vadd.f32 %v2219_v13, %v5074_v2 }
 0x1cb   : > { %v2486_v29 = vpop.f32.mrf.mxu0 }
 0x1cc   : > { %2534 = vmatmul.bf16.gmra.mxu1 %v5072_v32  ;;  %2623 = vmatmul.bf16.gmra.mxu2 %v5075_v12  ;;  %v4865_v9 = vadd.f32 %v2483_v53, %v2395_v15  ;;  %v5079_v15 = vld [vmem:[#allocation26_spill] sm:$0xff] }
 0x1cd   : > { %2712 = vmatmul.bf16.gmra.mxu3 %v5076_v49 }
 0x1ce   : > { %2801 = vmatmul.bf16.gmra.mxu0 %v5077_v37 }
 0x1cf   : > { %v2308_v10 = vpop.f32.mrf.mxu2 }
 0x1d0   : > { %v2309_v3 = vadd.f32 %v2308_v10, %v2220_v61  ;;  %v2397_v63 = vpop.f32.mrf.mxu3 }
 0x1d1   : > { %v2221_v21 = vpop.f32.mrf.mxu1 }
 0x1d2   : > { %v2398_v8 = vadd.f32 %v2397_v63, %v2309_v3  ;;  %v2222_v23 = vadd.f32 %v2221_v21, %v5078_v60  ;;  %v5080_v21 = vld [vmem:[#allocation28_spill] sm:$0xff] }
 0x1d3   : > { %v2488_v19 = vpop.f32.mrf.mxu0 }
 0x1d4   : > { %v4870_v44 = vadd.f32 %v2486_v29, %v2398_v8 }
 0x1d7   : > { %v2310_v38 = vpop.f32.mrf.mxu2 }
 0x1d8   : > { %v2311_v32 = vadd.f32 %v2310_v38, %v2222_v23  ;;  %v2399_v33 = vpop.f32.mrf.mxu3 }
 0x1d9   : > { %v2224_v13 = vpop.f32.mrf.mxu1 }
 0x1da   : > { %v2400_v53 = vadd.f32 %v2399_v33, %v2311_v32  ;;  %v2225_v2 = vadd.f32 %v2224_v13, %v5079_v15  ;;  %v5081_v13 = vld [vmem:[#allocation30_spill] sm:$0xff] }
 0x1db   : > { %v2491_v12 = vpop.f32.mrf.mxu0 }
 0x1dc   : > { %2539 = vmatmul.bf16.gmra.mxu1 %v5077_v37  ;;  %2628 = vmatmul.bf16.gmra.mxu2 %v4066_v58  ;;  %v4875_v61 = vadd.f32 %v2488_v19, %v2400_v53 }
 0x1dd   : > { %2717 = vmatmul.bf16.gmra.mxu3 %v4552_v14 }
 0x1de   : > { %2806 = vmatmul.bf16.gmra.mxu0 %v4589_v50 }
 0x1df   : > { %v2313_v29 = vpop.f32.mrf.mxu2 }
 0x1e0   : > { %v2314_v49 = vadd.f32 %v2313_v29, %v2225_v2  ;;  %v2402_v10 = vpop.f32.mrf.mxu3 }
 0x1e1   : > { %v2226_v3 = vpop.f32.mrf.mxu1 }
 0x1e2   : > { %v2403_v63 = vadd.f32 %v2402_v10, %v2314_v49  ;;  %v2227_v8 = vadd.f32 %v2226_v3, %v5080_v21  ;;  %v5082_v3 = vld [vmem:[#allocation31_spill] sm:$0xff] }
 0x1e3   : > { %v2493_v60 = vpop.f32.mrf.mxu0 }
 0x1e4   : > { %v4880_v23 = vadd.f32 %v2491_v12, %v2403_v63 }
 0x1e7   : > { %v2315_v38 = vpop.f32.mrf.mxu2 }
 0x1e8   : > { %v2316_v37 = vadd.f32 %v2315_v38, %v2227_v8  ;;  %v2404_v32 = vpop.f32.mrf.mxu3 }
 0x1e9   : > { %v2505_v58 = vpop.f32.mrf.mxu1 }
 0x1ea   : > { %v2405_v19 = vadd.f32 %v2404_v32, %v2316_v37  ;;  %v2506_v53 = vadd.f32 %v2505_v58, %v5081_v13  ;;  %v5083_v13 = vld [vmem:[#allocation32_spill] sm:$0xff] }
 0x1eb   : > { %v2772_v33 = vpop.f32.mrf.mxu0 }
 0x1ec   : > { %2544 = vmatmul.bf16.gmra.mxu1 %v4589_v50  ;;  %2633 = vmatmul.bf16.gmra.mxu2 %v4168_v31  ;;  %v4884_v14 = vadd.f32 %v2493_v60, %v2405_v19 }
 0x1ed   : > { %2722 = vmatmul.bf16.gmra.mxu3 %v4592_v17 }
 0x1ee   : > { %2811 = vmatmul.bf16.gmra.mxu0 %v4619_v46 }
 0x1ef   : > { %v2594_v15 = vpop.f32.mrf.mxu2 }
 0x1f0   : > { %v2683_v2 = vpop.f32.mrf.mxu3  ;;  %v2595_v12 = vadd.f32 %v2594_v15, %v2506_v53 }
 0x1f1   : > { %v2507_v29 = vpop.f32.mrf.mxu1 }
 0x1f2   : > { %v2684_v10 = vadd.f32 %v2683_v2, %v2595_v12  ;;  %v2508_v63 = vadd.f32 %v2507_v29, %v5082_v3 }
 0x1f3   : > { %v2774_v49 = vpop.f32.mrf.mxu0 }
 0x1f4   : > { %v2773_v8 = vadd.f32 %v2772_v33, %v2684_v10 }
 0x1f6   : > { %v2953_v32 = vmul.f32 %v2773_v8, %v2773_v8 }
 0x1f7   : > { %v2596_v50 = vpop.f32.mrf.mxu2 }
 0x1f8   : > { %v2597_v21 = vadd.f32 %v2596_v50, %v2508_v63  ;;  %v2685_v31 = vpop.f32.mrf.mxu3  ;;  %v5084_v50 = vld [vmem:[#allocation33_spill] sm:$0xff] }
 0x1f9   : > { %v2510_v60 = vpop.f32.mrf.mxu1 }
 0x1fa   : > { %v2686_v38 = vadd.f32 %v2685_v31, %v2597_v21  ;;  %v2511_v53 = vadd.f32 %v2510_v60, %v5083_v13 }
 0x1fb   : > { %v2777_v17 = vpop.f32.mrf.mxu0 }
 0x1fc   : > { %v2775_v37 = vadd.f32 %v2774_v49, %v2686_v38  ;;  %2549 = vmatmul.bf16.gmra.mxu1 %v4619_v46  ;;  %2638 = vmatmul.bf16.gmra.mxu2 %v4215_v42 }
 0x1fd   : > { %2727 = vmatmul.bf16.gmra.mxu3 %v4622_v20 }
 0x1fe   : > { %2816 = vmatmul.bf16.gmra.mxu0 %v4661_v28  ;;  %v3613_v58 = vpack.c.bf16 %v2775_v37, %v2773_v8  ;;  %v2916_v19 = vadd.f32 %v2775_v37, %v2773_v8  ;;  %v2954_v33 = vmul.f32 %v2775_v37, %v2775_v37 }
 0x1ff   : > { %v2599_v15 = vpop.f32.mrf.mxu2 }
 0x200   : > { %3614 = vst [vmem:[%s4896_s8] sm:$0xff] %v3613_v58   ;;  %v2985_v46 = vadd.f32 %v2954_v33, %v2953_v32  ;;  %v2600_v42 = vadd.f32 %v2599_v15, %v2511_v53  ;;  %v2688_v2 = vpop.f32.mrf.mxu3  ;;  %v5086_v53 = vld [vmem:[#allocation34_spill] sm:$0xff] }
 0x201   : > { %v2512_v12 = vpop.f32.mrf.mxu1 }
 0x202   : > { %v2689_v29 = vadd.f32 %v2688_v2, %v2600_v42  ;;  %v2513_v20 = vadd.f32 %v2512_v12, %v5084_v50 }
 0x203   : > { %v2779_v49 = vpop.f32.mrf.mxu0 }
 0x204   : > { %v2778_v10 = vadd.f32 %v2777_v17, %v2689_v29  ;;  %v5085_v17 = vld [vmem:[#allocation37_spill] sm:$0xff] }
 0x206   : > { %v2917_v3 = vadd.f32 %v2916_v19, %v2778_v10  ;;  %v2955_v63 = vmul.f32 %v2778_v10, %v2778_v10 }
 0x207   : > { %v2601_v21 = vpop.f32.mrf.mxu2 }
 0x208   : > { %v2986_v31 = vadd.f32 %v2985_v46, %v2955_v63  ;;  %v2602_v8 = vadd.f32 %v2601_v21, %v2513_v20  ;;  %v2690_v38 = vpop.f32.mrf.mxu3  ;;  %v5087_v20 = vld [vmem:[#allocation35_spill] sm:$0xff] }
 0x209   : > { %v2515_v37 = vpop.f32.mrf.mxu1 }
 0x20a   : > { %v2691_v60 = vadd.f32 %v2690_v38, %v2602_v8  ;;  %v2516_v15 = vadd.f32 %v2515_v37, %v5086_v53 }
 0x20b   : > { %v2782_v13 = vpop.f32.mrf.mxu0 }
 0x20c   : > { %v2780_v58 = vadd.f32 %v2779_v49, %v2691_v60  ;;  %2554 = vmatmul.bf16.gmra.mxu1 %v4661_v28  ;;  %2643 = vmatmul.bf16.gmra.mxu2 %v3984_v40 }
 0x20d   : > { %2732 = vmatmul.bf16.gmra.mxu3 %v4664_v35 }
 0x20e   : > { %2821 = vmatmul.bf16.gmra.mxu0 %v5085_v17  ;;  %v3618_v32 = vpack.c.bf16 %v2780_v58, %v2778_v10  ;;  %v2918_v19 = vadd.f32 %v2917_v3, %v2780_v58  ;;  %v2956_v33 = vmul.f32 %v2780_v58, %v2780_v58 }
 0x20f   : > { %v2604_v46 = vpop.f32.mrf.mxu2 }
 0x210   : > { %3713 = vst [vmem:[%s4896_s8 + $0x8] sm:$0xff] %v3618_v32   ;;  %v2987_v42 = vadd.f32 %v2986_v31, %v2956_v33  ;;  %v2605_v2 = vadd.f32 %v2604_v46, %v2516_v15  ;;  %v2693_v12 = vpop.f32.mrf.mxu3 }
 0x211   : > { %v2517_v29 = vpop.f32.mrf.mxu1 }
 0x212   : > { %v2694_v49 = vadd.f32 %v2693_v12, %v2605_v2  ;;  %v2518_v35 = vadd.f32 %v2517_v29, %v5087_v20 }
 0x213   : > { %v2784_v63 = vpop.f32.mrf.mxu0 }
 0x214   : > { %v2783_v28 = vadd.f32 %v2782_v13, %v2694_v49 }
 0x216   : > { %v2919_v50 = vadd.f32 %v2918_v19, %v2783_v28  ;;  %v2957_v40 = vmul.f32 %v2783_v28, %v2783_v28  ;;  %v5088_v19 = vld [vmem:[#allocation36_spill] sm:$0xff] }
 0x217   : > { %v2606_v21 = vpop.f32.mrf.mxu2 }
 0x218   : > { %v2988_v8 = vadd.f32 %v2987_v42, %v2957_v40  ;;  %v2607_v10 = vadd.f32 %v2606_v21, %v2518_v35  ;;  %v2695_v3 = vpop.f32.mrf.mxu3 }
 0x219   : > { %v2520_v38 = vpop.f32.mrf.mxu1 }
 0x21a   : > { %v2696_v37 = vadd.f32 %v2695_v3, %v2607_v10  ;;  %v2521_v33 = vadd.f32 %v2520_v38, %v5088_v19 }
 0x21b   : > { %v2787_v60 = vpop.f32.mrf.mxu0 }
 0x21c   : > { %v2785_v58 = vadd.f32 %v2784_v63, %v2696_v37  ;;  %2559 = vmatmul.bf16.gmra.mxu1 %v5085_v17  ;;  %2648 = vmatmul.bf16.gmra.mxu2 %v4073_v62  ;;  %v5089_v63 = vld [vmem:[#allocation38_spill] sm:$0xff] }
 0x21d   : > { %2737 = vmatmul.bf16.gmra.mxu3 %v4693_v30 }
 0x21e   : > { %2826 = vmatmul.bf16.gmra.mxu0 %v4733_v55  ;;  %v3623_v31 = vpack.c.bf16 %v2785_v58, %v2783_v28  ;;  %v2920_v13 = vadd.f32 %v2919_v50, %v2785_v58  ;;  %v2958_v32 = vmul.f32 %v2785_v58, %v2785_v58 }
 0x21f   : > { %v2609_v53 = vpop.f32.mrf.mxu2 }
 0x220   : > { %3714 = vst [vmem:[%s4896_s8 + $0x10] sm:$0xff] %v3623_v31   ;;  %v2989_v15 = vadd.f32 %v2988_v8, %v2958_v32  ;;  %v2610_v46 = vadd.f32 %v2609_v53, %v2521_v33  ;;  %v2698_v42 = vpop.f32.mrf.mxu3 }
 0x221   : > { %v2522_v2 = vpop.f32.mrf.mxu1 }
 0x222   : > { %v2699_v12 = vadd.f32 %v2698_v42, %v2610_v46  ;;  %v2523_v30 = vadd.f32 %v2522_v2, %v5089_v63 }
 0x223   : > { %v2789_v29 = vpop.f32.mrf.mxu0 }
 0x224   : > { %v2788_v17 = vadd.f32 %v2787_v60, %v2699_v12 }
 0x226   : > { %v2921_v49 = vadd.f32 %v2920_v13, %v2788_v17  ;;  %v2959_v62 = vmul.f32 %v2788_v17, %v2788_v17 }
 0x227   : > { %v2611_v40 = vpop.f32.mrf.mxu2 }
 0x228   : > { %v2990_v20 = vadd.f32 %v2989_v15, %v2959_v62  ;;  %v2612_v28 = vadd.f32 %v2611_v40, %v2523_v30  ;;  %v2700_v50 = vpop.f32.mrf.mxu3 }
 0x229   : > { %v2525_v35 = vpop.f32.mrf.mxu1 }
 0x22a   : > { %v2701_v21 = vadd.f32 %v2700_v50, %v2612_v28  ;;  %v2526_v60 = vadd.f32 %v2525_v35, %v4725_v18 }
 0x22b   : > { %v2792_v10 = vpop.f32.mrf.mxu0 }
 0x22c   : > { %v2790_v3 = vadd.f32 %v2789_v29, %v2701_v21  ;;  %2564 = vmatmul.bf16.gmra.mxu1 %v4733_v55  ;;  %2653 = vmatmul.bf16.gmra.mxu2 %v4170_v57 }
 0x22d   : > { %2742 = vmatmul.bf16.gmra.mxu3 %v4737_v25 }
 0x22e   : > { %2831 = vmatmul.bf16.gmra.mxu0 %v4762_v11  ;;  %v3628_v8 = vpack.c.bf16 %v2790_v3, %v2788_v17  ;;  %v2922_v38 = vadd.f32 %v2921_v49, %v2790_v3  ;;  %v2960_v37 = vmul.f32 %v2790_v3, %v2790_v3 }
 0x22f   : > { %v2614_v58 = vpop.f32.mrf.mxu2 }
 0x230   : > { %3715 = vst [vmem:[%s4896_s8 + $0x18] sm:$0xff] %v3628_v8   ;;  %v2991_v31 = vadd.f32 %v2990_v20, %v2960_v37  ;;  %v2615_v13 = vadd.f32 %v2614_v58, %v2526_v60  ;;  %v2703_v32 = vpop.f32.mrf.mxu3 }
 0x231   : > { %v2527_v19 = vpop.f32.mrf.mxu1 }
 0x232   : > { %v2704_v33 = vadd.f32 %v2703_v32, %v2615_v13  ;;  %v2528_v25 = vadd.f32 %v2527_v19, %v4743_v22 }
 0x233   : > { %v2794_v53 = vpop.f32.mrf.mxu0 }
 0x234   : > { %v2793_v55 = vadd.f32 %v2792_v10, %v2704_v33 }
 0x236   : > { %v2923_v15 = vadd.f32 %v2922_v38, %v2793_v55  ;;  %v2961_v57 = vmul.f32 %v2793_v55, %v2793_v55  ;;  %v1442_v38 = vrot.slane %v4776_v54, 1 }
 0x237   : > { %v2616_v46 = vpop.f32.mrf.mxu2 }
 0x238   : > { %v2992_v42 = vadd.f32 %v2991_v31, %v2961_v57  ;;  %v2617_v2 = vadd.f32 %v2616_v46, %v2528_v25  ;;  %v2705_v12 = vpop.f32.mrf.mxu3 }
 0x239   : > { %v2530_v29 = vpop.f32.mrf.mxu1 }
 0x23a   : > { %v2706_v18 = vadd.f32 %v2705_v12, %v2617_v2  ;;  %v2531_v30 = vadd.f32 %v2530_v29, %v4757_v6 }
 0x23b   : > { %v2797_v17 = vpop.f32.mrf.mxu0 }
 0x23c   : > { %v2795_v49 = vadd.f32 %v2794_v53, %v2706_v18  ;;  %2569 = vmatmul.bf16.gmra.mxu1 %v4762_v11  ;;  %2658 = vmatmul.bf16.gmra.mxu2 %v4217_v43  ;;  %v1441_v43 = vrot.slane %v4768_v5, 1 }
 0x23d   : > { %2747 = vmatmul.bf16.gmra.mxu3 %v4765_v51 }
 0x23e   : > { %2836 = vmatmul.bf16.gmra.mxu0 %v4787_v36  ;;  %v3633_v62 = vpack.c.bf16 %v2795_v49, %v2793_v55  ;;  %v2924_v63 = vadd.f32 %v2923_v15, %v2795_v49  ;;  %v2962_v22 = vmul.f32 %v2795_v49, %v2795_v49  ;;  %v1443_v19 = vsel %vm1354_vm3, %v1441_v43, %v1442_v38 }
 0x23f   : > { %v2619_v40 = vpop.f32.mrf.mxu2 }
 0x240   : > { %3716 = vst [vmem:[%s4896_s8 + $0x20] sm:$0xff] %v3633_v62   ;;  %v2993_v20 = vadd.f32 %v2992_v42, %v2962_v22  ;;  %v2620_v28 = vadd.f32 %v2619_v40, %v2531_v30  ;;  %v2708_v50 = vpop.f32.mrf.mxu3  ;;  %v5090_v40 = vld [vmem:[#allocation2_spill] sm:$0xff] }
 0x241   : > { %v2532_v35 = vpop.f32.mrf.mxu1 }
 0x242   : > { %v2709_v21 = vadd.f32 %v2708_v50, %v2620_v28  ;;  %v2533_v8 = vadd.f32 %v2532_v35, %v4772_v48  ;;  %v5092_v28 = vrot.slane %v5090_v40, 1 }
 0x243   : > { %v2799_v10 = vpop.f32.mrf.mxu0 }
 0x244   : > { %v2798_v11 = vadd.f32 %v2797_v17, %v2709_v21 }
 0x246   : > { %v2925_v3 = vadd.f32 %v2924_v63, %v2798_v11  ;;  %v2963_v51 = vmul.f32 %v2798_v11, %v2798_v11 }
 0x247   : > { %v2621_v37 = vpop.f32.mrf.mxu2 }
 0x248   : > { %v2994_v60 = vadd.f32 %v2993_v20, %v2963_v51  ;;  %v2622_v6 = vadd.f32 %v2621_v37, %v2533_v8  ;;  %v2710_v58 = vpop.f32.mrf.mxu3  ;;  %v5091_v20 = vld [vmem:[#allocation8_spill] sm:$0xff] }
 0x249   : > { %v2535_v31 = vpop.f32.mrf.mxu1 }
 0x24a   : > { %v2711_v13 = vadd.f32 %v2710_v58, %v2622_v6  ;;  %v2536_v55 = vadd.f32 %v2535_v31, %v4782_v47 }
 0x24b   : > { %v2802_v32 = vpop.f32.mrf.mxu0 }
 0x24c   : > { %v2800_v33 = vadd.f32 %v2799_v10, %v2711_v13  ;;  %2574 = vmatmul.bf16.gmra.mxu1 %v4787_v36  ;;  %2663 = vmatmul.bf16.gmra.mxu2 %v4768_v5 }
 0x24d   : > { %2752 = vmatmul.bf16.gmra.mxu3 %v4791_v39 }
 0x24e   : > { %2841 = vmatmul.bf16.gmra.mxu0 %v1443_v19  ;;  %v3638_v48 = vpack.c.bf16 %v2800_v33, %v2798_v11  ;;  %v2926_v54 = vadd.f32 %v2925_v3, %v2800_v33  ;;  %v2964_v53 = vmul.f32 %v2800_v33, %v2800_v33 }
 0x24f   : > { %v2624_v15 = vpop.f32.mrf.mxu2 }
 0x250   : > { %3717 = vst [vmem:[%s4896_s8 + $0x28] sm:$0xff] %v3638_v48   ;;  %v2995_v57 = vadd.f32 %v2994_v60, %v2964_v53  ;;  %v2625_v25 = vadd.f32 %v2624_v15, %v2536_v55  ;;  %v2713_v46 = vpop.f32.mrf.mxu3 }
 0x251   : > { %v2537_v42 = vpop.f32.mrf.mxu1 }
 0x252   : > { %v2714_v2 = vadd.f32 %v2713_v46, %v2625_v25  ;;  %v2538_v5 = vadd.f32 %v2537_v42, %v4795_v4 }
 0x253   : > { %v2804_v12 = vpop.f32.mrf.mxu0 }
 0x254   : > { %v2803_v29 = vadd.f32 %v2802_v32, %v2714_v2 }
 0x256   : > { %v2927_v36 = vadd.f32 %v2926_v54, %v2803_v29  ;;  %v2965_v18 = vmul.f32 %v2803_v29, %v2803_v29 }
 0x257   : > { %v2626_v39 = vpop.f32.mrf.mxu2 }
 0x258   : > { %v2996_v17 = vadd.f32 %v2995_v57, %v2965_v18  ;;  %v2627_v49 = vadd.f32 %v2626_v39, %v2538_v5  ;;  %v2715_v62 = vpop.f32.mrf.mxu3 }
 0x259   : > { %v2540_v63 = vpop.f32.mrf.mxu1 }
 0x25a   : > { %v2716_v47 = vadd.f32 %v2715_v62, %v2627_v49  ;;  %v2541_v21 = vadd.f32 %v2540_v63, %v4800_v41 }
 0x25b   : > { %v2807_v22 = vpop.f32.mrf.mxu0 }
 0x25c   : > { %v2805_v30 = vadd.f32 %v2804_v12, %v2716_v47  ;;  %2579 = vmatmul.bf16.gmra.mxu1 %v1443_v19  ;;  %2668 = vmatmul.bf16.gmra.mxu2 %v5090_v40 }
 0x25d   : > { %2757 = vmatmul.bf16.gmra.mxu3 %v5091_v20 }
 0x25e   : > { %2846 = vmatmul.bf16.gmra.mxu0 %v5092_v28  ;;  %v3643_v50 = vpack.c.bf16 %v2805_v30, %v2803_v29  ;;  %v2928_v35 = vadd.f32 %v2927_v36, %v2805_v30  ;;  %v2966_v4 = vmul.f32 %v2805_v30, %v2805_v30 }
 0x25f   : > { %v2629_v10 = vpop.f32.mrf.mxu2 }
 0x260   : > { %3718 = vst [vmem:[%s4896_s8 + $0x30] sm:$0xff] %v3643_v50   ;;  %v2997_v11 = vadd.f32 %v2996_v17, %v2966_v4  ;;  %v2630_v43 = vadd.f32 %v2629_v10, %v2541_v21  ;;  %v2718_v3 = vpop.f32.mrf.mxu3 }
 0x261   : > { %v2542_v51 = vpop.f32.mrf.mxu1 }
 0x262   : > { %v2719_v8 = vadd.f32 %v2718_v3, %v2630_v43  ;;  %v2543_v58 = vadd.f32 %v2542_v51, %v4805_v34 }
 0x263   : > { %v2809_v38 = vpop.f32.mrf.mxu0 }
 0x264   : > { %v2808_v37 = vadd.f32 %v2807_v22, %v2719_v8 }
 0x266   : > { %v2929_v60 = vadd.f32 %v2928_v35, %v2808_v37  ;;  %v2967_v6 = vmul.f32 %v2808_v37, %v2808_v37 }
 0x267   : > { %v2631_v31 = vpop.f32.mrf.mxu2 }
 0x268   : > { %v2998_v13 = vadd.f32 %v2997_v11, %v2967_v6  ;;  %v2632_v32 = vadd.f32 %v2631_v31, %v2543_v58  ;;  %v2720_v19 = vpop.f32.mrf.mxu3 }
 0x269   : > { %v2545_v33 = vpop.f32.mrf.mxu1 }
 0x26a   : > { %v2721_v41 = vadd.f32 %v2720_v19, %v2632_v32  ;;  %v2546_v57 = vadd.f32 %v2545_v33, %v4810_v16 }
 0x26b   : > { %v2812_v48 = vpop.f32.mrf.mxu0 }
 0x26c   : > { %v2810_v54 = vadd.f32 %v2809_v38, %v2721_v41 }
 0x26e   : > { %v3648_v53 = vpack.c.bf16 %v2810_v54, %v2808_v37  ;;  %v2930_v55 = vadd.f32 %v2929_v60, %v2810_v54  ;;  %v2968_v15 = vmul.f32 %v2810_v54, %v2810_v54 }
 0x26f   : > { %v2634_v25 = vpop.f32.mrf.mxu2 }
 0x270   : > { %3719 = vst [vmem:[%s4896_s8 + $0x38] sm:$0xff] %v3648_v53   ;;  %v2999_v46 = vadd.f32 %v2998_v13, %v2968_v15  ;;  %v2635_v42 = vadd.f32 %v2634_v25, %v2546_v57  ;;  %v2723_v2 = vpop.f32.mrf.mxu3 }
 0x271   : > { %v2547_v12 = vpop.f32.mrf.mxu1 }
 0x272   : > { %v2724_v34 = vadd.f32 %v2723_v2, %v2635_v42  ;;  %v2548_v39 = vadd.f32 %v2547_v12, %v4815_v1 }
 0x273   : > { %v2814_v29 = vpop.f32.mrf.mxu0 }
 0x274   : > { %v2813_v36 = vadd.f32 %v2812_v48, %v2724_v34 }
 0x276   : > { %v2931_v18 = vadd.f32 %v2930_v55, %v2813_v36  ;;  %v2969_v5 = vmul.f32 %v2813_v36, %v2813_v36 }
 0x277   : > { %v2636_v17 = vpop.f32.mrf.mxu2 }
 0x278   : > { %v3000_v49 = vadd.f32 %v2999_v46, %v2969_v5  ;;  %v2637_v62 = vadd.f32 %v2636_v17, %v2548_v39  ;;  %v2725_v63 = vpop.f32.mrf.mxu3 }
 0x279   : > { %v2550_v47 = vpop.f32.mrf.mxu1 }
 0x27a   : > { %v2726_v16 = vadd.f32 %v2725_v63, %v2637_v62  ;;  %v2551_v50 = vadd.f32 %v2550_v47, %v4820_v59 }
 0x27b   : > { %v2817_v22 = vpop.f32.mrf.mxu0 }
 0x27c   : > { %v2815_v30 = vadd.f32 %v2814_v29, %v2726_v16 }
 0x27e   : > { %v3653_v40 = vpack.c.bf16 %v2815_v30, %v2813_v36  ;;  %v2932_v20 = vadd.f32 %v2931_v18, %v2815_v30  ;;  %v2970_v28 = vmul.f32 %v2815_v30, %v2815_v30 }
 0x27f   : > { %v2639_v35 = vpop.f32.mrf.mxu2 }
 0x280   : > { %3720 = vst [vmem:[%s4896_s8 + $0x40] sm:$0xff] %v3653_v40   ;;  %v3001_v4 = vadd.f32 %v3000_v49, %v2970_v28  ;;  %v2640_v21 = vadd.f32 %v2639_v35, %v2551_v50  ;;  %v2728_v10 = vpop.f32.mrf.mxu3 }
 0x281   : > { %v2552_v11 = vpop.f32.mrf.mxu1 }
 0x282   : > { %v2729_v1 = vadd.f32 %v2728_v10, %v2640_v21  ;;  %v2553_v38 = vadd.f32 %v2552_v11, %v4825_v24 }
 0x283   : > { %v2819_v43 = vpop.f32.mrf.mxu0 }
 0x284   : > { %v2818_v3 = vadd.f32 %v2817_v22, %v2729_v1 }
 0x286   : > { %v2933_v51 = vadd.f32 %v2932_v20, %v2818_v3  ;;  %v2971_v8 = vmul.f32 %v2818_v3, %v2818_v3 }
 0x287   : > { %v2641_v37 = vpop.f32.mrf.mxu2 }
 0x288   : > { %v3002_v60 = vadd.f32 %v3001_v4, %v2971_v8  ;;  %v2642_v6 = vadd.f32 %v2641_v37, %v2553_v38  ;;  %v2730_v58 = vpop.f32.mrf.mxu3 }
 0x289   : > { %v2555_v31 = vpop.f32.mrf.mxu1 }
 0x28a   : > { %v2731_v59 = vadd.f32 %v2730_v58, %v2642_v6  ;;  %v2556_v48 = vadd.f32 %v2555_v31, %v4830_v56 }
 0x28b   : > { %v2822_v13 = vpop.f32.mrf.mxu0 }
 0x28c   : > { %v2820_v32 = vadd.f32 %v2819_v43, %v2731_v59 }
 0x28e   : > { %v3658_v19 = vpack.c.bf16 %v2820_v32, %v2818_v3  ;;  %v2934_v33 = vadd.f32 %v2933_v51, %v2820_v32  ;;  %v2972_v41 = vmul.f32 %v2820_v32, %v2820_v32 }
 0x28f   : > { %v2644_v54 = vpop.f32.mrf.mxu2 }
 0x290   : > { %3721 = vst [vmem:[%s4896_s8 + $0x48] sm:$0xff] %v3658_v19   ;;  %v3003_v53 = vadd.f32 %v3002_v60, %v2972_v41  ;;  %v2645_v55 = vadd.f32 %v2644_v54, %v2556_v48  ;;  %v2733_v15 = vpop.f32.mrf.mxu3 }
 0x291   : > { %v2557_v57 = vpop.f32.mrf.mxu1 }
 0x292   : > { %v2734_v24 = vadd.f32 %v2733_v15, %v2645_v55  ;;  %v2558_v12 = vadd.f32 %v2557_v57, %v4835_v27 }
 0x293   : > { %v2824_v25 = vpop.f32.mrf.mxu0 }
 0x294   : > { %v2823_v46 = vadd.f32 %v2822_v13, %v2734_v24 }
 0x296   : > { %v2935_v42 = vadd.f32 %v2934_v33, %v2823_v46  ;;  %v2973_v2 = vmul.f32 %v2823_v46, %v2823_v46 }
 0x297   : > { %v2646_v34 = vpop.f32.mrf.mxu2 }
 0x298   : > { %v3004_v29 = vadd.f32 %v3003_v53, %v2973_v2  ;;  %v2647_v36 = vadd.f32 %v2646_v34, %v2558_v12  ;;  %v2735_v18 = vpop.f32.mrf.mxu3 }
 0x299   : > { %v2560_v5 = vpop.f32.mrf.mxu1 }
 0x29a   : > { %v2736_v56 = vadd.f32 %v2735_v18, %v2647_v36  ;;  %v2561_v47 = vadd.f32 %v2560_v5, %v4840_v7 }
 0x29b   : > { %v2827_v39 = vpop.f32.mrf.mxu0 }
 0x29c   : > { %v2825_v17 = vadd.f32 %v2824_v25, %v2736_v56 }
 0x29e   : > { %v3663_v49 = vpack.c.bf16 %v2825_v17, %v2823_v46  ;;  %v2936_v62 = vadd.f32 %v2935_v42, %v2825_v17  ;;  %v2974_v63 = vmul.f32 %v2825_v17, %v2825_v17 }
 0x29f   : > { %v2649_v16 = vpop.f32.mrf.mxu2 }
 0x2a0   : > { %3722 = vst [vmem:[%s4896_s8 + $0x50] sm:$0xff] %v3663_v49   ;;  %v3005_v22 = vadd.f32 %v3004_v29, %v2974_v63  ;;  %v2650_v30 = vadd.f32 %v2649_v16, %v2561_v47  ;;  %v2738_v40 = vpop.f32.mrf.mxu3 }
 0x2a1   : > { %v2562_v20 = vpop.f32.mrf.mxu1 }
 0x2a2   : > { %v2739_v27 = vadd.f32 %v2738_v40, %v2650_v30  ;;  %v2563_v21 = vadd.f32 %v2562_v20, %v4845_v52 }
 0x2a3   : > { %v2829_v28 = vpop.f32.mrf.mxu0 }
 0x2a4   : > { %v2828_v50 = vadd.f32 %v2827_v39, %v2739_v27 }
 0x2a6   : > { %v2937_v35 = vadd.f32 %v2936_v62, %v2828_v50  ;;  %v2975_v4 = vmul.f32 %v2828_v50, %v2828_v50 }
 0x2a7   : > { %v2651_v10 = vpop.f32.mrf.mxu2 }
 0x2a8   : > { %v3006_v11 = vadd.f32 %v3005_v22, %v2975_v4  ;;  %v2652_v1 = vadd.f32 %v2651_v10, %v2563_v21  ;;  %v2740_v43 = vpop.f32.mrf.mxu3 }
 0x2a9   : > { %v2565_v3 = vpop.f32.mrf.mxu1 }
 0x2aa   : > { %v2741_v7 = vadd.f32 %v2740_v43, %v2652_v1  ;;  %v2566_v6 = vadd.f32 %v2565_v3, %v4850_v45 }
 0x2ab   : > { %v2832_v51 = vpop.f32.mrf.mxu0 }
 0x2ac   : > { %v2830_v8 = vadd.f32 %v2829_v28, %v2741_v7 }
 0x2ae   : > { %v3668_v38 = vpack.c.bf16 %v2830_v8, %v2828_v50  ;;  %v2938_v37 = vadd.f32 %v2937_v35, %v2830_v8  ;;  %v2976_v60 = vmul.f32 %v2830_v8, %v2830_v8 }
 0x2af   : > { %v2654_v58 = vpop.f32.mrf.mxu2 }
 0x2b0   : > { %3723 = vst [vmem:[%s4896_s8 + $0x58] sm:$0xff] %v3668_v38   ;;  %v3007_v31 = vadd.f32 %v3006_v11, %v2976_v60  ;;  %v2655_v59 = vadd.f32 %v2654_v58, %v2566_v6  ;;  %v2743_v13 = vpop.f32.mrf.mxu3 }
 0x2b1   : > { %v2567_v32 = vpop.f32.mrf.mxu1 }
 0x2b2   : > { %v2744_v52 = vadd.f32 %v2743_v13, %v2655_v59  ;;  %v2568_v54 = vadd.f32 %v2567_v32, %v4855_v0 }
 0x2b3   : > { %v2834_v19 = vpop.f32.mrf.mxu0 }
 0x2b4   : > { %v2833_v33 = vadd.f32 %v2832_v51, %v2744_v52 }
 0x2b6   : > { %v2939_v41 = vadd.f32 %v2938_v37, %v2833_v33  ;;  %v2977_v48 = vmul.f32 %v2833_v33, %v2833_v33 }
 0x2b7   : > { %v2656_v53 = vpop.f32.mrf.mxu2 }
 0x2b8   : > { %v3008_v55 = vadd.f32 %v3007_v31, %v2977_v48  ;;  %v2657_v15 = vadd.f32 %v2656_v53, %v2568_v54  ;;  %v2745_v57 = vpop.f32.mrf.mxu3 }
 0x2b9   : > { %v2570_v24 = vpop.f32.mrf.mxu1 }
 0x2ba   : > { %v2746_v45 = vadd.f32 %v2745_v57, %v2657_v15  ;;  %v2571_v34 = vadd.f32 %v2570_v24, %v4860_v26 }
 0x2bb   : > { %v2837_v25 = vpop.f32.mrf.mxu0 }
 0x2bc   : > { %v2835_v46 = vadd.f32 %v2834_v19, %v2746_v45 }
 0x2be   : > { %v3673_v42 = vpack.c.bf16 %v2835_v46, %v2833_v33  ;;  %v2940_v2 = vadd.f32 %v2939_v41, %v2835_v46  ;;  %v2978_v12 = vmul.f32 %v2835_v46, %v2835_v46 }
 0x2bf   : > { %v2659_v29 = vpop.f32.mrf.mxu2 }
 0x2c0   : > { %3724 = vst [vmem:[%s4896_s8 + $0x60] sm:$0xff] %v3673_v42   ;;  %v3009_v36 = vadd.f32 %v3008_v55, %v2978_v12  ;;  %v2660_v18 = vadd.f32 %v2659_v29, %v2571_v34  ;;  %v2748_v5 = vpop.f32.mrf.mxu3 }
 0x2c1   : > { %v2572_v56 = vpop.f32.mrf.mxu1 }
 0x2c2   : > { %v2749_v0 = vadd.f32 %v2748_v5, %v2660_v18  ;;  %v2573_v63 = vadd.f32 %v2572_v56, %v4865_v9 }
 0x2c3   : > { %v2839_v39 = vpop.f32.mrf.mxu0 }
 0x2c4   : > { %v2838_v17 = vadd.f32 %v2837_v25, %v2749_v0 }
 0x2c6   : > { %v2941_v49 = vadd.f32 %v2940_v2, %v2838_v17  ;;  %v2979_v62 = vmul.f32 %v2838_v17, %v2838_v17 }
 0x2c7   : > { %v2661_v47 = vpop.f32.mrf.mxu2 }
 0x2c8   : > { %v3010_v16 = vadd.f32 %v3009_v36, %v2979_v62  ;;  %v2662_v22 = vadd.f32 %v2661_v47, %v2573_v63  ;;  %v2750_v30 = vpop.f32.mrf.mxu3 }
 0x2c9   : > { %v2575_v40 = vpop.f32.mrf.mxu1 }
 0x2ca   : > { %v2751_v26 = vadd.f32 %v2750_v30, %v2662_v22  ;;  %v2576_v4 = vadd.f32 %v2575_v40, %v4870_v44 }
 0x2cb   : > { %v2842_v27 = vpop.f32.mrf.mxu0 }
 0x2cc   : > { %v2840_v20 = vadd.f32 %v2839_v39, %v2751_v26 }
 0x2ce   : > { %v3678_v28 = vpack.c.bf16 %v2840_v20, %v2838_v17  ;;  %v2942_v50 = vadd.f32 %v2941_v49, %v2840_v20  ;;  %v2980_v35 = vmul.f32 %v2840_v20, %v2840_v20 }
 0x2cf   : > { %v2664_v21 = vpop.f32.mrf.mxu2 }
 0x2d0   : > { %3725 = vst [vmem:[%s4896_s8 + $0x68] sm:$0xff] %v3678_v28   ;;  %v3011_v10 = vadd.f32 %v3010_v16, %v2980_v35  ;;  %v2665_v11 = vadd.f32 %v2664_v21, %v2576_v4  ;;  %v2753_v1 = vpop.f32.mrf.mxu3 }
 0x2d1   : > { %v2577_v43 = vpop.f32.mrf.mxu1 }
 0x2d2   : > { %v2754_v9 = vadd.f32 %v2753_v1, %v2665_v11  ;;  %v2578_v8 = vadd.f32 %v2577_v43, %v4875_v61 }
 0x2d3   : > { %v2844_v38 = vpop.f32.mrf.mxu0 }
 0x2d4   : > { %v2843_v3 = vadd.f32 %v2842_v27, %v2754_v9 }
 0x2d6   : > { %v2943_v7 = vadd.f32 %v2942_v50, %v2843_v3  ;;  %v2981_v51 = vmul.f32 %v2843_v3, %v2843_v3 }
 0x2d7   : > { %v2666_v37 = vpop.f32.mrf.mxu2 }
 0x2d8   : > { %v3012_v60 = vadd.f32 %v3011_v10, %v2981_v51  ;;  %v2667_v6 = vadd.f32 %v2666_v37, %v2578_v8  ;;  %v2755_v58 = vpop.f32.mrf.mxu3 }
 0x2d9   : > { %v2580_v31 = vpop.f32.mrf.mxu1 }
 0x2da   : > { %v2756_v44 = vadd.f32 %v2755_v58, %v2667_v6  ;;  %v2581_v19 = vadd.f32 %v2580_v31, %v4880_v23 }
 0x2db   : > { %v2847_v53 = vpop.f32.mrf.mxu0 }
 0x2dc   : > { %v2845_v59 = vadd.f32 %v2844_v38, %v2756_v44 }
 0x2de   : > { %v3683_v13 = vpack.c.bf16 %v2845_v59, %v2843_v3  ;;  %v2944_v32 = vadd.f32 %v2943_v7, %v2845_v59  ;;  %v2982_v52 = vmul.f32 %v2845_v59, %v2845_v59 }
 0x2df   : > { %v2669_v33 = vpop.f32.mrf.mxu2 }
 0x2e0   : > { %3726 = vst [vmem:[%s4896_s8 + $0x70] sm:$0xff] %v3683_v13   ;;  %v3013_v41 = vadd.f32 %v3012_v60, %v2982_v52  ;;  %v2670_v48 = vadd.f32 %v2669_v33, %v2581_v19  ;;  %v2758_v54 = vpop.f32.mrf.mxu3 }
 0x2e1   : > { %v2582_v55 = vpop.f32.mrf.mxu1 }
 0x2e2   : > { %v2759_v61 = vadd.f32 %v2758_v54, %v2670_v48  ;;  %v2583_v45 = vadd.f32 %v2582_v55, %v4884_v14 }
 0x2e3   : > { %v2849_v23 = vpop.f32.mrf.mxu0 }
 0x2e4   : > { %v2848_v15 = vadd.f32 %v2847_v53, %v2759_v61 }
 0x2e6   : > { %v2945_v57 = vadd.f32 %v2944_v32, %v2848_v15  ;;  %v2983_v24 = vmul.f32 %v2848_v15, %v2848_v15 }
 0x2e7   : > { %v2671_v25 = vpop.f32.mrf.mxu2 }
 0x2e8   : > { %v3014_v46 = vadd.f32 %v3013_v41, %v2983_v24  ;;  %v2672_v42 = vadd.f32 %v2671_v25, %v2583_v45  ;;  %v2760_v2 = vpop.f32.mrf.mxu3 }
 0x2ea   : > { %v2761_v12 = vadd.f32 %v2760_v2, %v2672_v42 }
 0x2ec   : > { %v2850_v34 = vadd.f32 %v2849_v23, %v2761_v12 }
 0x2ee   : > { %v3688_v29 = vpack.c.bf16 %v2850_v34, %v2848_v15  ;;  %v2946_v36 = vadd.f32 %v2945_v57, %v2850_v34  ;;  %v2984_v18 = vmul.f32 %v2850_v34, %v2850_v34 }
 0x2f0   : > { %3727 = vst [vmem:[%s4896_s8 + $0x78] sm:$0xff] %v3688_v29   ;;  %v2947_v5 = vrot.slane %v2946_v36, 4  ;;  %v3015_v56 = vadd.f32 %v3014_v46, %v2984_v18 }
 0x2f2   : > { %v2948_v0 = vadd.f32 %v2947_v5, %v2946_v36  ;;  %v3016_v39 = vrot.slane %v3015_v56, 4 }
 0x2f4   : > { %v2949_v17 = vrot.slane %v2948_v0, 2  ;;  %v3017_v49 = vadd.f32 %v3016_v39, %v3015_v56 }
 0x2f6   : > { %v2950_v62 = vadd.f32 %v2949_v17, %v2948_v0  ;;  %v3018_v14 = vrot.slane %v3017_v49, 2 }
 0x2f8   : > { %v2951_v63 = vrot.slane %v2950_v62, 1  ;;  %v3019_v47 = vadd.f32 %v3018_v14, %v3017_v49 }
 0x2fa   : > { %v3020_v16 = vrot.slane %v3019_v47, 1  ;;  %v2952_v22 = vadd.f32 %v2951_v63, %v2950_v62 }
 0x2fc   : > { %v3021_v30 = vadd.f32 %v3020_v16, %v3019_v47 }
 0x2fe   : > { %v3023_v40 = vsel %vm3022_vm4, %v2952_v22, %v3021_v30 }
 0x2ff   : > { %3024 = vst [vmem:[%s298_s13] sm:$0x3] %v3023_v40 }
 0x300 PF: > { %s17_s23 = sadd.s32 1, %s3810_s23   ;;  %s5093_s21 = smov %s3806_s22 }
 0x301   : > { %p14_p5 = scmp.ge.s32.totalorder %s17_s23, 4   ;;  %s5094_s22 = smov %s5096_s24 }
 0x303   :  { %16 = sbr.rel (!%p14_p5) target bundleno = 2 (0x2), region = 82 }

</bundles_post_ra>
